<compile_context>
chip_gen: v5e
topology: v5e:2x2
jax: 0.10.0
libtpu: 0.0.40
codegen_flags: <defaults>
</compile_context>

<pallas_src>
import jax
import jax.numpy as jnp
from jax.experimental import pallas as pl
from jax.experimental.pallas import tpu as pltpu

INPUT_SIZE = 28 * 28   # 784
NUM_CLASSES = 10

_TB_MAX = 1024          # batch tile (rows); multiple of 8, fits all generations
_PALLAS_MIN_BATCH = 64  # below this, XLA's fused GEMM beats kernel launch cost


def _linear_kernel(x_ref, w_ref, b_ref, o_ref):
    # x_ref: (TB, 784) bf16, w_ref: (784, 10) bf16, b_ref: (1, 10) f32
    # MXU matmul with f32 accumulation, bias broadcast-added in f32.
    acc = jnp.dot(x_ref[...], w_ref[...], preferred_element_type=jnp.float32)
    o_ref[...] = acc + b_ref[...]


def _round_up(n, m):
    return ((n + m - 1) // m) * m


def logistic_regression_forward(x, w_t, b):
    """x: (B, 1, 28, 28) or (B, 784). w_t: (784, 10). b: (10,) -> (B, 10) f32 logits."""
    x2d = x.reshape(-1, INPUT_SIZE)
    batch = x2d.shape[0]
    b2d = b.reshape(1, NUM_CLASSES).astype(jnp.float32)

    # bf16 MXU inputs: halves HBM read traffic for x (the dominant cost).
    x_bf = x2d.astype(jnp.bfloat16)
    w_bf = w_t.astype(jnp.bfloat16)

    if batch < _PALLAS_MIN_BATCH:
        # Tiny-batch fast path: kernel launch + DMA setup overhead dominates.
        return jnp.dot(x_bf, w_bf, preferred_element_type=jnp.float32) + b2d

    tb = min(_TB_MAX, _round_up(batch, 8))
    grid = (pl.cdiv(batch, tb),)

    flops = 2 * batch * INPUT_SIZE * NUM_CLASSES
    bytes_accessed = (batch * INPUT_SIZE * 2             # x (bf16)
                      + INPUT_SIZE * NUM_CLASSES * 2     # W (bf16)
                      + NUM_CLASSES * 4                  # bias (f32)
                      + batch * NUM_CLASSES * 4)         # logits (f32)

    return pl.pallas_call(
        _linear_kernel,
        out_shape=jax.ShapeDtypeStruct((batch, NUM_CLASSES), jnp.float32),
        grid_spec=pltpu.PrefetchScalarGridSpec(
            num_scalar_prefetch=0,
            grid=grid,
            in_specs=[
                pl.BlockSpec((tb, INPUT_SIZE), lambda i: (i, 0)),           # x tile
                pl.BlockSpec((INPUT_SIZE, NUM_CLASSES), lambda i: (0, 0)),  # W resident
                pl.BlockSpec((1, NUM_CLASSES), lambda i: (0, 0)),           # b resident
            ],
            out_specs=pl.BlockSpec((tb, NUM_CLASSES), lambda i: (i, 0)),
        ),
        compiler_params=pltpu.CompilerParams(
            dimension_semantics=("parallel",),  # batch rows are independent
        ),
        cost_estimate=pl.CostEstimate(
            flops=flops, transcendentals=0, bytes_accessed=bytes_accessed),
    )(x_bf, w_bf, b2d)


if __name__ == "__main__":
    key = jax.random.PRNGKey(0)
    k_x, k_w, k_b = jax.random.split(key, 3)

    # MNIST-like NCHW batch, large enough to exercise the tiled/pipelined path
    # (grid of 2 batch tiles at TB=1024).
    batch = 2048
    x = jax.random.normal(k_x, (batch, 1, 28, 28), dtype=jnp.float32)

    # Deterministic nn.Linear-style init: U(-1/sqrt(in), 1/sqrt(in)).
    bound = 1.0 / jnp.sqrt(jnp.float32(INPUT_SIZE))
    w = jax.random.uniform(k_w, (NUM_CLASSES, INPUT_SIZE),
                           minval=-bound, maxval=bound, dtype=jnp.float32)
    b = jax.random.uniform(k_b, (NUM_CLASSES,),
                           minval=-bound, maxval=bound, dtype=jnp.float32)

    logits = jax.block_until_ready(logistic_regression_forward(x, w.T, b))
    assert logits.shape == (batch, NUM_CLASSES)

    # Reference 1: same bf16-cast inputs, f32 accumulation (tight tolerance).
    x2d = x.reshape(-1, INPUT_SIZE)
    xb = x2d.astype(jnp.bfloat16).astype(jnp.float32)
    wb = w.astype(jnp.bfloat16).astype(jnp.float32)
    ref_bf = jnp.dot(xb, wb.T, precision=jax.lax.Precision.HIGHEST) + b
    assert jnp.allclose(logits, ref_bf, atol=2e-3, rtol=2e-3), \
        float(jnp.max(jnp.abs(logits - ref_bf)))

    # Reference 2: full f32 math (loose tolerance for the bf16 input cast).
    ref_f32 = jnp.dot(x2d, w.T, precision=jax.lax.Precision.HIGHEST) + b
    assert jnp.allclose(logits, ref_f32, atol=5e-2, rtol=5e-2)

    # Tiny-batch fallback path (plain XLA dot) agrees with the Pallas path.
    small = jax.block_until_ready(logistic_regression_forward(x[:8], w.T, b))
    assert small.shape == (8, NUM_CLASSES)
    assert jnp.allclose(small, logits[:8], atol=2e-3, rtol=2e-3)

    print("KERNEL_OK")
</pallas_src>

<mosaic_0001>
module attributes {stable_mosaic.version = 11 : i64} {
  func.func @_linear_kernel(%arg0: i32, %arg1: memref<1024x784xbf16, #tpu.memory_space<vmem>>, %arg2: memref<784x10xbf16, #tpu.memory_space<vmem>>, %arg3: memref<1x10xf32, #tpu.memory_space<vmem>>, %arg4: memref<1024x10xf32, #tpu.memory_space<vmem>>) attributes {dimension_semantics = [#tpu.dimension_semantics<parallel>], iteration_bounds = array<i64: 2>, scalar_prefetch = 0 : i64, scratch_operands = 0 : i64, tpu.core_type = #tpu.core_type<tc>, window_params = [{transform_indices = @transform_0, window_bounds = array<i64: 1024, 784>}, {pipeline_mode = #tpu.pipeline_mode<synchronous>, transform_indices = @transform_1, window_bounds = array<i64: 784, 10>}, {pipeline_mode = #tpu.pipeline_mode<synchronous>, transform_indices = @transform_2, window_bounds = array<i64: 1, 10>}, {transform_indices = @transform_3, window_bounds = array<i64: 1024, 10>}]} {
    %c0 = arith.constant 0 : index
    %c0_0 = arith.constant 0 : index
    %0 = vector.load %arg1[%c0, %c0_0] : memref<1024x784xbf16, #tpu.memory_space<vmem>>, vector<1024x784xbf16>
    %c0_1 = arith.constant 0 : index
    %c0_2 = arith.constant 0 : index
    %1 = vector.load %arg2[%c0_1, %c0_2] : memref<784x10xbf16, #tpu.memory_space<vmem>>, vector<784x10xbf16>
    %cst = arith.constant dense<0.000000e+00> : vector<1024x10xf32>
    %2 = tpu.matmul %0, %1, %cst {dimension_numbers = #tpu.dot_dimension_numbers<[1], [0], [0], [1], [0, 0, 1, 1], [], []>} : vector<1024x784xbf16>, vector<784x10xbf16>, vector<1024x10xf32> -> vector<1024x10xf32>
    %c0_3 = arith.constant 0 : index
    %c0_4 = arith.constant 0 : index
    %3 = vector.load %arg3[%c0_3, %c0_4] : memref<1x10xf32, #tpu.memory_space<vmem>>, vector<1x10xf32>
    %4 = vector.broadcast %3 : vector<1x10xf32> to vector<1024x10xf32>
    %5 = arith.addf %2, %4 : vector<1024x10xf32>
    %c0_5 = arith.constant 0 : index
    %c0_6 = arith.constant 0 : index
    %6 = vector.load %arg4[%c0_5, %c0_6] : memref<1024x10xf32, #tpu.memory_space<vmem>>, vector<1024x10xf32>
    tpu.vector_store %arg4[%c0_5, %c0_6], %5 {strides = array<i32>} : memref<1024x10xf32, #tpu.memory_space<vmem>>, vector<1024x10xf32>,
    return
  }
  func.func @transform_0(%arg0: i32) -> (i32, i32) {
    %c0_i32 = arith.constant 0 : i32
    %c0_i32_0 = arith.constant 0 : i32
    return %arg0, %c0_i32 : i32, i32
  }
  func.func @transform_1(%arg0: i32) -> (i32, i32) {
    %c0_i32 = arith.constant 0 : i32
    %c0_i32_0 = arith.constant 0 : i32
    %c0_i32_1 = arith.constant 0 : i32
    return %c0_i32, %c0_i32_0 : i32, i32
  }
  func.func @transform_2(%arg0: i32) -> (i32, i32) {
    %c0_i32 = arith.constant 0 : i32
    %c0_i32_0 = arith.constant 0 : i32
    %c0_i32_1 = arith.constant 0 : i32
    return %c0_i32, %c0_i32_0 : i32, i32
  }
  func.func @transform_3(%arg0: i32) -> (i32, i32) {
    %c0_i32 = arith.constant 0 : i32
    %c0_i32_0 = arith.constant 0 : i32
    return %arg0, %c0_i32 : i32, i32
  }
}

</mosaic_0001>

<bundles_post_ra>
// kernel: tpu_custom_call.1
= control target key start
LH: loop header
LB: loop body
LE: loop exit
PB: predicated region body
PF: predicated region fallthrough
CT: control target
= control target key end

     0   :  { %s8632_s12 = smov 0   ;;  %s10792_s0 = inlined_call_operand.vmem [shape: bf16[2048,784], index: 0, kind: input, shape index: {}]   ;;  %s10793_s1 = inlined_call_operand.vmem [shape: bf16[784,10], index: 1, kind: input, shape index: {}]   ;;  %s10794_s2 = inlined_call_operand.vmem [shape: f32[1,10], index: 2, kind: input, shape index: {}]   ;;  %s10795_s3 = inlined_call_operand.vmem [shape: f32[2048,10], index: 3, kind: output, shape index: {}]  }
   0x1 LB: > { %s6007_s13 = sadd.s32 4294967295, %s8610_s12   ;;  %p6011_p0 = scmp.ge.s32.totalorder %s8610_s12, 1  ;;  %s8610_s12 = sphi %s8632_s12, %s13_s12  }
   0x2   : > { %p139_p1 = scmp.lt.s32.totalorder %s8610_s12, 3 }
   0x4   : > { %p140_p2 = pnand %p6011_p0, %p139_p1 }
   0x6   : > { %143 = sbr.rel (%p140_p2) target bundleno = 1968 (0x7b0), region = 32 }
   0xb   : > { %v8525_v0 = vld [vmem:[%s10793_s1 + $0x38] sm:$0xff]  ;;  %v8524_v3 = vld [vmem:[%s10793_s1 + $0x30] sm:$0xff]  ;;  %v8523_v6 = vld [vmem:[%s10793_s1 + $0x28] sm:$0xff]  ;;  %s6012_s5 = sshll.u32 %s6007_s13, 7  ;;  %vm3326_vm0 = vcmask 130048   ;;  %vm5822_vm1 = vcmask 80896  }
   0xc   : > { %v8646_v1 = vld [vmem:[%s10793_s1 + $0xb8] sm:$0xff]  ;;  %3519 = vmatpush.bf16.msra.mxu0 %v8525_v0  ;;  %8567 = vmatpush.bf16.msra.mxu3 %v8525_v0  ;;  %v8661_v4 = vld [vmem:[%s10793_s1 + $0xb0] sm:$0xff]  ;;  %v8676_v7 = vld [vmem:[%s10793_s1 + $0xa8] sm:$0xff]  ;;  %p165_p3 = scmp.lt.s32.totalorder %s6012_s5, 255 }
   0xd   : > { %v8651_v2 = vld [vmem:[%s10793_s1 + $0x78] sm:$0xff]  ;;  %4177 = vmatpush.bf16.msra.mxu2 %v8646_v1  ;;  %v8666_v5 = vld [vmem:[%s10793_s1 + $0x70] sm:$0xff]  ;;  %v8681_v8 = vld [vmem:[%s10793_s1 + $0x68] sm:$0xff] }
   0xe   : > { %3848 = vmatpush.bf16.msra.mxu1 %v8651_v2  ;;  %v8522_v9 = vld [vmem:[%s10793_s1 + $0x20] sm:$0xff]  ;;  %v8521_v12 = vld [vmem:[%s10793_s1 + $0x18] sm:$0xff]  ;;  %s10969_s5 = smov (!%p165_p3, %s6012_s5), 255  ;;  %v8520_v15 = vld [vmem:[%s10793_s1 + $0x10] sm:$0xff] }
   0xf   : > { %v8691_v10 = vld [vmem:[%s10793_s1 + $0xa0] sm:$0xff]  ;;  %v8708_v13 = vld [vmem:[%s10793_s1 + $0x98] sm:$0xff]  ;;  %s8591_s21 = smul.u32 28, %s10969_s5  ;;  %v8724_v16 = vld [vmem:[%s10793_s1 + $0x90] sm:$0xff]  ;;  %s6015_s26 = sshll.u32 %s10969_s5, 3 }
  0x10   : > { %3520 = vmatpush.bf16.msra.mxu0 %v8524_v3  ;;  %8568 = vmatpush.bf16.msra.mxu3 %v8524_v3  ;;  %v8696_v11 = vld [vmem:[%s10793_s1 + $0x60] sm:$0xff]  ;;  %v8713_v14 = vld [vmem:[%s10793_s1 + $0x58] sm:$0xff]  ;;  %v8528_v17 = vld [vmem:[%s10793_s1 + $0x50] sm:$0xff]  ;;  %s9911_s29 = scalar_lea.vmem %s10795_s3, %s6015_s26 }
  0x11   : > { %4178 = vmatpush.bf16.msra.mxu2 %v8661_v4  ;;  %v8519_v18 = vld [vmem:[%s10793_s1 + $0x8] sm:$0xff]  ;;  %s8735_s30 = scalar_lea.vmem %s10792_s0, %s8591_s21  ;;  %v8518_v21 = vld [vmem:[%s10793_s1] sm:$0xff]  ;;  %v8557_v37 = vld [vmem:[%s10793_s1 + $0x138] sm:$0xff] }
  0x12   : > { %3849 = vmatpush.bf16.msra.mxu1 %v8666_v5  ;;  %v8741_v19 = vld [vmem:[%s10793_s1 + $0x88] sm:$0xff]  ;;  %v8752_v22 = vld [vmem:[%s10793_s1 + $0x80] sm:$0xff]  ;;  %v8073_v25 = vld [vmem:[%s8735_s30 + $0x18] sm:$0xf0] }
  0x13   : > { %v8527_v20 = vld [vmem:[%s10793_s1 + $0x48] sm:$0xff]  ;;  %v8526_v23 = vld [vmem:[%s10793_s1 + $0x40] sm:$0xff]  ;;  %v8409_v27 = vld [vmem:[%s8735_s30 + $0xa98] sm:$0xf0] }
  0x14   : > { %3521 = vmatpush.bf16.msra.mxu0 %v8523_v6  ;;  %8569 = vmatpush.bf16.msra.mxu3 %v8523_v6  ;;  %v6018_v24 = vld [vmem:[%s8735_s30] sm:$0xf]  ;;  %v6026_v28 = vld [vmem:[%s8735_s30 + $0x8] sm:$0xf]  ;;  %v8074_v29 = vld [vmem:[%s8735_s30 + $0x20] sm:$0xf0] }
  0x15   : > { %4179 = vmatpush.bf16.msra.mxu2 %v8676_v7  ;;  %v7362_v26 = vld [vmem:[%s8735_s30 + $0xa80] sm:$0xf]  ;;  %v8070_v30 = vld [vmem:[%s8735_s30 + $0x4] sm:$0xf]  ;;  %v6019_v33 = vor.u32 %v8073_v25, %v6018_v24  ;;  %v6027_v35 = vor.u32 %v8074_v29, %v6026_v28  ;;  %v8565_v38 = vld [vmem:[%s10793_s1 + $0x178] sm:$0xff] }
  0x16   : > { %3850 = vmatpush.bf16.msra.mxu1 %v8681_v8  ;;  %v6020_v31 = vld [vmem:[%s8735_s30 + $0x1c] sm:$0xf0]  ;;  %v7363_v34 = vor.u32 %v8409_v27, %v7362_v26  ;;  %v6046_v39 = vld [vmem:[%s8735_s30 + $0x38] sm:$0xf]  ;;  %v8080_v40 = vld [vmem:[%s8735_s30 + $0x50] sm:$0xf0] }
  0x17   : > { %v8566_v32 = vld [vmem:[%s10793_s1 + $0x180] sm:$0xff]  ;;  %v6023_v36 = vor.u32 %v8070_v30, %v6020_v31  ;;  %v7390_v41 = vld [vmem:[%s8735_s30 + $0xab8] sm:$0xf]  ;;  %v8416_v42 = vld [vmem:[%s8735_s30 + $0xad0] sm:$0xf0]  ;;  %v6047_v47 = vor.u32 %v8080_v40, %v6046_v39 }
  0x18   : > { %3522 = vmatpush.bf16.msra.mxu0 %v8522_v9  ;;  %8570 = vmatpush.bf16.msra.mxu3 %v8522_v9  ;;  %v6054_v43 = vld [vmem:[%s8735_s30 + $0x40] sm:$0xf]  ;;  %v8081_v44 = vld [vmem:[%s8735_s30 + $0x58] sm:$0xf0]  ;;  %v6048_v46 = vld [vmem:[%s8735_s30 + $0x54] sm:$0xf0]  ;;  %v7391_v48 = vor.u32 %v8416_v42, %v7390_v41 }
  0x19   : > { %4180 = vmatpush.bf16.msra.mxu2 %v8691_v10  ;;  %v8077_v45 = vld [vmem:[%s8735_s30 + $0x3c] sm:$0xf]  ;;  %v6055_v49 = vor.u32 %v8081_v44, %v6054_v43  ;;  %v6074_v51 = vld [vmem:[%s8735_s30 + $0x70] sm:$0xf]  ;;  %v8087_v52 = vld [vmem:[%s8735_s30 + $0x88] sm:$0xf0] }
  0x1a   : > { %3851 = vmatpush.bf16.msra.mxu1 %v8696_v11  ;;  %v6051_v50 = vor.u32 %v8077_v45, %v6048_v46  ;;  %v7418_v53 = vld [vmem:[%s8735_s30 + $0xaf0] sm:$0xf]  ;;  %v8423_v54 = vld [vmem:[%s8735_s30 + $0xb08] sm:$0xf0]  ;;  %v6082_v55 = vld [vmem:[%s8735_s30 + $0x78] sm:$0xf]  ;;  %v6075_v59 = vor.u32 %v8087_v52, %v6074_v51 }
  0x1b   : > { %v8088_v56 = vld [vmem:[%s8735_s30 + $0x90] sm:$0xf0]  ;;  %v6076_v58 = vld [vmem:[%s8735_s30 + $0x8c] sm:$0xf0]  ;;  %v7419_v60 = vor.u32 %v8423_v54, %v7418_v53  ;;  %v6102_v63 = vld [vmem:[%s8735_s30 + $0xa8] sm:$0xf] }
  0x1c   : > { %3523 = vmatpush.bf16.msra.mxu0 %v8521_v12  ;;  %8571 = vmatpush.bf16.msra.mxu3 %v8521_v12  ;;  %v8084_v57 = vld [vmem:[%s8735_s30 + $0x74] sm:$0xf]  ;;  %v6083_v61 = vor.u32 %v8088_v56, %v6082_v55  ;;  %v8094_v0 = vld [vmem:[%s8735_s30 + $0xc0] sm:$0xf0]  ;;  %v8095_v6 = vld [vmem:[%s8735_s30 + $0xc8] sm:$0xf0] }
  0x1d   : > { %4181 = vmatpush.bf16.msra.mxu2 %v8708_v13  ;;  %v6079_v62 = vor.u32 %v8084_v57, %v6076_v58  ;;  %v8430_v3 = vld [vmem:[%s8735_s30 + $0xb40] sm:$0xf0]  ;;  %v6103_v9 = vor.u32 %v8094_v0, %v6102_v63  ;;  %v6130_v12 = vld [vmem:[%s8735_s30 + $0xe0] sm:$0xf]  ;;  %v8556_v24 = vld [vmem:[%s10793_s1 + $0x130] sm:$0xff] }
  0x1e   : > { %3852 = vmatpush.bf16.msra.mxu1 %v8713_v14  ;;  %v6158_v25 = vld [vmem:[%s8735_s30 + $0x118] sm:$0xf]  ;;  %v8108_v26 = vld [vmem:[%s8735_s30 + $0x130] sm:$0xf0]  ;;  %v6166_v29 = vld [vmem:[%s8735_s30 + $0x120] sm:$0xf] }
  0x1f   : > { %v7502_v27 = vld [vmem:[%s8735_s30 + $0xb98] sm:$0xf]  ;;  %v8444_v28 = vld [vmem:[%s8735_s30 + $0xbb0] sm:$0xf0]  ;;  %v8109_v30 = vld [vmem:[%s8735_s30 + $0x138] sm:$0xf0] }
  0x20   : > { %3524 = vmatpush.bf16.msra.mxu0 %v8520_v15  ;;  %8572 = vmatpush.bf16.msra.mxu3 %v8520_v15  ;;  %v8437_v15 = vld [vmem:[%s8735_s30 + $0xb78] sm:$0xf0]  ;;  %v7530_v39 = vld [vmem:[%s8735_s30 + $0xbd0] sm:$0xf]  ;;  %v8451_v40 = vld [vmem:[%s8735_s30 + $0xbe8] sm:$0xf0] }
  0x21   : > { %4182 = vmatpush.bf16.msra.mxu2 %v8724_v16  ;;  %v8105_v31 = vld [vmem:[%s8735_s30 + $0x11c] sm:$0xf]  ;;  %v6194_v41 = vld [vmem:[%s8735_s30 + $0x158] sm:$0xf]  ;;  %v8116_v42 = vld [vmem:[%s8735_s30 + $0x170] sm:$0xf0]  ;;  %v7531_v46 = vor.u32 %v8451_v40, %v7530_v39 }
  0x22   : > { %3853 = vmatpush.bf16.msra.mxu1 %v8528_v17  ;;  %v8112_v43 = vld [vmem:[%s8735_s30 + $0x154] sm:$0xf]  ;;  %v6188_v44 = vld [vmem:[%s8735_s30 + $0x16c] sm:$0xf0]  ;;  %v7558_v51 = vld [vmem:[%s8735_s30 + $0xc08] sm:$0xf] }
  0x23   : > { %v8458_v52 = vld [vmem:[%s8735_s30 + $0xc20] sm:$0xf0]  ;;  %v6222_v53 = vld [vmem:[%s8735_s30 + $0x190] sm:$0xf]  ;;  %v8123_v54 = vld [vmem:[%s8735_s30 + $0x1a8] sm:$0xf0] }
  0x24   : > { %3525 = vmatpush.bf16.msra.mxu0 %v8519_v18  ;;  %8573 = vmatpush.bf16.msra.mxu3 %v8519_v18  ;;  %v8102_v18 = vld [vmem:[%s8735_s30 + $0x100] sm:$0xf0]  ;;  %v8119_v55 = vld [vmem:[%s8735_s30 + $0x18c] sm:$0xf]  ;;  %v6216_v56 = vld [vmem:[%s8735_s30 + $0x1a4] sm:$0xf0]  ;;  %v7559_v58 = vor.u32 %v8458_v52, %v7558_v51 }
  0x25   : > { %4183 = vmatpush.bf16.msra.mxu2 %v8741_v19  ;;  %v7586_v63 = vld [vmem:[%s8735_s30 + $0xc40] sm:$0xf]  ;;  %v8465_v0 = vld [vmem:[%s8735_s30 + $0xc58] sm:$0xf0]  ;;  %v6306_v51 = vld [vmem:[%s8735_s30 + $0x238] sm:$0xf] }
  0x26   : > { %3854 = vmatpush.bf16.msra.mxu1 %v8527_v20  ;;  %v8144_v52 = vld [vmem:[%s8735_s30 + $0x250] sm:$0xf0] }
  0x28   : > { %3526 = vmatpush.bf16.msra.mxu0 %v8518_v21  ;;  %8574 = vmatpush.bf16.msra.mxu3 %v8518_v21  ;;  %v6132_v21 = vld [vmem:[%s8735_s30 + $0xfc] sm:$0xf0] }
  0x29   : > { %4184 = vmatpush.bf16.msra.mxu2 %v8752_v22 }
  0x2a   : > { %3855 = vmatpush.bf16.msra.mxu1 %v8526_v23 }
  0x2b   : > { %3527 = vmatmul.bf16.vlgmr.msra.gmra.mxu0 %v6019_v33  ;;  %3767 = vmatmul.bf16.vlgmr.msra.gmra.mxu3 %v7363_v34  ;;  %v6159_v33 = vor.u32 %v8108_v26, %v6158_v25  ;;  %v7503_v34 = vor.u32 %v8444_v28, %v7502_v27  ;;  %v6278_v25 = vld [vmem:[%s8735_s30 + $0x200] sm:$0xf]  ;;  %v8137_v26 = vld [vmem:[%s8735_s30 + $0x218] sm:$0xf0]  ;;  %v6272_v28 = vld [vmem:[%s8735_s30 + $0x214] sm:$0xf0] }
  0x2c   : > { %8575 = vmatpush.bf16.msrb.mxu3 %v8651_v2  ;;  %4185 = vmatmul.bf16.vlgmr.msra.gmra.mxu2 %v6027_v35  ;;  %v7446_v2 = vld [vmem:[%s8735_s30 + $0xb28] sm:$0xf]  ;;  %v6167_v35 = vor.u32 %v8109_v30, %v6166_v29  ;;  %v8133_v27 = vld [vmem:[%s8735_s30 + $0x1fc] sm:$0xf] }
  0x2d   : > { %5500 = vmatpush.bf16.msrb.mxu2 %v8566_v32  ;;  %3856 = vmatmul.bf16.vlgmr.msra.gmra.mxu1 %v6023_v36  ;;  %v6160_v32 = vld [vmem:[%s8735_s30 + $0x134] sm:$0xf0] }
  0x2e   : > { %4835 = vmatpush.bf16.msrb.mxu0 %v8557_v37  ;;  %5164 = vmatpush.bf16.msrb.mxu1 %v8565_v38  ;;  %v6163_v36 = vor.u32 %v8105_v31, %v6160_v32  ;;  %v6186_v37 = vld [vmem:[%s8735_s30 + $0x150] sm:$0xf]  ;;  %v8115_v38 = vld [vmem:[%s8735_s30 + $0x168] sm:$0xf0] }
  0x2f   : > { %v6187_v45 = vor.u32 %v8115_v38, %v6186_v37 }
  0x30   : > { %8576 = vmatpush.bf16.msrb.mxu3 %v8666_v5  ;;  %v6110_v5 = vld [vmem:[%s8735_s30 + $0xb0] sm:$0xf] }
  0x32   : > { %4836 = vmatpush.bf16.msrb.mxu0 %v8556_v24  ;;  %v7614_v24 = vld [vmem:[%s8735_s30 + $0xc78] sm:$0xf] }
  0x34   : > { %8577 = vmatpush.bf16.msrb.mxu3 %v8681_v8  ;;  %v6104_v8 = vld [vmem:[%s8735_s30 + $0xc4] sm:$0xf0] }
  0x38   : > { %8578 = vmatpush.bf16.msrb.mxu3 %v8696_v11 }
  0x3b   : > { %3532 = vmatmul.bf16.gmra.mxu0 %v6047_v47  ;;  %3772 = vmatmul.bf16.gmra.mxu3 %v7391_v48  ;;  %v6195_v47 = vor.u32 %v8116_v42, %v6194_v41  ;;  %v6191_v48 = vor.u32 %v8112_v43, %v6188_v44 }
  0x3c   : > { %8579 = vmatpush.bf16.msrb.mxu3 %v8713_v14  ;;  %4190 = vmatmul.bf16.gmra.mxu2 %v6055_v49  ;;  %v7474_v14 = vld [vmem:[%s8735_s30 + $0xb60] sm:$0xf]  ;;  %v6214_v49 = vld [vmem:[%s8735_s30 + $0x188] sm:$0xf] }
  0x3d   : > { %3861 = vmatmul.bf16.gmra.mxu1 %v6051_v50  ;;  %v8122_v50 = vld [vmem:[%s8735_s30 + $0x1a0] sm:$0xf0] }
  0x3e   : > { %v6215_v57 = vor.u32 %v8122_v50, %v6214_v49  ;;  %v7642_v49 = vld [vmem:[%s8735_s30 + $0xcb0] sm:$0xf]  ;;  %v8479_v50 = vld [vmem:[%s8735_s30 + $0xcc8] sm:$0xf0] }
  0x40   : > { %8580 = vmatpush.bf16.msrb.mxu3 %v8528_v17  ;;  %v6138_v17 = vld [vmem:[%s8735_s30 + $0xe8] sm:$0xf] }
  0x44   : > { %8581 = vmatpush.bf16.msrb.mxu3 %v8527_v20  ;;  %v8098_v20 = vld [vmem:[%s8735_s30 + $0xe4] sm:$0xf] }
  0x48   : > { %8582 = vmatpush.bf16.msrb.mxu3 %v8526_v23  ;;  %v7475_v23 = vor.u32 %v8437_v15, %v7474_v14 }
  0x4b   : > { %3537 = vmatmul.bf16.gmra.mxu0 %v6075_v59  ;;  %3777 = vmatmul.bf16.gmra.mxu3 %v7419_v60  ;;  %v6223_v59 = vor.u32 %v8123_v54, %v6222_v53  ;;  %v6219_v60 = vor.u32 %v8119_v55, %v6216_v56  ;;  %v8140_v53 = vld [vmem:[%s8735_s30 + $0x234] sm:$0xf]  ;;  %v6300_v54 = vld [vmem:[%s8735_s30 + $0x24c] sm:$0xf0] }
  0x4c   : > { %8583 = vmatpush.bf16.msra.mxu3 %v8646_v1  ;;  %4195 = vmatmul.bf16.gmra.mxu2 %v6083_v61  ;;  %v8091_v1 = vld [vmem:[%s8735_s30 + $0xac] sm:$0xf]  ;;  %v6242_v61 = vld [vmem:[%s8735_s30 + $0x1c0] sm:$0xf] }
  0x4d   : > { %3866 = vmatmul.bf16.gmra.mxu1 %v6079_v62  ;;  %v6107_v11 = vor.u32 %v8091_v1, %v6104_v8  ;;  %v8129_v62 = vld [vmem:[%s8735_s30 + $0x1d8] sm:$0xf0]  ;;  %v8862_v1 = vld [vmem:[%s10794_s2] ss:$0 sm:$0xff] }
  0x4e   : > { %v6243_v8 = vor.u32 %v8129_v62, %v6242_v61  ;;  %v6307_v61 = vor.u32 %v8144_v52, %v6306_v51  ;;  %v6303_v62 = vor.u32 %v8140_v53, %v6300_v54  ;;  %v6356_v51 = vld [vmem:[%s8735_s30 + $0x2bc] sm:$0xf0] }
  0x50   : > { %8584 = vmatpush.bf16.msra.mxu3 %v8661_v4  ;;  %v7447_v4 = vor.u32 %v8430_v3, %v7446_v2  ;;  %v6250_v2 = vld [vmem:[%s8735_s30 + $0x1c8] sm:$0xf]  ;;  %v8130_v3 = vld [vmem:[%s8735_s30 + $0x1e0] sm:$0xf0] }
  0x54   : > { %8585 = vmatpush.bf16.msra.mxu3 %v8676_v7  ;;  %v6111_v7 = vor.u32 %v8095_v6, %v6110_v5  ;;  %v8126_v5 = vld [vmem:[%s8735_s30 + $0x1c4] sm:$0xf]  ;;  %v6244_v6 = vld [vmem:[%s8735_s30 + $0x1dc] sm:$0xf0] }
  0x58   : > { %8586 = vmatpush.bf16.msra.mxu3 %v8691_v10  ;;  %v8101_v10 = vld [vmem:[%s8735_s30 + $0xf8] sm:$0xf0] }
  0x5b   : > { %3542 = vmatmul.bf16.gmra.mxu0 %v6103_v9  ;;  %3782 = vmatmul.bf16.gmra.mxu3 %v7447_v4  ;;  %v7587_v9 = vor.u32 %v8465_v0, %v7586_v63 }
  0x5c   : > { %8587 = vmatpush.bf16.msra.mxu3 %v8708_v13  ;;  %4200 = vmatmul.bf16.gmra.mxu2 %v6111_v7  ;;  %v6131_v13 = vor.u32 %v8101_v10, %v6130_v12  ;;  %v6251_v7 = vor.u32 %v8130_v3, %v6250_v2 }
  0x5d   : > { %3871 = vmatmul.bf16.gmra.mxu1 %v6107_v11  ;;  %v6247_v11 = vor.u32 %v8126_v5, %v6244_v6 }
  0x60   : > { %8588 = vmatpush.bf16.msra.mxu3 %v8724_v16  ;;  %v6139_v16 = vor.u32 %v8102_v18, %v6138_v17 }
  0x64   : > { %8589 = vmatpush.bf16.msra.mxu3 %v8741_v19  ;;  %v6135_v19 = vor.u32 %v8098_v20, %v6132_v21 }
  0x68   : > { %8590 = vmatpush.bf16.msra.mxu3 %v8752_v22  ;;  %v8564_v22 = vld [vmem:[%s10793_s1 + $0x170] sm:$0xff] }
  0x69   : > { %5165 = vmatpush.bf16.msrb.mxu1 %v8564_v22  ;;  %v8472_v22 = vld [vmem:[%s8735_s30 + $0xc90] sm:$0xf0] }
  0x6a   : > { %v7615_v32 = vor.u32 %v8472_v22, %v7614_v24 }
  0x6b   : > { %3547 = vmatmul.bf16.gmra.mxu0 %v6131_v13  ;;  %3787 = vmatmul.bf16.gmra.mxu3 %v7475_v23 }
  0x6c   : > { %4205 = vmatmul.bf16.gmra.mxu2 %v6139_v16  ;;  %v6270_v16 = vld [vmem:[%s8735_s30 + $0x1f8] sm:$0xf] }
  0x6d   : > { %3876 = vmatmul.bf16.gmra.mxu1 %v6135_v19  ;;  %v8136_v19 = vld [vmem:[%s8735_s30 + $0x210] sm:$0xf0] }
  0x6e   : > { %v6271_v31 = vor.u32 %v8136_v19, %v6270_v16  ;;  %v6328_v16 = vld [vmem:[%s8735_s30 + $0x284] sm:$0xf0] }
  0x7b   : > { %3552 = vmatmul.bf16.gmra.mxu0 %v6159_v33  ;;  %3792 = vmatmul.bf16.gmra.mxu3 %v7503_v34 }
  0x7c   : > { %4210 = vmatmul.bf16.gmra.mxu2 %v6167_v35  ;;  %v6279_v35 = vor.u32 %v8137_v26, %v6278_v25 }
  0x7d   : > { %3881 = vmatmul.bf16.gmra.mxu1 %v6163_v36  ;;  %v6275_v36 = vor.u32 %v8133_v27, %v6272_v28 }
  0x8b   : > { %3557 = vmatmul.bf16.gmra.mxu0 %v6187_v45  ;;  %3797 = vmatmul.bf16.gmra.mxu3 %v7531_v46 }
  0x8c   : > { %4215 = vmatmul.bf16.gmra.mxu2 %v6195_v47  ;;  %v6298_v47 = vld [vmem:[%s8735_s30 + $0x230] sm:$0xf] }
  0x8d   : > { %3886 = vmatmul.bf16.gmra.mxu1 %v6191_v48  ;;  %v8143_v48 = vld [vmem:[%s8735_s30 + $0x248] sm:$0xf0] }
  0x9b   : > { %3562 = vmatmul.bf16.gmra.mxu0 %v6215_v57  ;;  %3802 = vmatmul.bf16.gmra.mxu3 %v7559_v58  ;;  %v6299_v57 = vor.u32 %v8143_v48, %v6298_v47  ;;  %v7643_v58 = vor.u32 %v8479_v50, %v7642_v49  ;;  %v8493_v47 = vld [vmem:[%s8735_s30 + $0xd38] sm:$0xf0]  ;;  %v6362_v48 = vld [vmem:[%s8735_s30 + $0x2a8] sm:$0xf]  ;;  %v8158_v49 = vld [vmem:[%s8735_s30 + $0x2c0] sm:$0xf0] }
  0x9c   : > { %4220 = vmatmul.bf16.gmra.mxu2 %v6223_v59  ;;  %v8154_v50 = vld [vmem:[%s8735_s30 + $0x2a4] sm:$0xf] }
  0x9d   : > { %3891 = vmatmul.bf16.gmra.mxu1 %v6219_v60 }
  0xa8   : > { %v3528_v4 = vpop.f32.mrf.mxu0 }
  0xa9   : > { %v3529_v12 = vadd.f32 %v8862_v1, %v3528_v4 }
  0xaa   : > { %v3857_v10 = vpop.f32.mrf.mxu1 }
  0xab   : > { %v3858_v14 = vadd.f32 %v3857_v10, %v3529_v12  ;;  %3567 = vmatmul.bf16.gmra.mxu0 %v6243_v8  ;;  %3807 = vmatmul.bf16.gmra.mxu3 %v7587_v9  ;;  %v8150_v12 = vld [vmem:[%s8735_s30 + $0x280] sm:$0xf0]  ;;  %v8555_v10 = vld [vmem:[%s10793_s1 + $0x128] sm:$0xff] }
  0xac   : > { %4225 = vmatmul.bf16.gmra.mxu2 %v6251_v7  ;;  %v6326_v7 = vld [vmem:[%s8735_s30 + $0x268] sm:$0xf]  ;;  %4837 = vmatpush.bf16.msrb.mxu0 %v8555_v10  ;;  %v8164_v10 = vld [vmem:[%s8735_s30 + $0x2f0] sm:$0xf0] }
  0xad   : > { %3896 = vmatmul.bf16.gmra.mxu1 %v6247_v11  ;;  %v6327_v22 = vor.u32 %v8150_v12, %v6326_v7  ;;  %v6382_v12 = vld [vmem:[%s8735_s30 + $0x2d8] sm:$0xf] }
  0xae   : > { %v8865_v15 = vpop.f32.mrf.mxu3 }
  0xaf   : > { %v4186_v17 = vpop.f32.mrf.mxu2 }
  0xb0   : > { %v8867_v18 = vadd.f32 %v4186_v17, %v3858_v14  ;;  %v3530_v20 = vpop.f32.mrf.mxu0  ;;  %v8563_v14 = vld [vmem:[%s10793_s1 + $0x168] sm:$0xff] }
  0xb1   : > { %v3531_v21 = vadd.f32 %v8862_v1, %v3530_v20  ;;  %v7670_v17 = vld [vmem:[%s8735_s30 + $0xce8] sm:$0xf]  ;;  %v8486_v20 = vld [vmem:[%s8735_s30 + $0xd00] sm:$0xf0]  ;;  %5166 = vmatpush.bf16.msrb.mxu1 %v8563_v14  ;;  %v7726_v14 = vld [vmem:[%s8735_s30 + $0xd58] sm:$0xf] }
  0xb2   : > { %v3859_v13 = vpop.f32.mrf.mxu1  ;;  %v7671_v25 = vor.u32 %v8486_v20, %v7670_v17  ;;  %v8500_v17 = vld [vmem:[%s8735_s30 + $0xd70] sm:$0xf0]  ;;  %v6390_v20 = vld [vmem:[%s8735_s30 + $0x2e0] sm:$0xf] }
  0xb3   : > { %v3860_v23 = vadd.f32 %v3859_v13, %v3531_v21  ;;  %v6334_v21 = vld [vmem:[%s8735_s30 + $0x270] sm:$0xf]  ;;  %v8151_v13 = vld [vmem:[%s8735_s30 + $0x288] sm:$0xf0] }
  0xb4   : > { %v6335_v28 = vor.u32 %v8151_v13, %v6334_v21  ;;  %v8165_v21 = vld [vmem:[%s8735_s30 + $0x2f8] sm:$0xf0] }
  0xb5   : > { %v8161_v13 = vld [vmem:[%s8735_s30 + $0x2dc] sm:$0xf] }
  0xb6   : > { %v8878_v29 = vpop.f32.mrf.mxu3 }
  0xb7   : > { %v4188_v30 = vpop.f32.mrf.mxu2 }
  0xb8   : > { %v8880_v33 = vadd.f32 %v4188_v30, %v3860_v23  ;;  %v3533_v34 = vpop.f32.mrf.mxu0  ;;  %v8147_v23 = vld [vmem:[%s8735_s30 + $0x26c] sm:$0xf] }
  0xb9   : > { %v3534_v37 = vadd.f32 %v8862_v1, %v3533_v34  ;;  %v6331_v30 = vor.u32 %v8147_v23, %v6328_v16  ;;  %v6384_v23 = vld [vmem:[%s8735_s30 + $0x2f4] sm:$0xf0] }
  0xba   : > { %v3862_v38 = vpop.f32.mrf.mxu1 }
  0xbb   : > { %v3863_v39 = vadd.f32 %v3862_v38, %v3534_v37  ;;  %3572 = vmatmul.bf16.gmra.mxu0 %v6271_v31  ;;  %3812 = vmatmul.bf16.gmra.mxu3 %v7615_v32 }
  0xbc   : > { %4230 = vmatmul.bf16.gmra.mxu2 %v6279_v35 }
  0xbd   : > { %3901 = vmatmul.bf16.gmra.mxu1 %v6275_v36 }
  0xbe   : > { %v8883_v40 = vpop.f32.mrf.mxu3 }
  0xbf   : > { %v4191_v41 = vpop.f32.mrf.mxu2 }
  0xc0   : > { %v8885_v42 = vadd.f32 %v4191_v41, %v3863_v39  ;;  %v3535_v43 = vpop.f32.mrf.mxu0 }
  0xc1   : > { %v3536_v44 = vadd.f32 %v8862_v1, %v3535_v43 }
  0xc2   : > { %v3864_v45 = vpop.f32.mrf.mxu1 }
  0xc3   : > { %v3865_v46 = vadd.f32 %v3864_v45, %v3536_v44  ;;  %v6354_v44 = vld [vmem:[%s8735_s30 + $0x2a0] sm:$0xf]  ;;  %v8157_v45 = vld [vmem:[%s8735_s30 + $0x2b8] sm:$0xf0] }
  0xc4   : > { %v6355_v54 = vor.u32 %v8157_v45, %v6354_v44 }
  0xc6   : > { %v8896_v55 = vpop.f32.mrf.mxu3 }
  0xc7   : > { %v4193_v56 = vpop.f32.mrf.mxu2 }
  0xc8   : > { %v8898_v59 = vadd.f32 %v4193_v56, %v3865_v46  ;;  %v3538_v60 = vpop.f32.mrf.mxu0  ;;  %v7698_v46 = vld [vmem:[%s8735_s30 + $0xd20] sm:$0xf] }
  0xc9   : > { %v3539_v63 = vadd.f32 %v8862_v1, %v3538_v60  ;;  %v7699_v56 = vor.u32 %v8493_v47, %v7698_v46  ;;  %v6363_v60 = vor.u32 %v8158_v49, %v6362_v48  ;;  %v6410_v47 = vld [vmem:[%s8735_s30 + $0x310] sm:$0xf]  ;;  %v8171_v48 = vld [vmem:[%s8735_s30 + $0x328] sm:$0xf0] }
  0xca   : > { %v3867_v0 = vpop.f32.mrf.mxu1  ;;  %v7754_v49 = vld [vmem:[%s8735_s30 + $0xd90] sm:$0xf] }
  0xcb   : > { %v3868_v2 = vadd.f32 %v3867_v0, %v3539_v63  ;;  %3577 = vmatmul.bf16.gmra.mxu0 %v6299_v57  ;;  %3817 = vmatmul.bf16.gmra.mxu3 %v7643_v58 }
  0xcc   : > { %4235 = vmatmul.bf16.gmra.mxu2 %v6307_v61  ;;  %v6359_v61 = vor.u32 %v8154_v50, %v6356_v51  ;;  %v8507_v50 = vld [vmem:[%s8735_s30 + $0xda8] sm:$0xf0]  ;;  %v6418_v51 = vld [vmem:[%s8735_s30 + $0x318] sm:$0xf] }
  0xcd   : > { %3906 = vmatmul.bf16.gmra.mxu1 %v6303_v62 }
  0xce   : > { %v8901_v3 = vpop.f32.mrf.mxu3 }
  0xcf   : > { %v4196_v5 = vpop.f32.mrf.mxu2 }
  0xd0   : > { %v8903_v6 = vadd.f32 %v4196_v5, %v3868_v2  ;;  %v3540_v8 = vpop.f32.mrf.mxu0 }
  0xd1   : > { %v3541_v9 = vadd.f32 %v8862_v1, %v3540_v8 }
  0xd2   : > { %v3869_v4 = vpop.f32.mrf.mxu1 }
  0xd3   : > { %v3870_v11 = vadd.f32 %v3869_v4, %v3541_v9 }
  0xd6   : > { %v8920_v19 = vpop.f32.mrf.mxu3 }
  0xd7   : > { %v4198_v24 = vpop.f32.mrf.mxu2 }
  0xd8   : > { %v8922_v26 = vadd.f32 %v4198_v24, %v3870_v11  ;;  %v3543_v27 = vpop.f32.mrf.mxu0 }
  0xd9   : > { %v3544_v31 = vadd.f32 %v8862_v1, %v3543_v27 }
  0xda   : > { %v3872_v32 = vpop.f32.mrf.mxu1 }
  0xdb   : > { %v3873_v34 = vadd.f32 %v3872_v32, %v3544_v31  ;;  %3582 = vmatmul.bf16.gmra.mxu0 %v6327_v22  ;;  %3822 = vmatmul.bf16.gmra.mxu3 %v7671_v25  ;;  %v6383_v22 = vor.u32 %v8164_v10, %v6382_v12  ;;  %v7727_v25 = vor.u32 %v8500_v17, %v7726_v14 }
  0xdc   : > { %4240 = vmatmul.bf16.gmra.mxu2 %v6335_v28  ;;  %v6387_v31 = vor.u32 %v8161_v13, %v6384_v23  ;;  %v6438_v23 = vld [vmem:[%s8735_s30 + $0x348] sm:$0xf] }
  0xdd   : > { %3911 = vmatmul.bf16.gmra.mxu1 %v6331_v30  ;;  %v6391_v30 = vor.u32 %v8165_v21, %v6390_v20 }
  0xde   : > { %v8925_v35 = vpop.f32.mrf.mxu3 }
  0xdf   : > { %v4201_v36 = vpop.f32.mrf.mxu2 }
  0xe0   : > { %v8927_v37 = vadd.f32 %v4201_v36, %v3873_v34  ;;  %v3545_v38 = vpop.f32.mrf.mxu0 }
  0xe1   : > { %v3546_v39 = vadd.f32 %v8862_v1, %v3545_v38 }
  0xe2   : > { %v3874_v41 = vpop.f32.mrf.mxu1 }
  0xe3   : > { %v3875_v43 = vadd.f32 %v3874_v41, %v3546_v39 }
  0xe6   : > { %v8938_v52 = vpop.f32.mrf.mxu3 }
  0xe7   : > { %v4203_v53 = vpop.f32.mrf.mxu2 }
  0xe8   : > { %v8940_v57 = vadd.f32 %v4203_v53, %v3875_v43  ;;  %v3548_v58 = vpop.f32.mrf.mxu0  ;;  %v8172_v53 = vld [vmem:[%s8735_s30 + $0x330] sm:$0xf0] }
  0xe9   : > { %v3549_v62 = vadd.f32 %v8862_v1, %v3548_v58 }
  0xea   : > { %v3877_v63 = vpop.f32.mrf.mxu1 }
  0xeb   : > { %v3878_v0 = vadd.f32 %v3877_v63, %v3549_v62  ;;  %3587 = vmatmul.bf16.gmra.mxu0 %v6355_v54  ;;  %3827 = vmatmul.bf16.gmra.mxu3 %v7699_v56  ;;  %v8168_v54 = vld [vmem:[%s8735_s30 + $0x314] sm:$0xf]  ;;  %v6412_v56 = vld [vmem:[%s8735_s30 + $0x32c] sm:$0xf0]  ;;  %v7755_v62 = vor.u32 %v8507_v50, %v7754_v49 }
  0xec   : > { %4245 = vmatmul.bf16.gmra.mxu2 %v6363_v60 }
  0xed   : > { %3916 = vmatmul.bf16.gmra.mxu1 %v6359_v61  ;;  %v6411_v61 = vor.u32 %v8171_v48, %v6410_v47 }
  0xee   : > { %v8943_v2 = vpop.f32.mrf.mxu3 }
  0xef   : > { %v4206_v5 = vpop.f32.mrf.mxu2 }
  0xf0   : > { %v8945_v8 = vadd.f32 %v4206_v5, %v3878_v0  ;;  %v3550_v9 = vpop.f32.mrf.mxu0  ;;  %v6419_v5 = vor.u32 %v8172_v53, %v6418_v51 }
  0xf1   : > { %v3551_v4 = vadd.f32 %v8862_v1, %v3550_v9  ;;  %v6415_v9 = vor.u32 %v8168_v54, %v6412_v56 }
  0xf2   : > { %10796 = vst [vmem:[#allocation2_spill] sm:$0xff] %v8945_v8  ;;  %v3879_v7 = vpop.f32.mrf.mxu1 }
  0xf3   : > { %v3880_v11 = vadd.f32 %v3879_v7, %v3551_v4 }
  0xf6   : > { %v8956_v16 = vpop.f32.mrf.mxu3 }
  0xf7   : > { %v4208_v24 = vpop.f32.mrf.mxu2 }
  0xf8   : > { %v8958_v27 = vadd.f32 %v4208_v24, %v3880_v11  ;;  %v3553_v28 = vpop.f32.mrf.mxu0  ;;  %v8178_v24 = vld [vmem:[%s8735_s30 + $0x360] sm:$0xf0] }
  0xf9   : > { %v3554_v32 = vadd.f32 %v8862_v1, %v3553_v28  ;;  %v6446_v28 = vld [vmem:[%s8735_s30 + $0x350] sm:$0xf] }
  0xfa   : > { %10797 = vst [vmem:[#allocation3_spill] sm:$0xff] %v8958_v27  ;;  %v3882_v34 = vpop.f32.mrf.mxu1 }
  0xfb   : > { %v3883_v36 = vadd.f32 %v3882_v34, %v3554_v32  ;;  %3592 = vmatmul.bf16.gmra.mxu0 %v6383_v22  ;;  %3832 = vmatmul.bf16.gmra.mxu3 %v7727_v25  ;;  %v7782_v22 = vld [vmem:[%s8735_s30 + $0xdc8] sm:$0xf]  ;;  %v8514_v25 = vld [vmem:[%s8735_s30 + $0xde0] sm:$0xf0] }
  0xfc   : > { %4250 = vmatmul.bf16.gmra.mxu2 %v6391_v30  ;;  %v8179_v30 = vld [vmem:[%s8735_s30 + $0x368] sm:$0xf0]  ;;  %v6440_v32 = vld [vmem:[%s8735_s30 + $0x364] sm:$0xf0] }
  0xfd   : > { %3921 = vmatmul.bf16.gmra.mxu1 %v6387_v31  ;;  %v8175_v31 = vld [vmem:[%s8735_s30 + $0x34c] sm:$0xf] }
  0xfe   : > { %v8961_v38 = vpop.f32.mrf.mxu3  ;;  %v6443_v47 = vor.u32 %v8175_v31, %v6440_v32 }
  0xff   : > { %v4211_v39 = vpop.f32.mrf.mxu2 }
 0x100   : > { %v8963_v41 = vadd.f32 %v4211_v39, %v3883_v36  ;;  %v3555_v43 = vpop.f32.mrf.mxu0  ;;  %v6439_v39 = vor.u32 %v8178_v24, %v6438_v23 }
 0x101   : > { %v3556_v44 = vadd.f32 %v8862_v1, %v3555_v43  ;;  %v7783_v43 = vor.u32 %v8514_v25, %v7782_v22 }
 0x102   : > { %10798 = vst [vmem:[#allocation4_spill] sm:$0xff] %v8963_v41  ;;  %v3884_v45 = vpop.f32.mrf.mxu1 }
 0x103   : > { %v3885_v46 = vadd.f32 %v3884_v45, %v3556_v44 }
 0x106   : > { %v8974_v58 = vpop.f32.mrf.mxu3 }
 0x107   : > { %v4213_v60 = vpop.f32.mrf.mxu2 }
 0x108   : > { %v8976_v63 = vadd.f32 %v4213_v60, %v3885_v46  ;;  %v3558_v0 = vpop.f32.mrf.mxu0  ;;  %v6447_v46 = vor.u32 %v8179_v30, %v6446_v28 }
 0x109   : > { %v3559_v4 = vadd.f32 %v8862_v1, %v3558_v0  ;;  %v6466_v0 = vld [vmem:[%s8735_s30 + $0x380] sm:$0xf] }
 0x10a   : > { %10799 = vst [vmem:[#allocation5_spill] sm:$0xff] %v8976_v63  ;;  %v3887_v7 = vpop.f32.mrf.mxu1 }
 0x10b   : > { %v3888_v11 = vadd.f32 %v3887_v7, %v3559_v4  ;;  %3597 = vmatmul.bf16.gmra.mxu0 %v6411_v61  ;;  %3837 = vmatmul.bf16.gmra.mxu3 %v7755_v62  ;;  %v7364_v4 = vld [vmem:[%s8735_s30 + $0xa9c] sm:$0xf0]  ;;  %v6474_v7 = vld [vmem:[%s8735_s30 + $0x388] sm:$0xf] }
 0x10c   : > { %4255 = vmatmul.bf16.gmra.mxu2 %v6419_v5  ;;  %v8185_v5 = vld [vmem:[%s8735_s30 + $0x398] sm:$0xf0] }
 0x10d   : > { %3926 = vmatmul.bf16.gmra.mxu1 %v6415_v9  ;;  %v8406_v9 = vld [vmem:[%s8735_s30 + $0xa84] sm:$0xf] }
 0x10e   : > { %v8979_v12 = vpop.f32.mrf.mxu3  ;;  %v7367_v23 = vor.u32 %v8406_v9, %v7364_v4  ;;  %v6496_v9 = vld [vmem:[%s8735_s30 + $0x3d4] sm:$0xf0] }
 0x10f   : > { %v4216_v10 = vpop.f32.mrf.mxu2 }
 0x110   : > { %v8981_v14 = vadd.f32 %v4216_v10, %v3888_v11  ;;  %v3560_v17 = vpop.f32.mrf.mxu0  ;;  %v8186_v11 = vld [vmem:[%s8735_s30 + $0x3a0] sm:$0xf0] }
 0x111   : > { %v3561_v20 = vadd.f32 %v8862_v1, %v3560_v17  ;;  %v8182_v10 = vld [vmem:[%s8735_s30 + $0x384] sm:$0xf]  ;;  %v6468_v17 = vld [vmem:[%s8735_s30 + $0x39c] sm:$0xf0]  ;;  %v6475_v25 = vor.u32 %v8186_v11, %v6474_v7 }
 0x112   : > { %10800 = vst [vmem:[#allocation6_spill] sm:$0xff] %v8981_v14  ;;  %v3889_v21 = vpop.f32.mrf.mxu1  ;;  %v6471_v28 = vor.u32 %v8182_v10, %v6468_v17 }
 0x113   : > { %v3890_v13 = vadd.f32 %v3889_v21, %v3561_v20 }
 0x116   : > { %v8992_v34 = vpop.f32.mrf.mxu3 }
 0x117   : > { %v4218_v36 = vpop.f32.mrf.mxu2 }
 0x118   : > { %v8994_v44 = vadd.f32 %v4218_v36, %v3890_v13  ;;  %v3563_v45 = vpop.f32.mrf.mxu0  ;;  %v6467_v13 = vor.u32 %v8185_v5, %v6466_v0  ;;  %v8193_v0 = vld [vmem:[%s8735_s30 + $0x3d8] sm:$0xf0] }
 0x119   : > { %v3564_v48 = vadd.f32 %v8862_v1, %v3563_v45  ;;  %v8189_v5 = vld [vmem:[%s8735_s30 + $0x3bc] sm:$0xf] }
 0x11a   : > { %10801 = vst [vmem:[#allocation7_spill] sm:$0xff] %v8994_v44  ;;  %v3892_v49 = vpop.f32.mrf.mxu1 }
 0x11b   : > { %v3893_v50 = vadd.f32 %v3892_v49, %v3564_v48  ;;  %3602 = vmatmul.bf16.gmra.mxu0 %v6439_v39  ;;  %3842 = vmatmul.bf16.gmra.mxu3 %v7783_v43  ;;  %v6494_v48 = vld [vmem:[%s8735_s30 + $0x3b8] sm:$0xf] }
 0x11c   : > { %4260 = vmatmul.bf16.gmra.mxu2 %v6447_v46 }
 0x11d   : > { %3931 = vmatmul.bf16.gmra.mxu1 %v6443_v47 }
 0x11e   : > { %v8997_v51 = vpop.f32.mrf.mxu3 }
 0x11f   : > { %v4221_v53 = vpop.f32.mrf.mxu2 }
 0x120   : > { %v8999_v54 = vadd.f32 %v4221_v53, %v3893_v50  ;;  %v3565_v56 = vpop.f32.mrf.mxu0  ;;  %v8192_v50 = vld [vmem:[%s8735_s30 + $0x3d0] sm:$0xf0]  ;;  %v8554_v53 = vld [vmem:[%s10793_s1 + $0x120] sm:$0xff] }
 0x121   : > { %v3566_v60 = vadd.f32 %v8862_v1, %v3565_v56  ;;  %v8562_v56 = vld [vmem:[%s10793_s1 + $0x160] sm:$0xff]  ;;  %4838 = vmatpush.bf16.msrb.mxu0 %v8554_v53  ;;  %v6495_v11 = vor.u32 %v8192_v50, %v6494_v48  ;;  %v6522_v48 = vld [vmem:[%s8735_s30 + $0x3f0] sm:$0xf]  ;;  %v8420_v50 = vld [vmem:[%s8735_s30 + $0xaf4] sm:$0xf] }
 0x122   : > { %10802 = vst [vmem:[#allocation8_spill] sm:$0xff] %v8999_v54  ;;  %v3894_v61 = vpop.f32.mrf.mxu1  ;;  %5167 = vmatpush.bf16.msrb.mxu1 %v8562_v56  ;;  %v7420_v53 = vld [vmem:[%s8735_s30 + $0xb0c] sm:$0xf0]  ;;  %v6530_v56 = vld [vmem:[%s8735_s30 + $0x3f8] sm:$0xf] }
 0x123   : > { %v3895_v62 = vadd.f32 %v3894_v61, %v3566_v60  ;;  %v8413_v60 = vld [vmem:[%s8735_s30 + $0xabc] sm:$0xf]  ;;  %v7392_v61 = vld [vmem:[%s8735_s30 + $0xad4] sm:$0xf0] }
 0x124   : > { %v7395_v10 = vor.u32 %v8413_v60, %v7392_v61  ;;  %v8200_v60 = vld [vmem:[%s8735_s30 + $0x410] sm:$0xf0] }
 0x125   : > { %v8196_v61 = vld [vmem:[%s8735_s30 + $0x3f4] sm:$0xf] }
 0x126   : > { %v9010_v20 = vpop.f32.mrf.mxu3 }
 0x127   : > { %v4223_v21 = vpop.f32.mrf.mxu2 }
 0x128   : > { %v9012_v24 = vadd.f32 %v4223_v21, %v3895_v62  ;;  %v3568_v22 = vpop.f32.mrf.mxu0  ;;  %v6502_v62 = vld [vmem:[%s8735_s30 + $0x3c0] sm:$0xf] }
 0x129   : > { %v3569_v30 = vadd.f32 %v8862_v1, %v3568_v22 }
 0x12a   : > { %10803 = vst [vmem:[#allocation9_spill] sm:$0xff] %v9012_v24  ;;  %v3897_v31 = vpop.f32.mrf.mxu1 }
 0x12b   : > { %v3898_v32 = vadd.f32 %v3897_v31, %v3569_v30  ;;  %3607 = vmatmul.bf16.gmra.mxu0 %v6467_v13  ;;  %4096 = vmatmul.bf16.vlgmr.msrb.gmra.mxu3 %v7367_v23  ;;  %v6503_v13 = vor.u32 %v8193_v0, %v6502_v62  ;;  %v6499_v23 = vor.u32 %v8189_v5, %v6496_v9  ;;  %v6524_v62 = vld [vmem:[%s8735_s30 + $0x40c] sm:$0xf0] }
 0x12c   : > { %4265 = vmatmul.bf16.gmra.mxu2 %v6475_v25 }
 0x12d   : > { %3936 = vmatmul.bf16.gmra.mxu1 %v6471_v28 }
 0x12e   : > { %v9015_v36 = vpop.f32.mrf.mxu3 }
 0x12f   : > { %v4226_v39 = vpop.f32.mrf.mxu2 }
 0x130   : > { %v9017_v43 = vadd.f32 %v4226_v39, %v3898_v32  ;;  %v3570_v45 = vpop.f32.mrf.mxu0 }
 0x131   : > { %v3571_v46 = vadd.f32 %v8862_v1, %v3570_v45 }
 0x132   : > { %10804 = vst [vmem:[#allocation10_spill] sm:$0xff] %v9017_v43  ;;  %v3899_v47 = vpop.f32.mrf.mxu1 }
 0x133   : > { %v3900_v49 = vadd.f32 %v3899_v47, %v3571_v46 }
 0x136   : > { %v9034_v4 = vpop.f32.mrf.mxu3 }
 0x137   : > { %v4228_v7 = vpop.f32.mrf.mxu2 }
 0x138   : > { %v9036_v17 = vadd.f32 %v4228_v7, %v3900_v49  ;;  %v3573_v21 = vpop.f32.mrf.mxu0  ;;  %v8199_v49 = vld [vmem:[%s8735_s30 + $0x408] sm:$0xf0]  ;;  %v7423_v7 = vor.u32 %v8420_v50, %v7420_v53  ;;  %v8206_v50 = vld [vmem:[%s8735_s30 + $0x440] sm:$0xf0] }
 0x139   : > { %v3574_v22 = vadd.f32 %v8862_v1, %v3573_v21  ;;  %v6523_v9 = vor.u32 %v8199_v49, %v6522_v48  ;;  %v6531_v21 = vor.u32 %v8200_v60, %v6530_v56  ;;  %v6550_v49 = vld [vmem:[%s8735_s30 + $0x428] sm:$0xf]  ;;  %v8427_v53 = vld [vmem:[%s8735_s30 + $0xb2c] sm:$0xf]  ;;  %v6558_v60 = vld [vmem:[%s8735_s30 + $0x430] sm:$0xf] }
 0x13a   : > { %10805 = vst [vmem:[#allocation11_spill] sm:$0xff] %v9036_v17  ;;  %v3902_v25 = vpop.f32.mrf.mxu1  ;;  %v7448_v56 = vld [vmem:[%s8735_s30 + $0xb44] sm:$0xf0] }
 0x13b   : > { %v3903_v28 = vadd.f32 %v3902_v25, %v3574_v22  ;;  %3612 = vmatmul.bf16.gmra.mxu0 %v6495_v11  ;;  %4101 = vmatmul.bf16.gmra.mxu3 %v7395_v10 }
 0x13c   : > { %4270 = vmatmul.bf16.gmra.mxu2 %v6503_v13  ;;  %v6527_v13 = vor.u32 %v8196_v61, %v6524_v62  ;;  %v8207_v61 = vld [vmem:[%s8735_s30 + $0x448] sm:$0xf0] }
 0x13d   : > { %3941 = vmatmul.bf16.gmra.mxu1 %v6499_v23  ;;  %v8203_v62 = vld [vmem:[%s8735_s30 + $0x42c] sm:$0xf] }
 0x13e   : > { %v9039_v30 = vpop.f32.mrf.mxu3 }
 0x13f   : > { %v4231_v31 = vpop.f32.mrf.mxu2 }
 0x140   : > { %v9041_v32 = vadd.f32 %v4231_v31, %v3903_v28  ;;  %v3575_v39 = vpop.f32.mrf.mxu0 }
 0x141   : > { %v3576_v45 = vadd.f32 %v8862_v1, %v3575_v39 }
 0x142   : > { %10806 = vst [vmem:[#allocation12_spill] sm:$0xff] %v9041_v32  ;;  %v3904_v46 = vpop.f32.mrf.mxu1 }
 0x143   : > { %v3905_v47 = vadd.f32 %v3904_v46, %v3576_v45 }
 0x146   : > { %v9052_v0 = vpop.f32.mrf.mxu3 }
 0x147   : > { %v4233_v5 = vpop.f32.mrf.mxu2 }
 0x148   : > { %v9054_v11 = vadd.f32 %v4233_v5, %v3905_v47  ;;  %v3578_v10 = vpop.f32.mrf.mxu0  ;;  %v6552_v5 = vld [vmem:[%s8735_s30 + $0x444] sm:$0xf0] }
 0x149   : > { %v3579_v23 = vadd.f32 %v8862_v1, %v3578_v10  ;;  %v6551_v10 = vor.u32 %v8206_v50, %v6550_v49 }
 0x14a   : > { %10807 = vst [vmem:[#allocation13_spill] sm:$0xff] %v9054_v11  ;;  %v3907_v22 = vpop.f32.mrf.mxu1 }
 0x14b   : > { %v3908_v25 = vadd.f32 %v3907_v22, %v3579_v23  ;;  %3617 = vmatmul.bf16.gmra.mxu0 %v6523_v9  ;;  %4106 = vmatmul.bf16.gmra.mxu3 %v7423_v7  ;;  %v6559_v22 = vor.u32 %v8207_v61, %v6558_v60  ;;  %v6578_v61 = vld [vmem:[%s8735_s30 + $0x460] sm:$0xf] }
 0x14c   : > { %4275 = vmatmul.bf16.gmra.mxu2 %v6531_v21  ;;  %v7451_v21 = vor.u32 %v8427_v53, %v7448_v56 }
 0x14d   : > { %3946 = vmatmul.bf16.gmra.mxu1 %v6527_v13 }
 0x14e   : > { %v9057_v28 = vpop.f32.mrf.mxu3 }
 0x14f   : > { %v4236_v31 = vpop.f32.mrf.mxu2 }
 0x150   : > { %v9059_v39 = vadd.f32 %v4236_v31, %v3908_v25  ;;  %v3580_v45 = vpop.f32.mrf.mxu0  ;;  %v6555_v25 = vor.u32 %v8203_v62, %v6552_v5  ;;  %v8213_v62 = vld [vmem:[%s8735_s30 + $0x478] sm:$0xf0]  ;;  %v8434_v5 = vld [vmem:[%s8735_s30 + $0xb64] sm:$0xf] }
 0x151   : > { %v3581_v46 = vadd.f32 %v8862_v1, %v3580_v45 }
 0x152   : > { %10808 = vst [vmem:[#allocation14_spill] sm:$0xff] %v9059_v39  ;;  %v3909_v47 = vpop.f32.mrf.mxu1 }
 0x153   : > { %v3910_v48 = vadd.f32 %v3909_v47, %v3581_v46 }
 0x156   : > { %v9070_v9 = vpop.f32.mrf.mxu3 }
 0x157   : > { %v4238_v7 = vpop.f32.mrf.mxu2 }
 0x158   : > { %v9072_v13 = vadd.f32 %v4238_v7, %v3910_v48  ;;  %v3583_v23 = vpop.f32.mrf.mxu0  ;;  %v7476_v7 = vld [vmem:[%s8735_s30 + $0xb7c] sm:$0xf0] }
 0x159   : > { %v3584_v31 = vadd.f32 %v8862_v1, %v3583_v23  ;;  %v8210_v23 = vld [vmem:[%s8735_s30 + $0x464] sm:$0xf] }
 0x15a   : > { %10809 = vst [vmem:[#allocation15_spill] sm:$0xff] %v9072_v13  ;;  %v3912_v45 = vpop.f32.mrf.mxu1  ;;  %v7479_v13 = vor.u32 %v8434_v5, %v7476_v7 }
 0x15b   : > { %v3913_v46 = vadd.f32 %v3912_v45, %v3584_v31  ;;  %3622 = vmatmul.bf16.gmra.mxu0 %v6551_v10  ;;  %4111 = vmatmul.bf16.gmra.mxu3 %v7451_v21  ;;  %v6586_v10 = vld [vmem:[%s8735_s30 + $0x468] sm:$0xf]  ;;  %v8214_v21 = vld [vmem:[%s8735_s30 + $0x480] sm:$0xf0]  ;;  %v6579_v45 = vor.u32 %v8213_v62, %v6578_v61 }
 0x15c   : > { %4280 = vmatmul.bf16.gmra.mxu2 %v6559_v22  ;;  %v6580_v22 = vld [vmem:[%s8735_s30 + $0x47c] sm:$0xf0] }
 0x15d   : > { %3951 = vmatmul.bf16.gmra.mxu1 %v6555_v25 }
 0x15e   : > { %v9075_v47 = vpop.f32.mrf.mxu3 }
 0x15f   : > { %v4241_v48 = vpop.f32.mrf.mxu2 }
 0x160   : > { %v9077_v49 = vadd.f32 %v4241_v48, %v3913_v46  ;;  %v3585_v50 = vpop.f32.mrf.mxu0 }
 0x161   : > { %v3586_v53 = vadd.f32 %v8862_v1, %v3585_v50  ;;  %v6583_v50 = vor.u32 %v8210_v23, %v6580_v22  ;;  %v6606_v23 = vld [vmem:[%s8735_s30 + $0x498] sm:$0xf]  ;;  %v8220_v22 = vld [vmem:[%s8735_s30 + $0x4b0] sm:$0xf0] }
 0x162   : > { %10810 = vst [vmem:[#allocation16_spill] sm:$0xff] %v9077_v49  ;;  %v3914_v56 = vpop.f32.mrf.mxu1  ;;  %v6587_v49 = vor.u32 %v8214_v21, %v6586_v10 }
 0x163   : > { %v3915_v60 = vadd.f32 %v3914_v56, %v3586_v53 }
 0x166   : > { %v9088_v31 = vpop.f32.mrf.mxu3 }
 0x167   : > { %v4243_v25 = vpop.f32.mrf.mxu2 }
 0x168   : > { %v9090_v46 = vadd.f32 %v4243_v25, %v3915_v60  ;;  %v3588_v48 = vpop.f32.mrf.mxu0  ;;  %v8441_v25 = vld [vmem:[%s8735_s30 + $0xb9c] sm:$0xf] }
 0x169   : > { %v3589_v53 = vadd.f32 %v8862_v1, %v3588_v48  ;;  %v6614_v48 = vld [vmem:[%s8735_s30 + $0x4a0] sm:$0xf] }
 0x16a   : > { %10811 = vst [vmem:[#allocation17_spill] sm:$0xff] %v9090_v46  ;;  %v3917_v56 = vpop.f32.mrf.mxu1  ;;  %v6607_v46 = vor.u32 %v8220_v22, %v6606_v23 }
 0x16b   : > { %v3918_v39 = vadd.f32 %v3917_v56, %v3589_v53  ;;  %3627 = vmatmul.bf16.gmra.mxu0 %v6579_v45  ;;  %4116 = vmatmul.bf16.gmra.mxu3 %v7479_v13  ;;  %v7504_v45 = vld [vmem:[%s8735_s30 + $0xbb4] sm:$0xf0]  ;;  %v8221_v13 = vld [vmem:[%s8735_s30 + $0x4b8] sm:$0xf0] }
 0x16c   : > { %4285 = vmatmul.bf16.gmra.mxu2 %v6587_v49  ;;  %v8217_v53 = vld [vmem:[%s8735_s30 + $0x49c] sm:$0xf]  ;;  %v6608_v49 = vld [vmem:[%s8735_s30 + $0x4b4] sm:$0xf0]  ;;  %v7507_v11 = vor.u32 %v8441_v25, %v7504_v45 }
 0x16d   : > { %3956 = vmatmul.bf16.gmra.mxu1 %v6583_v50 }
 0x16e   : > { %v9093_v60 = vpop.f32.mrf.mxu3 }
 0x16f   : > { %v4246_v61 = vpop.f32.mrf.mxu2 }
 0x170   : > { %v9095_v62 = vadd.f32 %v4246_v61, %v3918_v39  ;;  %v3590_v5 = vpop.f32.mrf.mxu0 }
 0x171   : > { %v3591_v7 = vadd.f32 %v8862_v1, %v3590_v5  ;;  %v6611_v5 = vor.u32 %v8217_v53, %v6608_v49  ;;  %v6634_v53 = vld [vmem:[%s8735_s30 + $0x4d0] sm:$0xf]  ;;  %v8227_v49 = vld [vmem:[%s8735_s30 + $0x4e8] sm:$0xf0] }
 0x172   : > { %10812 = vst [vmem:[#allocation18_spill] sm:$0xff] %v9095_v62  ;;  %v3919_v10 = vpop.f32.mrf.mxu1  ;;  %v6615_v62 = vor.u32 %v8221_v13, %v6614_v48 }
 0x173   : > { %v3920_v21 = vadd.f32 %v3919_v10, %v3591_v7 }
 0x176   : > { %v9106_v56 = vpop.f32.mrf.mxu3 }
 0x177   : > { %v4248_v50 = vpop.f32.mrf.mxu2 }
 0x178   : > { %v9108_v39 = vadd.f32 %v4248_v50, %v3920_v21  ;;  %v3593_v61 = vpop.f32.mrf.mxu0  ;;  %v8448_v50 = vld [vmem:[%s8735_s30 + $0xbd4] sm:$0xf] }
 0x179   : > { %v3594_v7 = vadd.f32 %v8862_v1, %v3593_v61  ;;  %v6642_v61 = vld [vmem:[%s8735_s30 + $0x4d8] sm:$0xf] }
 0x17a   : > { %10813 = vst [vmem:[#allocation19_spill] sm:$0xff] %v9108_v39  ;;  %v3922_v10 = vpop.f32.mrf.mxu1  ;;  %v6635_v39 = vor.u32 %v8227_v49, %v6634_v53 }
 0x17b   : > { %v3923_v32 = vadd.f32 %v3922_v10, %v3594_v7  ;;  %3632 = vmatmul.bf16.gmra.mxu0 %v6607_v46  ;;  %4121 = vmatmul.bf16.gmra.mxu3 %v7507_v11  ;;  %v7532_v46 = vld [vmem:[%s8735_s30 + $0xbec] sm:$0xf0]  ;;  %v8228_v11 = vld [vmem:[%s8735_s30 + $0x4f0] sm:$0xf0] }
 0x17c   : > { %4290 = vmatmul.bf16.gmra.mxu2 %v6615_v62  ;;  %v8224_v7 = vld [vmem:[%s8735_s30 + $0x4d4] sm:$0xf]  ;;  %v6636_v62 = vld [vmem:[%s8735_s30 + $0x4ec] sm:$0xf0]  ;;  %v7535_v17 = vor.u32 %v8448_v50, %v7532_v46 }
 0x17d   : > { %3961 = vmatmul.bf16.gmra.mxu1 %v6611_v5 }
 0x17e   : > { %v9111_v21 = vpop.f32.mrf.mxu3 }
 0x17f   : > { %v4251_v23 = vpop.f32.mrf.mxu2 }
 0x180   : > { %v9113_v22 = vadd.f32 %v4251_v23, %v3923_v32  ;;  %v3595_v25 = vpop.f32.mrf.mxu0 }
 0x181   : > { %v3596_v45 = vadd.f32 %v8862_v1, %v3595_v25  ;;  %v6643_v25 = vor.u32 %v8228_v11, %v6642_v61  ;;  %v6662_v11 = vld [vmem:[%s8735_s30 + $0x508] sm:$0xf] }
 0x182   : > { %10814 = vst [vmem:[#allocation20_spill] sm:$0xff] %v9113_v22  ;;  %v3924_v48 = vpop.f32.mrf.mxu1  ;;  %v6639_v22 = vor.u32 %v8224_v7, %v6636_v62  ;;  %v8455_v62 = vld [vmem:[%s8735_s30 + $0xc0c] sm:$0xf] }
 0x183   : > { %v3925_v13 = vadd.f32 %v3924_v48, %v3596_v45 }
 0x186   : > { %v9124_v10 = vpop.f32.mrf.mxu3 }
 0x187   : > { %v4253_v5 = vpop.f32.mrf.mxu2 }
 0x188   : > { %v9126_v32 = vadd.f32 %v4253_v5, %v3925_v13  ;;  %v3598_v23 = vpop.f32.mrf.mxu0  ;;  %v7560_v5 = vld [vmem:[%s8735_s30 + $0xc24] sm:$0xf0] }
 0x189   : > { %v3599_v45 = vadd.f32 %v8862_v1, %v3598_v23  ;;  %v6670_v23 = vld [vmem:[%s8735_s30 + $0x510] sm:$0xf] }
 0x18a   : > { %10815 = vst [vmem:[#allocation21_spill] sm:$0xff] %v9126_v32  ;;  %v3927_v48 = vpop.f32.mrf.mxu1 }
 0x18b   : > { %v3928_v43 = vadd.f32 %v3927_v48, %v3599_v45  ;;  %3637 = vmatmul.bf16.gmra.mxu0 %v6635_v39  ;;  %4126 = vmatmul.bf16.gmra.mxu3 %v7535_v17  ;;  %v8234_v39 = vld [vmem:[%s8735_s30 + $0x520] sm:$0xf0]  ;;  %v8553_v17 = vld [vmem:[%s10793_s1 + $0x118] sm:$0xff]  ;;  %v6664_v45 = vld [vmem:[%s8735_s30 + $0x524] sm:$0xf0] }
 0x18c   : > { %4295 = vmatmul.bf16.gmra.mxu2 %v6643_v25  ;;  %v8231_v25 = vld [vmem:[%s8735_s30 + $0x50c] sm:$0xf]  ;;  %4839 = vmatpush.bf16.msrb.mxu0 %v8553_v17 }
 0x18d   : > { %3966 = vmatmul.bf16.gmra.mxu1 %v6639_v22  ;;  %v8561_v22 = vld [vmem:[%s10793_s1 + $0x158] sm:$0xff]  ;;  %v6667_v24 = vor.u32 %v8231_v25, %v6664_v45  ;;  %v8242_v25 = vld [vmem:[%s8735_s30 + $0x560] sm:$0xf0] }
 0x18e   : > { %v9129_v13 = vpop.f32.mrf.mxu3  ;;  %5168 = vmatpush.bf16.msrb.mxu1 %v8561_v22  ;;  %v8238_v45 = vld [vmem:[%s8735_s30 + $0x544] sm:$0xf] }
 0x18f   : > { %v4256_v53 = vpop.f32.mrf.mxu2 }
 0x190   : > { %v9131_v49 = vadd.f32 %v4256_v53, %v3928_v43  ;;  %v3600_v50 = vpop.f32.mrf.mxu0  ;;  %v8235_v43 = vld [vmem:[%s8735_s30 + $0x528] sm:$0xf0] }
 0x191   : > { %v3601_v46 = vadd.f32 %v8862_v1, %v3600_v50  ;;  %v6663_v50 = vor.u32 %v8234_v39, %v6662_v11  ;;  %v6671_v32 = vor.u32 %v8235_v43, %v6670_v23  ;;  %v7588_v23 = vld [vmem:[%s8735_s30 + $0xc5c] sm:$0xf0]  ;;  %v6698_v43 = vld [vmem:[%s8735_s30 + $0x548] sm:$0xf] }
 0x192   : > { %10816 = vst [vmem:[#allocation22_spill] sm:$0xff] %v9131_v49  ;;  %v3929_v61 = vpop.f32.mrf.mxu1 }
 0x193   : > { %v3930_v7 = vadd.f32 %v3929_v61, %v3601_v46  ;;  %v7563_v46 = vor.u32 %v8455_v62, %v7560_v5  ;;  %v6690_v5 = vld [vmem:[%s8735_s30 + $0x540] sm:$0xf] }
 0x196   : > { %v9148_v48 = vpop.f32.mrf.mxu3 }
 0x197   : > { %v4258_v53 = vpop.f32.mrf.mxu2 }
 0x198   : > { %v9150_v61 = vadd.f32 %v4258_v53, %v3930_v7  ;;  %v3603_v49 = vpop.f32.mrf.mxu0 }
 0x199   : > { %v3604_v54 = vadd.f32 %v8862_v1, %v3603_v49 }
 0x19a   : > { %10817 = vst [vmem:[#allocation23_spill] sm:$0xff] %v9150_v61  ;;  %v3932_v44 = vpop.f32.mrf.mxu1 }
 0x19b   : > { %v3933_v14 = vadd.f32 %v3932_v44, %v3604_v54  ;;  %3642 = vmatmul.bf16.gmra.mxu0 %v6663_v50  ;;  %4131 = vmatmul.bf16.gmra.mxu3 %v7563_v46  ;;  %v8241_v44 = vld [vmem:[%s8735_s30 + $0x558] sm:$0xf0]  ;;  %v8462_v54 = vld [vmem:[%s8735_s30 + $0xc44] sm:$0xf] }
 0x19c   : > { %4300 = vmatmul.bf16.gmra.mxu2 %v6671_v32  ;;  %v6692_v32 = vld [vmem:[%s8735_s30 + $0x55c] sm:$0xf0]  ;;  %v6691_v50 = vor.u32 %v8241_v44, %v6690_v5  ;;  %v7591_v46 = vor.u32 %v8462_v54, %v7588_v23 }
 0x19d   : > { %3971 = vmatmul.bf16.gmra.mxu1 %v6667_v24 }
 0x19e   : > { %v9153_v11 = vpop.f32.mrf.mxu3 }
 0x19f   : > { %v4261_v7 = vpop.f32.mrf.mxu2 }
 0x1a0   : > { %v9155_v39 = vadd.f32 %v4261_v7, %v3933_v14  ;;  %v3605_v17 = vpop.f32.mrf.mxu0 }
 0x1a1   : > { %v3606_v49 = vadd.f32 %v8862_v1, %v3605_v17  ;;  %v6695_v17 = vor.u32 %v8238_v45, %v6692_v32 }
 0x1a2   : > { %10818 = vst [vmem:[#allocation24_spill] sm:$0xff] %v9155_v39  ;;  %v3934_v22 = vpop.f32.mrf.mxu1  ;;  %v6699_v39 = vor.u32 %v8242_v25, %v6698_v43 }
 0x1a3   : > { %v3935_v62 = vadd.f32 %v3934_v22, %v3606_v49 }
 0x1a6   : > { %v9166_v53 = vpop.f32.mrf.mxu3 }
 0x1a7   : > { %v4263_v24 = vpop.f32.mrf.mxu2 }
 0x1a8   : > { %v9168_v14 = vadd.f32 %v4263_v24, %v3935_v62  ;;  %v3608_v7 = vpop.f32.mrf.mxu0  ;;  %v3769_v62 = vadd.f32 %v8862_v1, %v8865_v15  ;;  %v6718_v24 = vld [vmem:[%s8735_s30 + $0x578] sm:$0xf]  ;;  %v9186_v15 = vld [vmem:[%s10794_s2] ss:$0 sm:$0xff] }
 0x1a9   : > { %v3609_v49 = vadd.f32 %v8862_v1, %v3608_v7  ;;  %v6726_v7 = vld [vmem:[%s8735_s30 + $0x580] sm:$0xf] }
 0x1aa   : > { %10819 = vst [vmem:[#allocation25_spill] sm:$0xff] %v9168_v14  ;;  %v3937_v22 = vpop.f32.mrf.mxu1 }
 0x1ab   : > { %v3938_v61 = vadd.f32 %v3937_v22, %v3609_v49  ;;  %3647 = vmatmul.bf16.gmra.mxu0 %v6691_v50  ;;  %4136 = vmatmul.bf16.gmra.mxu3 %v7591_v46  ;;  %v8469_v50 = vld [vmem:[%s8735_s30 + $0xc7c] sm:$0xf]  ;;  %v7616_v46 = vld [vmem:[%s8735_s30 + $0xc94] sm:$0xf0] }
 0x1ac   : > { %4305 = vmatmul.bf16.gmra.mxu2 %v6699_v39  ;;  %v8248_v39 = vld [vmem:[%s8735_s30 + $0x590] sm:$0xf0]  ;;  %v8245_v49 = vld [vmem:[%s8735_s30 + $0x57c] sm:$0xf]  ;;  %v6720_v22 = vld [vmem:[%s8735_s30 + $0x594] sm:$0xf0] }
 0x1ad   : > { %3976 = vmatmul.bf16.gmra.mxu1 %v6695_v17  ;;  %v3771_v17 = vadd.f32 %v9186_v15, %v8878_v29  ;;  %v6723_v14 = vor.u32 %v8245_v49, %v6720_v22  ;;  %v7644_v49 = vld [vmem:[%s8735_s30 + $0xccc] sm:$0xf0]  ;;  %v6754_v22 = vld [vmem:[%s8735_s30 + $0x5b8] sm:$0xf] }
 0x1ae   : > { %v4097_v5 = vpop.f32.mrf.mxu3 }
 0x1af   : > { %v9173_v44 = vadd.f32 %v4097_v5, %v3769_v62  ;;  %v4266_v54 = vpop.f32.mrf.mxu2 }
 0x1b0   : > { %v9175_v23 = vadd.f32 %v4266_v54, %v3938_v61  ;;  %v3610_v43 = vpop.f32.mrf.mxu0  ;;  %v8249_v61 = vld [vmem:[%s8735_s30 + $0x598] sm:$0xf0]  ;;  %v6719_v54 = vor.u32 %v8248_v39, %v6718_v24 }
 0x1b1   : > { %v3611_v25 = vadd.f32 %v8862_v1, %v3610_v43  ;;  %v7619_v43 = vor.u32 %v8469_v50, %v7616_v46 }
 0x1b2   : > { %10820 = vst [vmem:[#allocation26_spill] sm:$0xff] %v9175_v23  ;;  %v3939_v45 = vpop.f32.mrf.mxu1  ;;  %v6727_v23 = vor.u32 %v8249_v61, %v6726_v7  ;;  %v6746_v61 = vld [vmem:[%s8735_s30 + $0x5b0] sm:$0xf] }
 0x1b3   : > { %v3940_v32 = vadd.f32 %v3939_v45, %v3611_v25 }
 0x1b6   : > { %v4099_v62 = vpop.f32.mrf.mxu3 }
 0x1b7   : > { %v9193_v1 = vadd.f32 %v4099_v62, %v3771_v17  ;;  %v4268_v5 = vpop.f32.mrf.mxu2  ;;  %v8256_v62 = vld [vmem:[%s8735_s30 + $0x5d0] sm:$0xf0] }
 0x1b8   : > { %v9195_v25 = vadd.f32 %v4268_v5, %v3940_v32  ;;  %v3613_v45 = vpop.f32.mrf.mxu0  ;;  %v3774_v32 = vadd.f32 %v9186_v15, %v8883_v40  ;;  %v3776_v40 = vadd.f32 %v9186_v15, %v8896_v55  ;;  %v8252_v5 = vld [vmem:[%s8735_s30 + $0x5b4] sm:$0xf] }
 0x1b9   : > { %v3614_v63 = vadd.f32 %v9186_v15, %v3613_v45 }
 0x1ba   : > { %10821 = vst [vmem:[#allocation27_spill] sm:$0xff] %v9195_v25  ;;  %v3942_v41 = vpop.f32.mrf.mxu1 }
 0x1bb   : > { %v3943_v29 = vadd.f32 %v3942_v41, %v3614_v63  ;;  %3652 = vmatmul.bf16.gmra.mxu0 %v6719_v54  ;;  %4141 = vmatmul.bf16.gmra.mxu3 %v7619_v43  ;;  %v6748_v54 = vld [vmem:[%s8735_s30 + $0x5cc] sm:$0xf0] }
 0x1bc   : > { %4310 = vmatmul.bf16.gmra.mxu2 %v6727_v23  ;;  %v8255_v23 = vld [vmem:[%s8735_s30 + $0x5c8] sm:$0xf0] }
 0x1bd   : > { %3981 = vmatmul.bf16.gmra.mxu1 %v6723_v14  ;;  %v8476_v14 = vld [vmem:[%s8735_s30 + $0xcb4] sm:$0xf] }
 0x1be   : > { %v4102_v24 = vpop.f32.mrf.mxu3 }
 0x1bf   : > { %v9200_v39 = vadd.f32 %v4102_v24, %v3774_v32  ;;  %v4271_v50 = vpop.f32.mrf.mxu2  ;;  %v6747_v32 = vor.u32 %v8255_v23, %v6746_v61  ;;  %v7647_v24 = vor.u32 %v8476_v14, %v7644_v49 }
 0x1c0   : > { %v9202_v46 = vadd.f32 %v4271_v50, %v3943_v29  ;;  %v3615_v41 = vpop.f32.mrf.mxu0 }
 0x1c1   : > { %v3616_v63 = vadd.f32 %v9186_v15, %v3615_v41 }
 0x1c2   : > { %10822 = vst [vmem:[#allocation28_spill] sm:$0xff] %v9202_v46  ;;  %v3944_v7 = vpop.f32.mrf.mxu1 }
 0x1c3   : > { %v3945_v17 = vadd.f32 %v3944_v7, %v3616_v63  ;;  %v6755_v63 = vor.u32 %v8256_v62, %v6754_v22  ;;  %v6751_v7 = vor.u32 %v8252_v5, %v6748_v54  ;;  %v6774_v62 = vld [vmem:[%s8735_s30 + $0x5e8] sm:$0xf]  ;;  %v8262_v5 = vld [vmem:[%s8735_s30 + $0x600] sm:$0xf0]  ;;  %v8483_v54 = vld [vmem:[%s8735_s30 + $0xcec] sm:$0xf] }
 0x1c6   : > { %v4104_v43 = vpop.f32.mrf.mxu3 }
 0x1c7   : > { %v9215_v45 = vadd.f32 %v4104_v43, %v3776_v40  ;;  %v4273_v29 = vpop.f32.mrf.mxu2  ;;  %v7672_v43 = vld [vmem:[%s8735_s30 + $0xd04] sm:$0xf0] }
 0x1c8   : > { %v9217_v50 = vadd.f32 %v4273_v29, %v3945_v17  ;;  %v3618_v41 = vpop.f32.mrf.mxu0  ;;  %v3779_v17 = vadd.f32 %v9186_v15, %v8901_v3  ;;  %v6782_v29 = vld [vmem:[%s8735_s30 + $0x5f0] sm:$0xf]  ;;  %v3781_v3 = vadd.f32 %v9186_v15, %v8920_v19 }
 0x1c9   : > { %v3619_v46 = vadd.f32 %v9186_v15, %v3618_v41  ;;  %v6776_v41 = vld [vmem:[%s8735_s30 + $0x604] sm:$0xf0] }
 0x1ca   : > { %10823 = vst [vmem:[#allocation29_spill] sm:$0xff] %v9217_v50  ;;  %v3947_v25 = vpop.f32.mrf.mxu1 }
 0x1cb   : > { %v3948_v55 = vadd.f32 %v3947_v25, %v3619_v46  ;;  %3657 = vmatmul.bf16.gmra.mxu0 %v6747_v32  ;;  %4146 = vmatmul.bf16.gmra.mxu3 %v7647_v24  ;;  %v8263_v32 = vld [vmem:[%s8735_s30 + $0x608] sm:$0xf0] }
 0x1cc   : > { %4315 = vmatmul.bf16.gmra.mxu2 %v6755_v63  ;;  %v8259_v24 = vld [vmem:[%s8735_s30 + $0x5ec] sm:$0xf] }
 0x1cd   : > { %3986 = vmatmul.bf16.gmra.mxu1 %v6751_v7 }
 0x1ce   : > { %v4107_v61 = vpop.f32.mrf.mxu3 }
 0x1cf   : > { %v9222_v23 = vadd.f32 %v4107_v61, %v3779_v17  ;;  %v4276_v14 = vpop.f32.mrf.mxu2  ;;  %v6775_v17 = vor.u32 %v8262_v5, %v6774_v62  ;;  %v7675_v61 = vor.u32 %v8483_v54, %v7672_v43 }
 0x1d0   : > { %v9224_v49 = vadd.f32 %v4276_v14, %v3948_v55  ;;  %v3620_v25 = vpop.f32.mrf.mxu0 }
 0x1d1   : > { %v3621_v46 = vadd.f32 %v9186_v15, %v3620_v25 }
 0x1d2   : > { %10824 = vst [vmem:[#allocation30_spill] sm:$0xff] %v9224_v49  ;;  %v3949_v22 = vpop.f32.mrf.mxu1 }
 0x1d3   : > { %v3950_v40 = vadd.f32 %v3949_v22, %v3621_v46  ;;  %v6783_v46 = vor.u32 %v8263_v32, %v6782_v29  ;;  %v6779_v22 = vor.u32 %v8259_v24, %v6776_v41  ;;  %v6802_v32 = vld [vmem:[%s8735_s30 + $0x620] sm:$0xf]  ;;  %v8269_v24 = vld [vmem:[%s8735_s30 + $0x638] sm:$0xf0]  ;;  %v8490_v41 = vld [vmem:[%s8735_s30 + $0xd24] sm:$0xf] }
 0x1d6   : > { %v4109_v63 = vpop.f32.mrf.mxu3 }
 0x1d7   : > { %v9237_v7 = vadd.f32 %v4109_v63, %v3781_v3  ;;  %v4278_v55 = vpop.f32.mrf.mxu2  ;;  %v7700_v63 = vld [vmem:[%s8735_s30 + $0xd3c] sm:$0xf0] }
 0x1d8   : > { %v9239_v14 = vadd.f32 %v4278_v55, %v3950_v40  ;;  %v3623_v25 = vpop.f32.mrf.mxu0  ;;  %v3784_v40 = vadd.f32 %v9186_v15, %v8925_v35  ;;  %v6810_v55 = vld [vmem:[%s8735_s30 + $0x628] sm:$0xf]  ;;  %v3786_v35 = vadd.f32 %v9186_v15, %v8938_v52 }
 0x1d9   : > { %v3624_v49 = vadd.f32 %v9186_v15, %v3623_v25  ;;  %v6804_v25 = vld [vmem:[%s8735_s30 + $0x63c] sm:$0xf0] }
 0x1da   : > { %10825 = vst [vmem:[#allocation31_spill] sm:$0xff] %v9239_v14  ;;  %v3952_v50 = vpop.f32.mrf.mxu1 }
 0x1db   : > { %v3953_v19 = vadd.f32 %v3952_v50, %v3624_v49  ;;  %3662 = vmatmul.bf16.gmra.mxu0 %v6775_v17  ;;  %4151 = vmatmul.bf16.gmra.mxu3 %v7675_v61  ;;  %v8270_v17 = vld [vmem:[%s8735_s30 + $0x640] sm:$0xf0] }
 0x1dc   : > { %4320 = vmatmul.bf16.gmra.mxu2 %v6783_v46  ;;  %v8266_v61 = vld [vmem:[%s8735_s30 + $0x624] sm:$0xf] }
 0x1dd   : > { %3991 = vmatmul.bf16.gmra.mxu1 %v6779_v22 }
 0x1de   : > { %v4112_v62 = vpop.f32.mrf.mxu3 }
 0x1df   : > { %v9244_v5 = vadd.f32 %v4112_v62, %v3784_v40  ;;  %v4281_v54 = vpop.f32.mrf.mxu2  ;;  %v6803_v40 = vor.u32 %v8269_v24, %v6802_v32  ;;  %v7703_v62 = vor.u32 %v8490_v41, %v7700_v63 }
 0x1e0   : > { %v9246_v43 = vadd.f32 %v4281_v54, %v3953_v19  ;;  %v3625_v50 = vpop.f32.mrf.mxu0 }
 0x1e1   : > { %v3626_v49 = vadd.f32 %v9186_v15, %v3625_v50 }
 0x1e2   : > { %10826 = vst [vmem:[#allocation32_spill] sm:$0xff] %v9246_v43  ;;  %v3954_v29 = vpop.f32.mrf.mxu1 }
 0x1e3   : > { %v3955_v3 = vadd.f32 %v3954_v29, %v3626_v49  ;;  %v6811_v49 = vor.u32 %v8270_v17, %v6810_v55  ;;  %v6807_v29 = vor.u32 %v8266_v61, %v6804_v25  ;;  %v8276_v61 = vld [vmem:[%s8735_s30 + $0x670] sm:$0xf0] }
 0x1e4   : > { %v8560_v25 = vld [vmem:[%s10793_s1 + $0x150] sm:$0xff] }
 0x1e5   : > { %5169 = vmatpush.bf16.msrb.mxu1 %v8560_v25 }
 0x1e6   : > { %v4114_v46 = vpop.f32.mrf.mxu3 }
 0x1e7   : > { %v9259_v22 = vadd.f32 %v4114_v46, %v3786_v35  ;;  %v4283_v19 = vpop.f32.mrf.mxu2  ;;  %v6830_v35 = vld [vmem:[%s8735_s30 + $0x658] sm:$0xf]  ;;  %v8497_v46 = vld [vmem:[%s8735_s30 + $0xd5c] sm:$0xf] }
 0x1e8   : > { %v9261_v54 = vadd.f32 %v4283_v19, %v3955_v3  ;;  %v3628_v50 = vpop.f32.mrf.mxu0  ;;  %v3789_v3 = vadd.f32 %v9186_v15, %v8943_v2  ;;  %v8552_v2 = vld [vmem:[%s10793_s1 + $0x110] sm:$0xff]  ;;  %v7728_v19 = vld [vmem:[%s8735_s30 + $0xd74] sm:$0xf0] }
 0x1e9   : > { %v3629_v43 = vadd.f32 %v9186_v15, %v3628_v50  ;;  %v8277_v50 = vld [vmem:[%s8735_s30 + $0x678] sm:$0xf0]  ;;  %4840 = vmatpush.bf16.msrb.mxu0 %v8552_v2 }
 0x1ea   : > { %10827 = vst [vmem:[#allocation33_spill] sm:$0xff] %v9261_v54  ;;  %v3957_v14 = vpop.f32.mrf.mxu1 }
 0x1eb   : > { %v3958_v52 = vadd.f32 %v3957_v14, %v3629_v43  ;;  %3667 = vmatmul.bf16.gmra.mxu0 %v6803_v40  ;;  %4156 = vmatmul.bf16.gmra.mxu3 %v7703_v62  ;;  %v6838_v40 = vld [vmem:[%s8735_s30 + $0x660] sm:$0xf]  ;;  %v3791_v62 = vadd.f32 %v9186_v15, %v8956_v16 }
 0x1ec   : > { %4325 = vmatmul.bf16.gmra.mxu2 %v6811_v49  ;;  %v8273_v49 = vld [vmem:[%s8735_s30 + $0x65c] sm:$0xf] }
 0x1ed   : > { %3996 = vmatmul.bf16.gmra.mxu1 %v6807_v29  ;;  %v6832_v29 = vld [vmem:[%s8735_s30 + $0x674] sm:$0xf0] }
 0x1ee   : > { %v4117_v32 = vpop.f32.mrf.mxu3  ;;  %v6835_v54 = vor.u32 %v8273_v49, %v6832_v29  ;;  %v6866_v49 = vld [vmem:[%s8735_s30 + $0x698] sm:$0xf]  ;;  %v8284_v29 = vld [vmem:[%s8735_s30 + $0x6b0] sm:$0xf0] }
 0x1ef   : > { %v9266_v24 = vadd.f32 %v4117_v32, %v3789_v3  ;;  %v4286_v41 = vpop.f32.mrf.mxu2 }
 0x1f0   : > { %v9268_v63 = vadd.f32 %v4286_v41, %v3958_v52  ;;  %v3630_v14 = vpop.f32.mrf.mxu0  ;;  %v6831_v41 = vor.u32 %v8276_v61, %v6830_v35  ;;  %v3794_v35 = vadd.f32 %v9186_v15, %v8961_v38  ;;  %v3796_v38 = vadd.f32 %v9186_v15, %v8974_v58  ;;  %v8549_v58 = vld [vmem:[%s10793_s1 + $0xf8] sm:$0xff] }
 0x1f1   : > { %v3631_v43 = vadd.f32 %v9186_v15, %v3630_v14  ;;  %v7731_v14 = vor.u32 %v8497_v46, %v7728_v19  ;;  %4506 = vmatpush.bf16.msrb.mxu3 %v8549_v58 }
 0x1f2   : > { %10828 = vst [vmem:[#allocation34_spill] sm:$0xff] %v9268_v63  ;;  %v3959_v55 = vpop.f32.mrf.mxu1  ;;  %v6839_v63 = vor.u32 %v8277_v50, %v6838_v40  ;;  %v7756_v50 = vld [vmem:[%s8735_s30 + $0xdac] sm:$0xf0] }
 0x1f3   : > { %v3960_v17 = vadd.f32 %v3959_v55, %v3631_v43 }
 0x1f6   : > { %v4119_v52 = vpop.f32.mrf.mxu3 }
 0x1f7   : > { %v9287_v3 = vadd.f32 %v4119_v52, %v3791_v62  ;;  %v4288_v32 = vpop.f32.mrf.mxu2  ;;  %v6858_v62 = vld [vmem:[%s8735_s30 + $0x690] sm:$0xf]  ;;  %v8280_v52 = vld [vmem:[%s8735_s30 + $0x694] sm:$0xf] }
 0x1f8   : > { %v9289_v43 = vadd.f32 %v4288_v32, %v3960_v17  ;;  %v3633_v55 = vpop.f32.mrf.mxu0  ;;  %v6860_v32 = vld [vmem:[%s8735_s30 + $0x6ac] sm:$0xf0] }
 0x1f9   : > { %v3634_v27 = vadd.f32 %v9186_v15, %v3633_v55 }
 0x1fa   : > { %10829 = vst [vmem:[#allocation35_spill] sm:$0xff] %v9289_v43  ;;  %v3962_v16 = vpop.f32.mrf.mxu1 }
 0x1fb   : > { %v3963_v8 = vadd.f32 %v3962_v16, %v3634_v27  ;;  %3672 = vmatmul.bf16.gmra.mxu0 %v6831_v41  ;;  %4161 = vmatmul.bf16.gmra.mxu3 %v7731_v14 }
 0x1fc   : > { %4330 = vmatmul.bf16.gmra.mxu2 %v6839_v63  ;;  %v8283_v63 = vld [vmem:[%s8735_s30 + $0x6a8] sm:$0xf0] }
 0x1fd   : > { %4001 = vmatmul.bf16.gmra.mxu1 %v6835_v54  ;;  %v8504_v54 = vld [vmem:[%s8735_s30 + $0xd94] sm:$0xf]  ;;  %v6859_v55 = vor.u32 %v8283_v63, %v6858_v62 }
 0x1fe   : > { %v4122_v17 = vpop.f32.mrf.mxu3  ;;  %v7759_v16 = vor.u32 %v8504_v54, %v7756_v50 }
 0x1ff   : > { %v9294_v61 = vadd.f32 %v4122_v17, %v3794_v35  ;;  %v4291_v2 = vpop.f32.mrf.mxu2 }
 0x200   : > { %v9296_v25 = vadd.f32 %v4291_v2, %v3963_v8  ;;  %v3635_v27 = vpop.f32.mrf.mxu0  ;;  %v6867_v2 = vor.u32 %v8284_v29, %v6866_v49 }
 0x201   : > { %v3636_v46 = vadd.f32 %v9186_v15, %v3635_v27  ;;  %v6863_v27 = vor.u32 %v8280_v52, %v6860_v32  ;;  %v6886_v32 = vld [vmem:[%s8735_s30 + $0x6c8] sm:$0xf] }
 0x202   : > { %10830 = vst [vmem:[#allocation36_spill] sm:$0xff] %v9296_v25  ;;  %v3964_v19 = vpop.f32.mrf.mxu1 }
 0x203   : > { %v3965_v40 = vadd.f32 %v3964_v19, %v3636_v46 }
 0x206   : > { %v4124_v41 = vpop.f32.mrf.mxu3 }
 0x207   : > { %v9309_v14 = vadd.f32 %v4124_v41, %v3796_v38  ;;  %v4293_v8 = vpop.f32.mrf.mxu2  ;;  %v8290_v41 = vld [vmem:[%s8735_s30 + $0x6e0] sm:$0xf0] }
 0x208   : > { %v9311_v35 = vadd.f32 %v4293_v8, %v3965_v40  ;;  %v3638_v17 = vpop.f32.mrf.mxu0  ;;  %v3799_v40 = vadd.f32 %v9186_v15, %v8979_v12  ;;  %v8511_v8 = vld [vmem:[%s8735_s30 + $0xdcc] sm:$0xf]  ;;  %v6894_v12 = vld [vmem:[%s8735_s30 + $0x6d0] sm:$0xf]  ;;  %v6887_v58 = vor.u32 %v8290_v41, %v6886_v32 }
 0x209   : > { %v3639_v46 = vadd.f32 %v9186_v15, %v3638_v17  ;;  %v8291_v17 = vld [vmem:[%s8735_s30 + $0x6e8] sm:$0xf0] }
 0x20a   : > { %10831 = vst [vmem:[#allocation37_spill] sm:$0xff] %v9311_v35  ;;  %v3967_v19 = vpop.f32.mrf.mxu1 }
 0x20b   : > { %v3968_v25 = vadd.f32 %v3967_v19, %v3639_v46  ;;  %3677 = vmatmul.bf16.gmra.mxu0 %v6859_v55  ;;  %4166 = vmatmul.bf16.gmra.mxu3 %v7759_v16  ;;  %v7784_v55 = vld [vmem:[%s8735_s30 + $0xde4] sm:$0xf0]  ;;  %v3801_v16 = vadd.f32 %v9186_v15, %v8992_v34 }
 0x20c   : > { %4335 = vmatmul.bf16.gmra.mxu2 %v6867_v2  ;;  %v8287_v2 = vld [vmem:[%s8735_s30 + $0x6cc] sm:$0xf] }
 0x20d   : > { %4006 = vmatmul.bf16.gmra.mxu1 %v6863_v27  ;;  %v6888_v27 = vld [vmem:[%s8735_s30 + $0x6e4] sm:$0xf0] }
 0x20e   : > { %v4127_v62 = vpop.f32.mrf.mxu3 }
 0x20f   : > { %v9319_v63 = vadd.f32 %v4127_v62, %v3799_v40  ;;  %v4296_v54 = vpop.f32.mrf.mxu2  ;;  %v7787_v40 = vor.u32 %v8511_v8, %v7784_v55 }
 0x210   : > { %v9321_v50 = vadd.f32 %v4296_v54, %v3968_v25  ;;  %v3640_v49 = vpop.f32.mrf.mxu0 }
 0x211   : > { %v3641_v38 = vadd.f32 %v9186_v15, %v3640_v49  ;;  %v6895_v49 = vor.u32 %v8291_v17, %v6894_v12 }
 0x212   : > { %10832 = vst [vmem:[#allocation38_spill] sm:$0xff] %v9321_v50  ;;  %v3969_v29 = vpop.f32.mrf.mxu1 }
 0x213   : > { %v3970_v52 = vadd.f32 %v3969_v29, %v3641_v38  ;;  %v6891_v38 = vor.u32 %v8287_v2, %v6888_v27  ;;  %v6914_v2 = vld [vmem:[%s8735_s30 + $0x700] sm:$0xf]  ;;  %v8297_v27 = vld [vmem:[%s8735_s30 + $0x718] sm:$0xf0] }
 0x216   : > { %v4129_v46 = vpop.f32.mrf.mxu3 }
 0x217   : > { %v9334_v19 = vadd.f32 %v4129_v46, %v3801_v16  ;;  %v4298_v25 = vpop.f32.mrf.mxu2  ;;  %v6922_v46 = vld [vmem:[%s8735_s30 + $0x708] sm:$0xf] }
 0x218   : > { %v9336_v62 = vadd.f32 %v4298_v25, %v3970_v52  ;;  %v3643_v54 = vpop.f32.mrf.mxu0  ;;  %v3804_v52 = vadd.f32 %v9186_v15, %v8997_v51  ;;  %v7370_v25 = vld [vmem:[%s8735_s30 + $0xa88] sm:$0xf]  ;;  %v3806_v51 = vadd.f32 %v9186_v15, %v9010_v20  ;;  %v8548_v20 = vld [vmem:[%s10793_s1 + $0xf0] sm:$0xff] }
 0x219   : > { %v3644_v29 = vadd.f32 %v9186_v15, %v3643_v54  ;;  %v8294_v54 = vld [vmem:[%s8735_s30 + $0x704] sm:$0xf]  ;;  %4507 = vmatpush.bf16.msrb.mxu3 %v8548_v20 }
 0x21a   : > { %10833 = vst [vmem:[#allocation39_spill] sm:$0xff] %v9336_v62  ;;  %v3972_v50 = vpop.f32.mrf.mxu1 }
 0x21b   : > { %v3973_v34 = vadd.f32 %v3972_v50, %v3644_v29  ;;  %3682 = vmatmul.bf16.gmra.mxu0 %v6887_v58  ;;  %4171 = vmatmul.bf16.gmra.mxu3 %v7787_v40  ;;  %v8410_v58 = vld [vmem:[%s8735_s30 + $0xaa0] sm:$0xf0] }
 0x21c   : > { %4340 = vmatmul.bf16.gmra.mxu2 %v6895_v49  ;;  %v8298_v40 = vld [vmem:[%s8735_s30 + $0x720] sm:$0xf0]  ;;  %v6916_v49 = vld [vmem:[%s8735_s30 + $0x71c] sm:$0xf0] }
 0x21d   : > { %4011 = vmatmul.bf16.gmra.mxu1 %v6891_v38 }
 0x21e   : > { %v4132_v32 = vpop.f32.mrf.mxu3 }
 0x21f   : > { %v9341_v41 = vadd.f32 %v4132_v32, %v3804_v52  ;;  %v4301_v8 = vpop.f32.mrf.mxu2  ;;  %v6915_v52 = vor.u32 %v8297_v27, %v6914_v2  ;;  %v7371_v32 = vor.u32 %v8410_v58, %v7370_v25 }
 0x220   : > { %v9343_v55 = vadd.f32 %v4301_v8, %v3973_v34  ;;  %v3645_v50 = vpop.f32.mrf.mxu0 }
 0x221   : > { %v3646_v12 = vadd.f32 %v9186_v15, %v3645_v50 }
 0x222   : > { %10834 = vst [vmem:[#allocation40_spill] sm:$0xff] %v9343_v55  ;;  %v3974_v16 = vpop.f32.mrf.mxu1 }
 0x223   : > { %v3975_v17 = vadd.f32 %v3974_v16, %v3646_v12  ;;  %v6923_v12 = vor.u32 %v8298_v40, %v6922_v46  ;;  %v6919_v16 = vor.u32 %v8294_v54, %v6916_v49  ;;  %v6942_v40 = vld [vmem:[%s8735_s30 + $0x738] sm:$0xf]  ;;  %v8304_v54 = vld [vmem:[%s8735_s30 + $0x750] sm:$0xf0]  ;;  %v6950_v49 = vld [vmem:[%s8735_s30 + $0x740] sm:$0xf] }
 0x224   : > { %v6943_v20 = vor.u32 %v8304_v54, %v6942_v40 }
 0x226   : > { %v4134_v38 = vpop.f32.mrf.mxu3 }
 0x227   : > { %v9356_v29 = vadd.f32 %v4134_v38, %v3806_v51  ;;  %v4303_v34 = vpop.f32.mrf.mxu2  ;;  %v7398_v38 = vld [vmem:[%s8735_s30 + $0xac0] sm:$0xf] }
 0x228   : > { %v9358_v8 = vadd.f32 %v4303_v34, %v3975_v17  ;;  %v3648_v50 = vpop.f32.mrf.mxu0  ;;  %v3809_v17 = vadd.f32 %v9186_v15, %v9015_v36  ;;  %v8417_v36 = vld [vmem:[%s8735_s30 + $0xad8] sm:$0xf0]  ;;  %v3811_v34 = vadd.f32 %v9186_v15, %v9034_v4 }
 0x229   : > { %v3649_v55 = vadd.f32 %v9186_v15, %v3648_v50  ;;  %v6944_v50 = vld [vmem:[%s8735_s30 + $0x754] sm:$0xf0] }
 0x22a   : > { %10835 = vst [vmem:[#allocation41_spill] sm:$0xff] %v9358_v8  ;;  %v3977_v62 = vpop.f32.mrf.mxu1 }
 0x22b   : > { %v3978_v35 = vadd.f32 %v3977_v62, %v3649_v55  ;;  %3687 = vmatmul.bf16.gmra.mxu0 %v6915_v52  ;;  %4425 = vmatmul.bf16.vlgmr.msra.gmra.mxu3 %v7371_v32  ;;  %v8305_v52 = vld [vmem:[%s8735_s30 + $0x758] sm:$0xf0] }
 0x22c   : > { %4345 = vmatmul.bf16.gmra.mxu2 %v6923_v12  ;;  %v8301_v32 = vld [vmem:[%s8735_s30 + $0x73c] sm:$0xf] }
 0x22d   : > { %4016 = vmatmul.bf16.gmra.mxu1 %v6919_v16 }
 0x22e   : > { %v4137_v2 = vpop.f32.mrf.mxu3 }
 0x22f   : > { %v9366_v62 = vadd.f32 %v4137_v2, %v3809_v17  ;;  %v4306_v55 = vpop.f32.mrf.mxu2  ;;  %v7399_v17 = vor.u32 %v8417_v36, %v7398_v38 }
 0x230   : > { %v9368_v27 = vadd.f32 %v4306_v55, %v3978_v35  ;;  %v3650_v46 = vpop.f32.mrf.mxu0 }
 0x231   : > { %v3651_v25 = vadd.f32 %v9186_v15, %v3650_v46  ;;  %v6951_v46 = vor.u32 %v8305_v52, %v6950_v49 }
 0x232   : > { %10836 = vst [vmem:[#allocation42_spill] sm:$0xff] %v9368_v27  ;;  %v3979_v58 = vpop.f32.mrf.mxu1 }
 0x233   : > { %v3980_v51 = vadd.f32 %v3979_v58, %v3651_v25  ;;  %v6947_v25 = vor.u32 %v8301_v32, %v6944_v50  ;;  %v6970_v32 = vld [vmem:[%s8735_s30 + $0x770] sm:$0xf]  ;;  %v8311_v50 = vld [vmem:[%s8735_s30 + $0x788] sm:$0xf0] }
 0x236   : > { %v4139_v12 = vpop.f32.mrf.mxu3 }
 0x237   : > { %v9381_v16 = vadd.f32 %v4139_v12, %v3811_v34  ;;  %v4308_v35 = vpop.f32.mrf.mxu2  ;;  %v6978_v12 = vld [vmem:[%s8735_s30 + $0x778] sm:$0xf] }
 0x238   : > { %v9383_v2 = vadd.f32 %v4308_v35, %v3980_v51  ;;  %v3653_v55 = vpop.f32.mrf.mxu0  ;;  %v3814_v51 = vadd.f32 %v9186_v15, %v9039_v30  ;;  %v7426_v35 = vld [vmem:[%s8735_s30 + $0xaf8] sm:$0xf]  ;;  %v3816_v30 = vadd.f32 %v9186_v15, %v9052_v0  ;;  %v8547_v0 = vld [vmem:[%s10793_s1 + $0xe8] sm:$0xff] }
 0x239   : > { %v3654_v58 = vadd.f32 %v9186_v15, %v3653_v55  ;;  %v8308_v55 = vld [vmem:[%s8735_s30 + $0x774] sm:$0xf]  ;;  %4508 = vmatpush.bf16.msrb.mxu3 %v8547_v0 }
 0x23a   : > { %10837 = vst [vmem:[#allocation43_spill] sm:$0xff] %v9383_v2  ;;  %v3982_v27 = vpop.f32.mrf.mxu1 }
 0x23b   : > { %v3983_v4 = vadd.f32 %v3982_v27, %v3654_v58  ;;  %3692 = vmatmul.bf16.gmra.mxu0 %v6943_v20  ;;  %4430 = vmatmul.bf16.gmra.mxu3 %v7399_v17  ;;  %v8424_v20 = vld [vmem:[%s8735_s30 + $0xb10] sm:$0xf0] }
 0x23c   : > { %4350 = vmatmul.bf16.gmra.mxu2 %v6951_v46  ;;  %v8312_v17 = vld [vmem:[%s8735_s30 + $0x790] sm:$0xf0]  ;;  %v6972_v46 = vld [vmem:[%s8735_s30 + $0x78c] sm:$0xf0] }
 0x23d   : > { %4021 = vmatmul.bf16.gmra.mxu1 %v6947_v25 }
 0x23e   : > { %v4142_v40 = vpop.f32.mrf.mxu3 }
 0x23f   : > { %v9388_v54 = vadd.f32 %v4142_v40, %v3814_v51  ;;  %v4311_v49 = vpop.f32.mrf.mxu2  ;;  %v6971_v51 = vor.u32 %v8311_v50, %v6970_v32  ;;  %v7427_v40 = vor.u32 %v8424_v20, %v7426_v35 }
 0x240   : > { %v9390_v38 = vadd.f32 %v4311_v49, %v3983_v4  ;;  %v3655_v27 = vpop.f32.mrf.mxu0 }
 0x241   : > { %v3656_v36 = vadd.f32 %v9186_v15, %v3655_v27 }
 0x242   : > { %10838 = vst [vmem:[#allocation44_spill] sm:$0xff] %v9390_v38  ;;  %v3984_v34 = vpop.f32.mrf.mxu1 }
 0x243   : > { %v3985_v52 = vadd.f32 %v3984_v34, %v3656_v36  ;;  %v6979_v36 = vor.u32 %v8312_v17, %v6978_v12  ;;  %v6975_v34 = vor.u32 %v8308_v55, %v6972_v46  ;;  %v8318_v55 = vld [vmem:[%s8735_s30 + $0x7c0] sm:$0xf0]  ;;  %v8559_v46 = vld [vmem:[%s10793_s1 + $0x148] sm:$0xff] }
 0x244   : > { %5170 = vmatpush.bf16.msrb.mxu1 %v8559_v46 }
 0x246   : > { %v4144_v25 = vpop.f32.mrf.mxu3 }
 0x247   : > { %v9403_v58 = vadd.f32 %v4144_v25, %v3816_v30  ;;  %v4313_v4 = vpop.f32.mrf.mxu2  ;;  %v6998_v30 = vld [vmem:[%s8735_s30 + $0x7a8] sm:$0xf]  ;;  %v7006_v25 = vld [vmem:[%s8735_s30 + $0x7b0] sm:$0xf] }
 0x248   : > { %v9405_v49 = vadd.f32 %v4313_v4, %v3985_v52  ;;  %v3658_v27 = vpop.f32.mrf.mxu0  ;;  %v3819_v52 = vadd.f32 %v9186_v15, %v9057_v28  ;;  %v8551_v28 = vld [vmem:[%s10793_s1 + $0x108] sm:$0xff]  ;;  %v7454_v4 = vld [vmem:[%s8735_s30 + $0xb30] sm:$0xf] }
 0x249   : > { %v3659_v38 = vadd.f32 %v9186_v15, %v3658_v27  ;;  %v8315_v27 = vld [vmem:[%s8735_s30 + $0x7ac] sm:$0xf]  ;;  %4841 = vmatpush.bf16.msrb.mxu0 %v8551_v28 }
 0x24a   : > { %10839 = vst [vmem:[#allocation45_spill] sm:$0xff] %v9405_v49  ;;  %v3987_v2 = vpop.f32.mrf.mxu1 }
 0x24b   : > { %v3988_v8 = vadd.f32 %v3987_v2, %v3659_v38  ;;  %3697 = vmatmul.bf16.gmra.mxu0 %v6971_v51  ;;  %4435 = vmatmul.bf16.gmra.mxu3 %v7427_v40  ;;  %v8431_v51 = vld [vmem:[%s8735_s30 + $0xb48] sm:$0xf0] }
 0x24c   : > { %4355 = vmatmul.bf16.gmra.mxu2 %v6979_v36  ;;  %v8319_v40 = vld [vmem:[%s8735_s30 + $0x7c8] sm:$0xf0]  ;;  %v7000_v36 = vld [vmem:[%s8735_s30 + $0x7c4] sm:$0xf0] }
 0x24d   : > { %4026 = vmatmul.bf16.gmra.mxu1 %v6975_v34 }
 0x24e   : > { %v4147_v32 = vpop.f32.mrf.mxu3 }
 0x24f   : > { %v9413_v50 = vadd.f32 %v4147_v32, %v3819_v52  ;;  %v4316_v2 = vpop.f32.mrf.mxu2  ;;  %v6999_v32 = vor.u32 %v8318_v55, %v6998_v30  ;;  %v3824_v30 = vadd.f32 %v9186_v15, %v9075_v47  ;;  %v3826_v47 = vadd.f32 %v9186_v15, %v9088_v31  ;;  %v8546_v31 = vld [vmem:[%s10793_s1 + $0xe0] sm:$0xff] }
 0x250   : > { %v9415_v38 = vadd.f32 %v4316_v2, %v3988_v8  ;;  %v3660_v12 = vpop.f32.mrf.mxu0  ;;  %v3821_v8 = vadd.f32 %v9186_v15, %v9070_v9  ;;  %v7455_v2 = vor.u32 %v8431_v51, %v7454_v4  ;;  %4509 = vmatpush.bf16.msrb.mxu3 %v8546_v31 }
 0x251   : > { %v3661_v35 = vadd.f32 %v9186_v15, %v3660_v12 }
 0x252   : > { %10840 = vst [vmem:[#allocation46_spill] sm:$0xff] %v9415_v38  ;;  %v3989_v20 = vpop.f32.mrf.mxu1  ;;  %v7003_v38 = vor.u32 %v8315_v27, %v7000_v36  ;;  %v7482_v27 = vld [vmem:[%s8735_s30 + $0xb68] sm:$0xf]  ;;  %v8438_v36 = vld [vmem:[%s8735_s30 + $0xb80] sm:$0xf0] }
 0x253   : > { %v3990_v17 = vadd.f32 %v3989_v20, %v3661_v35  ;;  %v7007_v20 = vor.u32 %v8319_v40, %v7006_v25  ;;  %v8325_v40 = vld [vmem:[%s8735_s30 + $0x7f8] sm:$0xf0] }
 0x256   : > { %v4149_v34 = vpop.f32.mrf.mxu3 }
 0x257   : > { %v9434_v0 = vadd.f32 %v4149_v34, %v3821_v8  ;;  %v4318_v52 = vpop.f32.mrf.mxu2  ;;  %v7026_v8 = vld [vmem:[%s8735_s30 + $0x7e0] sm:$0xf]  ;;  %v8326_v34 = vld [vmem:[%s8735_s30 + $0x800] sm:$0xf0] }
 0x258   : > { %v9436_v12 = vadd.f32 %v4318_v52, %v3990_v17  ;;  %v3663_v35 = vpop.f32.mrf.mxu0  ;;  %v8322_v52 = vld [vmem:[%s8735_s30 + $0x7e4] sm:$0xf] }
 0x259   : > { %v3664_v49 = vadd.f32 %v9186_v15, %v3663_v35 }
 0x25a   : > { %v3992_v9 = vpop.f32.mrf.mxu1 }
 0x25b   : > { %v3993_v43 = vadd.f32 %v3992_v9, %v3664_v49  ;;  %3702 = vmatmul.bf16.gmra.mxu0 %v6999_v32  ;;  %4440 = vmatmul.bf16.gmra.mxu3 %v7455_v2  ;;  %v7028_v32 = vld [vmem:[%s8735_s30 + $0x7fc] sm:$0xf0]  ;;  %v7483_v9 = vor.u32 %v8438_v36, %v7482_v27 }
 0x25c   : > { %4360 = vmatmul.bf16.gmra.mxu2 %v7007_v20  ;;  %v7027_v20 = vor.u32 %v8325_v40, %v7026_v8 }
 0x25d   : > { %4031 = vmatmul.bf16.gmra.mxu1 %v7003_v38  ;;  %v7034_v38 = vld [vmem:[%s8735_s30 + $0x7e8] sm:$0xf] }
 0x25e   : > { %v4152_v17 = vpop.f32.mrf.mxu3 }
 0x25f   : > { %v9441_v55 = vadd.f32 %v4152_v17, %v3824_v30  ;;  %v4321_v28 = vpop.f32.mrf.mxu2 }
 0x260   : > { %v9443_v46 = vadd.f32 %v4321_v28, %v3993_v43  ;;  %v3665_v49 = vpop.f32.mrf.mxu0  ;;  %v7035_v28 = vor.u32 %v8326_v34, %v7034_v38 }
 0x261   : > { %v3666_v25 = vadd.f32 %v9186_v15, %v3665_v49  ;;  %v7031_v49 = vor.u32 %v8322_v52, %v7028_v32  ;;  %v7054_v32 = vld [vmem:[%s8735_s30 + $0x818] sm:$0xf] }
 0x262   : > { %10841 = vst [vmem:[#allocation47_spill] sm:$0xff] %v9443_v46  ;;  %v3994_v4 = vpop.f32.mrf.mxu1 }
 0x263   : > { %v3995_v51 = vadd.f32 %v3994_v4, %v3666_v25 }
 0x266   : > { %v4154_v2 = vpop.f32.mrf.mxu3 }
 0x267   : > { %v9456_v35 = vadd.f32 %v4154_v2, %v3826_v47  ;;  %v4323_v43 = vpop.f32.mrf.mxu2  ;;  %v8332_v2 = vld [vmem:[%s8735_s30 + $0x830] sm:$0xf0] }
 0x268   : > { %v9458_v30 = vadd.f32 %v4323_v43, %v3995_v51  ;;  %v3668_v17 = vpop.f32.mrf.mxu0  ;;  %v3829_v51 = vadd.f32 %v9186_v15, %v9093_v60  ;;  %v7062_v43 = vld [vmem:[%s8735_s30 + $0x820] sm:$0xf]  ;;  %v8445_v60 = vld [vmem:[%s8735_s30 + $0xbb8] sm:$0xf0]  ;;  %v7055_v31 = vor.u32 %v8332_v2, %v7054_v32 }
 0x269   : > { %v3669_v25 = vadd.f32 %v9186_v15, %v3668_v17  ;;  %v8333_v17 = vld [vmem:[%s8735_s30 + $0x838] sm:$0xf0] }
 0x26a   : > { %10842 = vst [vmem:[#allocation48_spill] sm:$0xff] %v9458_v30  ;;  %v3997_v4 = vpop.f32.mrf.mxu1 }
 0x26b   : > { %v3998_v46 = vadd.f32 %v3997_v4, %v3669_v25  ;;  %3707 = vmatmul.bf16.gmra.mxu0 %v7027_v20  ;;  %4445 = vmatmul.bf16.gmra.mxu3 %v7483_v9  ;;  %v7510_v20 = vld [vmem:[%s8735_s30 + $0xba0] sm:$0xf]  ;;  %v3831_v9 = vadd.f32 %v9186_v15, %v9106_v56 }
 0x26c   : > { %4365 = vmatmul.bf16.gmra.mxu2 %v7035_v28  ;;  %v8329_v28 = vld [vmem:[%s8735_s30 + $0x81c] sm:$0xf] }
 0x26d   : > { %4036 = vmatmul.bf16.gmra.mxu1 %v7031_v49  ;;  %v7056_v49 = vld [vmem:[%s8735_s30 + $0x834] sm:$0xf0] }
 0x26e   : > { %v4157_v8 = vpop.f32.mrf.mxu3 }
 0x26f   : > { %v9466_v40 = vadd.f32 %v4157_v8, %v3829_v51  ;;  %v4326_v38 = vpop.f32.mrf.mxu2  ;;  %v7511_v51 = vor.u32 %v8445_v60, %v7510_v20 }
 0x270   : > { %v9468_v27 = vadd.f32 %v4326_v38, %v3998_v46  ;;  %v3670_v36 = vpop.f32.mrf.mxu0 }
 0x271   : > { %v3671_v47 = vadd.f32 %v9186_v15, %v3670_v36  ;;  %v7063_v36 = vor.u32 %v8333_v17, %v7062_v43 }
 0x272   : > { %10843 = vst [vmem:[#allocation49_spill] sm:$0xff] %v9468_v27  ;;  %v3999_v34 = vpop.f32.mrf.mxu1 }
 0x273   : > { %v4000_v52 = vadd.f32 %v3999_v34, %v3671_v47  ;;  %v7059_v47 = vor.u32 %v8329_v28, %v7056_v49  ;;  %v7082_v28 = vld [vmem:[%s8735_s30 + $0x850] sm:$0xf]  ;;  %v8339_v49 = vld [vmem:[%s8735_s30 + $0x868] sm:$0xf0] }
 0x276   : > { %v4159_v25 = vpop.f32.mrf.mxu3 }
 0x277   : > { %v9481_v4 = vadd.f32 %v4159_v25, %v3831_v9  ;;  %v4328_v46 = vpop.f32.mrf.mxu2  ;;  %v7090_v25 = vld [vmem:[%s8735_s30 + $0x858] sm:$0xf] }
 0x278   : > { %v9483_v8 = vadd.f32 %v4328_v46, %v4000_v52  ;;  %v3673_v38 = vpop.f32.mrf.mxu0  ;;  %v3834_v52 = vadd.f32 %v9186_v15, %v9111_v21  ;;  %v7538_v46 = vld [vmem:[%s8735_s30 + $0xbd8] sm:$0xf]  ;;  %v3836_v21 = vadd.f32 %v9186_v15, %v9124_v10 }
 0x279   : > { %v3674_v34 = vadd.f32 %v9186_v15, %v3673_v38  ;;  %v8336_v38 = vld [vmem:[%s8735_s30 + $0x854] sm:$0xf]  ;;  %v8545_v10 = vld [vmem:[%s10793_s1 + $0xd8] sm:$0xff] }
 0x27a   : > { %10844 = vst [vmem:[#allocation50_spill] sm:$0xff] %v9483_v8  ;;  %v4002_v27 = vpop.f32.mrf.mxu1  ;;  %4510 = vmatpush.bf16.msrb.mxu3 %v8545_v10 }
 0x27b   : > { %v4003_v56 = vadd.f32 %v4002_v27, %v3674_v34  ;;  %3712 = vmatmul.bf16.gmra.mxu0 %v7055_v31  ;;  %4450 = vmatmul.bf16.gmra.mxu3 %v7511_v51  ;;  %v8452_v31 = vld [vmem:[%s8735_s30 + $0xbf0] sm:$0xf0] }
 0x27c   : > { %4370 = vmatmul.bf16.gmra.mxu2 %v7063_v36  ;;  %v8340_v51 = vld [vmem:[%s8735_s30 + $0x870] sm:$0xf0]  ;;  %v7084_v36 = vld [vmem:[%s8735_s30 + $0x86c] sm:$0xf0] }
 0x27d   : > { %4041 = vmatmul.bf16.gmra.mxu1 %v7059_v47 }
 0x27e   : > { %v4162_v32 = vpop.f32.mrf.mxu3 }
 0x27f   : > { %v9488_v2 = vadd.f32 %v4162_v32, %v3834_v52  ;;  %v4331_v43 = vpop.f32.mrf.mxu2  ;;  %v7083_v52 = vor.u32 %v8339_v49, %v7082_v28  ;;  %v7539_v32 = vor.u32 %v8452_v31, %v7538_v46 }
 0x280   : > { %v9490_v20 = vadd.f32 %v4331_v43, %v4003_v56  ;;  %v3675_v27 = vpop.f32.mrf.mxu0 }
 0x281   : > { %v3676_v60 = vadd.f32 %v9186_v15, %v3675_v27 }
 0x282   : > { %10845 = vst [vmem:[#allocation51_spill] sm:$0xff] %v9490_v20  ;;  %v4004_v9 = vpop.f32.mrf.mxu1 }
 0x283   : > { %v4005_v17 = vadd.f32 %v4004_v9, %v3676_v60  ;;  %v7091_v60 = vor.u32 %v8340_v51, %v7090_v25  ;;  %v7087_v9 = vor.u32 %v8336_v38, %v7084_v36  ;;  %v7110_v51 = vld [vmem:[%s8735_s30 + $0x888] sm:$0xf]  ;;  %v8346_v38 = vld [vmem:[%s8735_s30 + $0x8a0] sm:$0xf0]  ;;  %v7118_v36 = vld [vmem:[%s8735_s30 + $0x890] sm:$0xf] }
 0x284   : > { %v7111_v10 = vor.u32 %v8346_v38, %v7110_v51 }
 0x286   : > { %v4164_v47 = vpop.f32.mrf.mxu3 }
 0x287   : > { %v9503_v34 = vadd.f32 %v4164_v47, %v3836_v21  ;;  %v4333_v56 = vpop.f32.mrf.mxu2  ;;  %v7566_v47 = vld [vmem:[%s8735_s30 + $0xc10] sm:$0xf] }
 0x288   : > { %v9505_v43 = vadd.f32 %v4333_v56, %v4005_v17  ;;  %v3678_v27 = vpop.f32.mrf.mxu0  ;;  %v3839_v17 = vadd.f32 %v9186_v15, %v9129_v13  ;;  %v8459_v13 = vld [vmem:[%s8735_s30 + $0xc28] sm:$0xf0]  ;;  %v3841_v56 = vadd.f32 %v9186_v15, %v9148_v48  ;;  %v9536_v48 = vld [vmem:[%s10794_s2] ss:$0 sm:$0xff] }
 0x289   : > { %v3679_v20 = vadd.f32 %v9186_v15, %v3678_v27  ;;  %v7112_v27 = vld [vmem:[%s8735_s30 + $0x8a4] sm:$0xf0] }
 0x28a   : > { %10846 = vst [vmem:[#allocation52_spill] sm:$0xff] %v9505_v43  ;;  %v4007_v8 = vpop.f32.mrf.mxu1 }
 0x28b   : > { %v4008_v30 = vadd.f32 %v4007_v8, %v3679_v20  ;;  %3717 = vmatmul.bf16.gmra.mxu0 %v7083_v52  ;;  %4455 = vmatmul.bf16.gmra.mxu3 %v7539_v32  ;;  %v8347_v52 = vld [vmem:[%s8735_s30 + $0x8a8] sm:$0xf0] }
 0x28c   : > { %4375 = vmatmul.bf16.gmra.mxu2 %v7091_v60  ;;  %v8343_v32 = vld [vmem:[%s8735_s30 + $0x88c] sm:$0xf] }
 0x28d   : > { %4046 = vmatmul.bf16.gmra.mxu1 %v7087_v9 }
 0x28e   : > { %v4167_v28 = vpop.f32.mrf.mxu3 }
 0x28f   : > { %v9513_v8 = vadd.f32 %v4167_v28, %v3839_v17  ;;  %v4336_v20 = vpop.f32.mrf.mxu2  ;;  %v7567_v17 = vor.u32 %v8459_v13, %v7566_v47 }
 0x290   : > { %v9515_v49 = vadd.f32 %v4336_v20, %v4008_v30  ;;  %v3680_v25 = vpop.f32.mrf.mxu0 }
 0x291   : > { %v3681_v46 = vadd.f32 %v9186_v15, %v3680_v25  ;;  %v7119_v25 = vor.u32 %v8347_v52, %v7118_v36  ;;  %v7138_v52 = vld [vmem:[%s8735_s30 + $0x8c0] sm:$0xf] }
 0x292   : > { %10847 = vst [vmem:[#allocation53_spill] sm:$0xff] %v9515_v49  ;;  %v4009_v31 = vpop.f32.mrf.mxu1 }
 0x293   : > { %v4010_v21 = vadd.f32 %v4009_v31, %v3681_v46  ;;  %v7115_v46 = vor.u32 %v8343_v32, %v7112_v27  ;;  %v8353_v32 = vld [vmem:[%s8735_s30 + $0x8d8] sm:$0xf0]  ;;  %v7146_v27 = vld [vmem:[%s8735_s30 + $0x8c8] sm:$0xf] }
 0x296   : > { %v4169_v60 = vpop.f32.mrf.mxu3 }
 0x297   : > { %v9528_v9 = vadd.f32 %v4169_v60, %v3841_v56  ;;  %v4338_v30 = vpop.f32.mrf.mxu2  ;;  %v7594_v60 = vld [vmem:[%s8735_s30 + $0xc48] sm:$0xf] }
 0x298   : > { %v9530_v28 = vadd.f32 %v4338_v30, %v4010_v21  ;;  %v3683_v20 = vpop.f32.mrf.mxu0  ;;  %v8466_v30 = vld [vmem:[%s8735_s30 + $0xc60] sm:$0xf0] }
 0x299   : > { %v3684_v31 = vadd.f32 %v9186_v15, %v3683_v20  ;;  %v3844_v15 = vadd.f32 %v9536_v48, %v9153_v11  ;;  %v3846_v11 = vadd.f32 %v9536_v48, %v9166_v53  ;;  %v7140_v20 = vld [vmem:[%s8735_s30 + $0x8dc] sm:$0xf0]  ;;  %v8544_v53 = vld [vmem:[%s10793_s1 + $0xd0] sm:$0xff] }
 0x29a   : > { %10848 = vst [vmem:[#allocation54_spill] sm:$0xff] %v9530_v28  ;;  %v4012_v49 = vpop.f32.mrf.mxu1  ;;  %4511 = vmatpush.bf16.msrb.mxu3 %v8544_v53 }
 0x29b   : > { %v4013_v43 = vadd.f32 %v4012_v49, %v3684_v31  ;;  %3722 = vmatmul.bf16.gmra.mxu0 %v7111_v10  ;;  %4460 = vmatmul.bf16.gmra.mxu3 %v7567_v17  ;;  %v8354_v10 = vld [vmem:[%s8735_s30 + $0x8e0] sm:$0xf0]  ;;  %v7139_v31 = vor.u32 %v8353_v32, %v7138_v52 }
 0x29c   : > { %4380 = vmatmul.bf16.gmra.mxu2 %v7119_v25  ;;  %v8350_v17 = vld [vmem:[%s8735_s30 + $0x8c4] sm:$0xf] }
 0x29d   : > { %4051 = vmatmul.bf16.gmra.mxu1 %v7115_v46 }
 0x29e   : > { %v4172_v21 = vpop.f32.mrf.mxu3 }
 0x29f   : > { %v9540_v49 = vadd.f32 %v4172_v21, %v3844_v15  ;;  %v4341_v51 = vpop.f32.mrf.mxu2  ;;  %v7595_v15 = vor.u32 %v8466_v30, %v7594_v60 }
 0x2a0   : > { %v9542_v38 = vadd.f32 %v4341_v51, %v4013_v43  ;;  %v3685_v36 = vpop.f32.mrf.mxu0 }
 0x2a1   : > { %v3686_v47 = vadd.f32 %v9536_v48, %v3685_v36  ;;  %v7147_v36 = vor.u32 %v8354_v10, %v7146_v27 }
 0x2a2   : > { %10849 = vst [vmem:[#allocation55_spill] sm:$0xff] %v9542_v38  ;;  %v4014_v13 = vpop.f32.mrf.mxu1 }
 0x2a3   : > { %v4015_v56 = vadd.f32 %v4014_v13, %v3686_v47  ;;  %v7143_v47 = vor.u32 %v8350_v17, %v7140_v20  ;;  %v8360_v17 = vld [vmem:[%s8735_s30 + $0x910] sm:$0xf0]  ;;  %v8550_v20 = vld [vmem:[%s10793_s1 + $0x100] sm:$0xff] }
 0x2a4   : > { %4842 = vmatpush.bf16.msrb.mxu0 %v8550_v20 }
 0x2a6   : > { %v4174_v25 = vpop.f32.mrf.mxu3 }
 0x2a7   : > { %v9555_v46 = vadd.f32 %v4174_v25, %v3846_v11  ;;  %v4343_v43 = vpop.f32.mrf.mxu2  ;;  %v7166_v11 = vld [vmem:[%s8735_s30 + $0x8f8] sm:$0xf]  ;;  %v8558_v25 = vld [vmem:[%s10793_s1 + $0x140] sm:$0xff] }
 0x2a8   : > { %v9557_v21 = vadd.f32 %v4343_v43, %v4015_v56  ;;  %v3688_v51 = vpop.f32.mrf.mxu0  ;;  %v7174_v43 = vld [vmem:[%s8735_s30 + $0x900] sm:$0xf]  ;;  %5171 = vmatpush.bf16.msrb.mxu1 %v8558_v25  ;;  %v7167_v53 = vor.u32 %v8360_v17, %v7166_v11 }
 0x2a9   : > { %v3689_v13 = vadd.f32 %v9536_v48, %v3688_v51  ;;  %v7168_v51 = vld [vmem:[%s8735_s30 + $0x914] sm:$0xf0] }
 0x2aa   : > { %v4017_v38 = vpop.f32.mrf.mxu1 }
 0x2ab   : > { %v4018_v28 = vadd.f32 %v4017_v38, %v3689_v13  ;;  %3727 = vmatmul.bf16.gmra.mxu0 %v7139_v31  ;;  %4465 = vmatmul.bf16.gmra.mxu3 %v7595_v15  ;;  %v8473_v31 = vld [vmem:[%s8735_s30 + $0xc98] sm:$0xf0] }
 0x2ac   : > { %4385 = vmatmul.bf16.gmra.mxu2 %v7147_v36  ;;  %v8357_v15 = vld [vmem:[%s8735_s30 + $0x8fc] sm:$0xf] }
 0x2ad   : > { %4056 = vmatmul.bf16.gmra.mxu1 %v7143_v47 }
 0x2ae   : > { %v4426_v56 = vpop.f32.mrf.mxu3 }
 0x2af   : > { %v4346_v52 = vpop.f32.mrf.mxu2  ;;  %v9564_v38 = vadd.f32 %v4426_v56, %v9173_v44  ;;  %v7622_v44 = vld [vmem:[%s8735_s30 + $0xc80] sm:$0xf] }
 0x2b0   : > { %v9566_v32 = vadd.f32 %v4346_v52, %v4018_v28  ;;  %v3690_v27 = vpop.f32.mrf.mxu0  ;;  %v8361_v28 = vld [vmem:[%s8735_s30 + $0x918] sm:$0xf0]  ;;  %v7623_v56 = vor.u32 %v8473_v31, %v7622_v44  ;;  %v7194_v44 = vld [vmem:[%s8735_s30 + $0x930] sm:$0xf]  ;;  %v8367_v31 = vld [vmem:[%s8735_s30 + $0x948] sm:$0xf0] }
 0x2b1   : > { %10850 = vst [vmem:[#allocation56_spill] sm:$0xff] %v9564_v38  ;;  %v3691_v60 = vadd.f32 %v9536_v48, %v3690_v27 }
 0x2b2   : > { %10851 = vst [vmem:[#allocation57_spill] sm:$0xff] %v9566_v32  ;;  %v4019_v30 = vpop.f32.mrf.mxu1 }
 0x2b3   : > { %v4020_v10 = vadd.f32 %v4019_v30, %v3691_v60  ;;  %v7175_v60 = vor.u32 %v8361_v28, %v7174_v43  ;;  %v7171_v30 = vor.u32 %v8357_v15, %v7168_v51  ;;  %v7202_v28 = vld [vmem:[%s8735_s30 + $0x938] sm:$0xf]  ;;  %v8480_v51 = vld [vmem:[%s8735_s30 + $0xcd0] sm:$0xf0] }
 0x2b4   : > { %v7650_v15 = vld [vmem:[%s8735_s30 + $0xcb8] sm:$0xf] }
 0x2b6   : > { %v4428_v36 = vpop.f32.mrf.mxu3 }
 0x2b7   : > { %v4348_v47 = vpop.f32.mrf.mxu2  ;;  %v9584_v13 = vadd.f32 %v4428_v36, %v9193_v1  ;;  %v8368_v36 = vld [vmem:[%s8735_s30 + $0x950] sm:$0xf0] }
 0x2b8   : > { %v9586_v52 = vadd.f32 %v4348_v47, %v4020_v10  ;;  %v3693_v27 = vpop.f32.mrf.mxu0  ;;  %v8364_v47 = vld [vmem:[%s8735_s30 + $0x934] sm:$0xf] }
 0x2b9   : > { %v3694_v38 = vadd.f32 %v9536_v48, %v3693_v27 }
 0x2ba   : > { %v4022_v32 = vpop.f32.mrf.mxu1 }
 0x2bb   : > { %v4023_v20 = vadd.f32 %v4022_v32, %v3694_v38  ;;  %3732 = vmatmul.bf16.gmra.mxu0 %v7167_v53  ;;  %4470 = vmatmul.bf16.gmra.mxu3 %v7623_v56  ;;  %v7196_v53 = vld [vmem:[%s8735_s30 + $0x94c] sm:$0xf0] }
 0x2bc   : > { %4390 = vmatmul.bf16.gmra.mxu2 %v7175_v60  ;;  %v7195_v60 = vor.u32 %v8367_v31, %v7194_v44 }
 0x2bd   : > { %4061 = vmatmul.bf16.gmra.mxu1 %v7171_v30  ;;  %v7651_v30 = vor.u32 %v8480_v51, %v7650_v15 }
 0x2be   : > { %v4431_v1 = vpop.f32.mrf.mxu3 }
 0x2bf   : > { %v4351_v11 = vpop.f32.mrf.mxu2  ;;  %v9590_v10 = vadd.f32 %v4431_v1, %v9200_v39 }
 0x2c0   : > { %v9592_v17 = vadd.f32 %v4351_v11, %v4023_v20  ;;  %v3695_v25 = vpop.f32.mrf.mxu0  ;;  %v7203_v11 = vor.u32 %v8368_v36, %v7202_v28 }
 0x2c1   : > { %10852 = vst [vmem:[#allocation58_spill] sm:$0xff] %v9590_v10  ;;  %v3696_v43 = vadd.f32 %v9536_v48, %v3695_v25  ;;  %v7199_v25 = vor.u32 %v8364_v47, %v7196_v53  ;;  %v7222_v53 = vld [vmem:[%s8735_s30 + $0x968] sm:$0xf] }
 0x2c2   : > { %v4024_v38 = vpop.f32.mrf.mxu1 }
 0x2c3   : > { %v4025_v32 = vadd.f32 %v4024_v38, %v3696_v43 }
 0x2c6   : > { %v4433_v56 = vpop.f32.mrf.mxu3 }
 0x2c7   : > { %v4353_v27 = vpop.f32.mrf.mxu2  ;;  %v9604_v39 = vadd.f32 %v4433_v56, %v9215_v45  ;;  %v8543_v45 = vld [vmem:[%s10793_s1 + $0xc8] sm:$0xff]  ;;  %v8374_v56 = vld [vmem:[%s8735_s30 + $0x980] sm:$0xf0] }
 0x2c8   : > { %v9606_v20 = vadd.f32 %v4353_v27, %v4025_v32  ;;  %v3698_v1 = vpop.f32.mrf.mxu0  ;;  %4512 = vmatpush.bf16.msrb.mxu3 %v8543_v45  ;;  %v7230_v27 = vld [vmem:[%s8735_s30 + $0x970] sm:$0xf] }
 0x2c9   : > { %10853 = vst [vmem:[#allocation59_spill] sm:$0xff] %v9604_v39  ;;  %v3699_v43 = vadd.f32 %v9536_v48, %v3698_v1  ;;  %v8375_v1 = vld [vmem:[%s8735_s30 + $0x988] sm:$0xf0] }
 0x2ca   : > { %v4027_v38 = vpop.f32.mrf.mxu1 }
 0x2cb   : > { %v4028_v10 = vadd.f32 %v4027_v38, %v3699_v43  ;;  %3737 = vmatmul.bf16.gmra.mxu0 %v7195_v60  ;;  %4475 = vmatmul.bf16.gmra.mxu3 %v7651_v30  ;;  %v7678_v60 = vld [vmem:[%s8735_s30 + $0xcf0] sm:$0xf]  ;;  %v8487_v30 = vld [vmem:[%s8735_s30 + $0xd08] sm:$0xf0] }
 0x2cc   : > { %4395 = vmatmul.bf16.gmra.mxu2 %v7203_v11  ;;  %v8371_v11 = vld [vmem:[%s8735_s30 + $0x96c] sm:$0xf]  ;;  %v7679_v45 = vor.u32 %v8487_v30, %v7678_v60 }
 0x2cd   : > { %4066 = vmatmul.bf16.gmra.mxu1 %v7199_v25  ;;  %v7224_v25 = vld [vmem:[%s8735_s30 + $0x984] sm:$0xf0] }
 0x2ce   : > { %v4436_v32 = vpop.f32.mrf.mxu3 }
 0x2cf   : > { %v4356_v44 = vpop.f32.mrf.mxu2  ;;  %v9613_v31 = vadd.f32 %v4436_v32, %v9222_v23 }
 0x2d0   : > { %v9615_v28 = vadd.f32 %v4356_v44, %v4028_v10  ;;  %v3700_v15 = vpop.f32.mrf.mxu0  ;;  %v7223_v10 = vor.u32 %v8374_v56, %v7222_v53 }
 0x2d1   : > { %10854 = vst [vmem:[#allocation60_spill] sm:$0xff] %v9613_v31  ;;  %v3701_v51 = vadd.f32 %v9536_v48, %v3700_v15  ;;  %v7231_v15 = vor.u32 %v8375_v1, %v7230_v27  ;;  %v7250_v1 = vld [vmem:[%s8735_s30 + $0x9a0] sm:$0xf] }
 0x2d2   : > { %v4029_v36 = vpop.f32.mrf.mxu1 }
 0x2d3   : > { %v4030_v47 = vadd.f32 %v4029_v36, %v3701_v51  ;;  %v7227_v51 = vor.u32 %v8371_v11, %v7224_v25  ;;  %v8381_v11 = vld [vmem:[%s8735_s30 + $0x9b8] sm:$0xf0]  ;;  %v7258_v25 = vld [vmem:[%s8735_s30 + $0x9a8] sm:$0xf] }
 0x2d6   : > { %v4438_v43 = vpop.f32.mrf.mxu3 }
 0x2d7   : > { %v4358_v38 = vpop.f32.mrf.mxu2  ;;  %v9627_v23 = vadd.f32 %v4438_v43, %v9237_v7  ;;  %v7706_v43 = vld [vmem:[%s8735_s30 + $0xd28] sm:$0xf] }
 0x2d8   : > { %v9629_v32 = vadd.f32 %v4358_v38, %v4030_v47  ;;  %v3703_v44 = vpop.f32.mrf.mxu0  ;;  %v8494_v38 = vld [vmem:[%s8735_s30 + $0xd40] sm:$0xf0] }
 0x2d9   : > { %10855 = vst [vmem:[#allocation61_spill] sm:$0xff] %v9627_v23  ;;  %v3704_v36 = vadd.f32 %v9536_v48, %v3703_v44  ;;  %v7252_v44 = vld [vmem:[%s8735_s30 + $0x9bc] sm:$0xf0] }
 0x2da   : > { %v4032_v31 = vpop.f32.mrf.mxu1 }
 0x2db   : > { %v4033_v39 = vadd.f32 %v4032_v31, %v3704_v36  ;;  %3742 = vmatmul.bf16.gmra.mxu0 %v7223_v10  ;;  %4480 = vmatmul.bf16.gmra.mxu3 %v7679_v45  ;;  %v8382_v10 = vld [vmem:[%s8735_s30 + $0x9c0] sm:$0xf0]  ;;  %v7707_v36 = vor.u32 %v8494_v38, %v7706_v43 }
 0x2dc   : > { %4400 = vmatmul.bf16.gmra.mxu2 %v7231_v15  ;;  %v8378_v45 = vld [vmem:[%s8735_s30 + $0x9a4] sm:$0xf] }
 0x2dd   : > { %4071 = vmatmul.bf16.gmra.mxu1 %v7227_v51 }
 0x2de   : > { %v4441_v7 = vpop.f32.mrf.mxu3 }
 0x2df   : > { %v4361_v47 = vpop.f32.mrf.mxu2  ;;  %v9633_v53 = vadd.f32 %v4441_v7, %v9244_v5 }
 0x2e0   : > { %v9635_v56 = vadd.f32 %v4361_v47, %v4033_v39  ;;  %v3705_v27 = vpop.f32.mrf.mxu0  ;;  %v7251_v39 = vor.u32 %v8381_v11, %v7250_v1 }
 0x2e1   : > { %10856 = vst [vmem:[#allocation62_spill] sm:$0xff] %v9633_v53  ;;  %v3706_v60 = vadd.f32 %v9536_v48, %v3705_v27  ;;  %v7259_v27 = vor.u32 %v8382_v10, %v7258_v25 }
 0x2e2   : > { %v4034_v31 = vpop.f32.mrf.mxu1 }
 0x2e3   : > { %v4035_v30 = vadd.f32 %v4034_v31, %v3706_v60  ;;  %v7255_v60 = vor.u32 %v8378_v45, %v7252_v44  ;;  %v7278_v45 = vld [vmem:[%s8735_s30 + $0x9d8] sm:$0xf]  ;;  %v8388_v44 = vld [vmem:[%s8735_s30 + $0x9f0] sm:$0xf0] }
 0x2e6   : > { %v4443_v15 = vpop.f32.mrf.mxu3 }
 0x2e7   : > { %v4363_v51 = vpop.f32.mrf.mxu2  ;;  %v9647_v5 = vadd.f32 %v4443_v15, %v9259_v22  ;;  %v8542_v22 = vld [vmem:[%s10793_s1 + $0xc0] sm:$0xff] }
 0x2e8   : > { %v9649_v7 = vadd.f32 %v4363_v51, %v4035_v30  ;;  %v3708_v47 = vpop.f32.mrf.mxu0  ;;  %4513 = vmatpush.bf16.msrb.mxu3 %v8542_v22  ;;  %v7286_v15 = vld [vmem:[%s8735_s30 + $0x9e0] sm:$0xf] }
 0x2e9   : > { %10857 = vst [vmem:[#allocation63_spill] sm:$0xff] %v9647_v5  ;;  %v3709_v31 = vadd.f32 %v9536_v48, %v3708_v47  ;;  %v7734_v51 = vld [vmem:[%s8735_s30 + $0xd60] sm:$0xf]  ;;  %v8385_v47 = vld [vmem:[%s8735_s30 + $0x9dc] sm:$0xf] }
 0x2ea   : > { %v4037_v53 = vpop.f32.mrf.mxu1 }
 0x2eb   : > { %v4038_v23 = vadd.f32 %v4037_v53, %v3709_v31  ;;  %3747 = vmatmul.bf16.gmra.mxu0 %v7251_v39  ;;  %4485 = vmatmul.bf16.gmra.mxu3 %v7707_v36  ;;  %v8501_v39 = vld [vmem:[%s8735_s30 + $0xd78] sm:$0xf0] }
 0x2ec   : > { %4405 = vmatmul.bf16.gmra.mxu2 %v7259_v27  ;;  %v8389_v36 = vld [vmem:[%s8735_s30 + $0x9f8] sm:$0xf0]  ;;  %v7280_v27 = vld [vmem:[%s8735_s30 + $0x9f4] sm:$0xf0]  ;;  %v7735_v22 = vor.u32 %v8501_v39, %v7734_v51 }
 0x2ed   : > { %4076 = vmatmul.bf16.gmra.mxu1 %v7255_v60 }
 0x2ee   : > { %v4446_v30 = vpop.f32.mrf.mxu3 }
 0x2ef   : > { %v4366_v1 = vpop.f32.mrf.mxu2  ;;  %v9656_v53 = vadd.f32 %v4446_v30, %v9266_v24 }
 0x2f0   : > { %v9658_v11 = vadd.f32 %v4366_v1, %v4038_v23  ;;  %v3710_v25 = vpop.f32.mrf.mxu0  ;;  %v7279_v23 = vor.u32 %v8388_v44, %v7278_v45 }
 0x2f1   : > { %10858 = vst [vmem:[#allocation64_spill] sm:$0xff] %v9656_v53  ;;  %v3711_v43 = vadd.f32 %v9536_v48, %v3710_v25  ;;  %v7287_v25 = vor.u32 %v8389_v36, %v7286_v15  ;;  %v7306_v36 = vld [vmem:[%s8735_s30 + $0xa10] sm:$0xf] }
 0x2f2   : > { %v4039_v38 = vpop.f32.mrf.mxu1 }
 0x2f3   : > { %v4040_v10 = vadd.f32 %v4039_v38, %v3711_v43  ;;  %v7283_v43 = vor.u32 %v8385_v47, %v7280_v27  ;;  %v8395_v47 = vld [vmem:[%s8735_s30 + $0xa28] sm:$0xf0]  ;;  %v7314_v27 = vld [vmem:[%s8735_s30 + $0xa18] sm:$0xf] }
 0x2f6   : > { %v4448_v60 = vpop.f32.mrf.mxu3 }
 0x2f7   : > { %v4368_v31 = vpop.f32.mrf.mxu2  ;;  %v9670_v24 = vadd.f32 %v4448_v60, %v9287_v3  ;;  %v7762_v60 = vld [vmem:[%s8735_s30 + $0xd98] sm:$0xf] }
 0x2f8   : > { %v9672_v30 = vadd.f32 %v4368_v31, %v4040_v10  ;;  %v3713_v1 = vpop.f32.mrf.mxu0  ;;  %v8508_v31 = vld [vmem:[%s8735_s30 + $0xdb0] sm:$0xf0] }
 0x2f9   : > { %10859 = vst [vmem:[#allocation65_spill] sm:$0xff] %v9670_v24  ;;  %v3714_v38 = vadd.f32 %v9536_v48, %v3713_v1  ;;  %v7308_v1 = vld [vmem:[%s8735_s30 + $0xa2c] sm:$0xf0] }
 0x2fa   : > { %v4042_v53 = vpop.f32.mrf.mxu1 }
 0x2fb   : > { %v4043_v5 = vadd.f32 %v4042_v53, %v3714_v38  ;;  %3752 = vmatmul.bf16.gmra.mxu0 %v7279_v23  ;;  %4490 = vmatmul.bf16.gmra.mxu3 %v7735_v22  ;;  %v8396_v23 = vld [vmem:[%s8735_s30 + $0xa30] sm:$0xf0]  ;;  %v7763_v38 = vor.u32 %v8508_v31, %v7762_v60 }
 0x2fc   : > { %4410 = vmatmul.bf16.gmra.mxu2 %v7287_v25  ;;  %v8392_v22 = vld [vmem:[%s8735_s30 + $0xa14] sm:$0xf] }
 0x2fd   : > { %4081 = vmatmul.bf16.gmra.mxu1 %v7283_v43 }
 0x2fe   : > { %v4451_v3 = vpop.f32.mrf.mxu3 }
 0x2ff   : > { %v4371_v10 = vpop.f32.mrf.mxu2  ;;  %v9676_v45 = vadd.f32 %v4451_v3, %v9294_v61 }
 0x300   : > { %v9678_v44 = vadd.f32 %v4371_v10, %v4043_v5  ;;  %v3715_v15 = vpop.f32.mrf.mxu0  ;;  %v7307_v5 = vor.u32 %v8395_v47, %v7306_v36 }
 0x301   : > { %10860 = vst [vmem:[#allocation66_spill] sm:$0xff] %v9676_v45  ;;  %v3716_v51 = vadd.f32 %v9536_v48, %v3715_v15  ;;  %v7315_v15 = vor.u32 %v8396_v23, %v7314_v27  ;;  %v7334_v23 = vld [vmem:[%s8735_s30 + $0xa48] sm:$0xf] }
 0x302   : > { %v4044_v53 = vpop.f32.mrf.mxu1 }
 0x303   : > { %v4045_v39 = vadd.f32 %v4044_v53, %v3716_v51  ;;  %v7311_v51 = vor.u32 %v8392_v22, %v7308_v1  ;;  %v8402_v22 = vld [vmem:[%s8735_s30 + $0xa60] sm:$0xf0]  ;;  %v7342_v1 = vld [vmem:[%s8735_s30 + $0xa50] sm:$0xf] }
 0x306   : > { %v4453_v25 = vpop.f32.mrf.mxu3 }
 0x307   : > { %v4373_v43 = vpop.f32.mrf.mxu2  ;;  %v9690_v61 = vadd.f32 %v4453_v25, %v9309_v14  ;;  %v7790_v25 = vld [vmem:[%s8735_s30 + $0xdd0] sm:$0xf] }
 0x308   : > { %v9692_v3 = vadd.f32 %v4373_v43, %v4045_v39  ;;  %v3718_v10 = vpop.f32.mrf.mxu0  ;;  %v8515_v43 = vld [vmem:[%s8735_s30 + $0xde8] sm:$0xf0] }
 0x309   : > { %10861 = vst [vmem:[#allocation67_spill] sm:$0xff] %v9690_v61  ;;  %v3719_v53 = vadd.f32 %v9536_v48, %v3718_v10  ;;  %v7336_v10 = vld [vmem:[%s8735_s30 + $0xa64] sm:$0xf0] }
 0x30a   : > { %v4047_v45 = vpop.f32.mrf.mxu1 }
 0x30b   : > { %v4048_v24 = vadd.f32 %v4047_v45, %v3719_v53  ;;  %3757 = vmatmul.bf16.gmra.mxu0 %v7307_v5  ;;  %4495 = vmatmul.bf16.gmra.mxu3 %v7763_v38  ;;  %v8403_v5 = vld [vmem:[%s8735_s30 + $0xa68] sm:$0xf0]  ;;  %v7791_v53 = vor.u32 %v8515_v43, %v7790_v25 }
 0x30c   : > { %4415 = vmatmul.bf16.gmra.mxu2 %v7315_v15  ;;  %v8399_v38 = vld [vmem:[%s8735_s30 + $0xa4c] sm:$0xf] }
 0x30d   : > { %4086 = vmatmul.bf16.gmra.mxu1 %v7311_v51 }
 0x30e   : > { %v4456_v14 = vpop.f32.mrf.mxu3 }
 0x30f   : > { %v4376_v39 = vpop.f32.mrf.mxu2  ;;  %v9696_v36 = vadd.f32 %v4456_v14, %v9319_v63 }
 0x310   : > { %v9698_v47 = vadd.f32 %v4376_v39, %v4048_v24  ;;  %v3720_v27 = vpop.f32.mrf.mxu0  ;;  %v7335_v24 = vor.u32 %v8402_v22, %v7334_v23 }
 0x311   : > { %10862 = vst [vmem:[#allocation68_spill] sm:$0xff] %v9696_v36  ;;  %v3721_v60 = vadd.f32 %v9536_v48, %v3720_v27  ;;  %v7343_v27 = vor.u32 %v8403_v5, %v7342_v1  ;;  %v8071_v5 = vld [vmem:[%s8735_s30 + $0xc] sm:$0xf] }
 0x312   : > { %v4049_v45 = vpop.f32.mrf.mxu1 }
 0x313   : > { %v4050_v31 = vadd.f32 %v4049_v45, %v3721_v60  ;;  %v7339_v60 = vor.u32 %v8399_v38, %v7336_v10  ;;  %v6028_v38 = vld [vmem:[%s8735_s30 + $0x24] sm:$0xf0]  ;;  %v6034_v10 = vld [vmem:[%s8735_s30 + $0x10] sm:$0xf] }
 0x316   : > { %v4458_v15 = vpop.f32.mrf.mxu3 }
 0x317   : > { %v4378_v51 = vpop.f32.mrf.mxu2  ;;  %v9710_v63 = vadd.f32 %v4458_v15, %v9334_v19  ;;  %v8075_v15 = vld [vmem:[%s8735_s30 + $0x28] sm:$0xf0] }
 0x318   : > { %v9712_v14 = vadd.f32 %v4378_v51, %v4050_v31  ;;  %v3723_v39 = vpop.f32.mrf.mxu0  ;;  %v6042_v51 = vld [vmem:[%s8735_s30 + $0x18] sm:$0xf] }
 0x319   : > { %10863 = vst [vmem:[#allocation69_spill] sm:$0xff] %v9710_v63  ;;  %v3724_v45 = vadd.f32 %v9536_v48, %v3723_v39  ;;  %v6036_v39 = vld [vmem:[%s8735_s30 + $0x2c] sm:$0xf0] }
 0x31a   : > { %v4052_v36 = vpop.f32.mrf.mxu1 }
 0x31b   : > { %v4053_v61 = vadd.f32 %v4052_v36, %v3724_v45  ;;  %3762 = vmatmul.bf16.gmra.mxu0 %v7335_v24  ;;  %4500 = vmatmul.bf16.gmra.mxu3 %v7791_v53  ;;  %v8076_v24 = vld [vmem:[%s8735_s30 + $0x30] sm:$0xf0]  ;;  %v6035_v45 = vor.u32 %v8075_v15, %v6034_v10 }
 0x31c   : > { %4420 = vmatmul.bf16.gmra.mxu2 %v7343_v27  ;;  %v8072_v53 = vld [vmem:[%s8735_s30 + $0x14] sm:$0xf] }
 0x31d   : > { %4091 = vmatmul.bf16.gmra.mxu1 %v7339_v60 }
 0x31e   : > { %v4461_v19 = vpop.f32.mrf.mxu3 }
 0x31f   : > { %v4381_v31 = vpop.f32.mrf.mxu2  ;;  %v9716_v23 = vadd.f32 %v4461_v19, %v9341_v41 }
 0x320   : > { %v9718_v22 = vadd.f32 %v4381_v31, %v4053_v61  ;;  %v3725_v1 = vpop.f32.mrf.mxu0  ;;  %v6031_v61 = vor.u32 %v8071_v5, %v6028_v38 }
 0x321   : > { %10864 = vst [vmem:[#allocation70_spill] sm:$0xff] %v9716_v23  ;;  %v3726_v25 = vadd.f32 %v9536_v48, %v3725_v1  ;;  %v6043_v1 = vor.u32 %v8076_v24, %v6042_v51  ;;  %v8078_v24 = vld [vmem:[%s8735_s30 + $0x44] sm:$0xf] }
 0x322   : > { %v4054_v36 = vpop.f32.mrf.mxu1 }
 0x323   : > { %v4055_v43 = vadd.f32 %v4054_v36, %v3726_v25  ;;  %v6039_v25 = vor.u32 %v8072_v53, %v6036_v39  ;;  %v6056_v53 = vld [vmem:[%s8735_s30 + $0x5c] sm:$0xf0]  ;;  %v6062_v39 = vld [vmem:[%s8735_s30 + $0x48] sm:$0xf] }
 0x326   : > { %v4463_v27 = vpop.f32.mrf.mxu3 }
 0x327   : > { %v4383_v60 = vpop.f32.mrf.mxu2  ;;  %v9730_v41 = vadd.f32 %v4463_v27, %v9356_v29  ;;  %v8082_v27 = vld [vmem:[%s8735_s30 + $0x60] sm:$0xf0] }
 0x328   : > { %v9732_v19 = vadd.f32 %v4383_v60, %v4055_v43  ;;  %v3728_v31 = vpop.f32.mrf.mxu0  ;;  %v6070_v60 = vld [vmem:[%s8735_s30 + $0x50] sm:$0xf] }
 0x329   : > { %10865 = vst [vmem:[#allocation71_spill] sm:$0xff] %v9730_v41  ;;  %v3729_v36 = vadd.f32 %v9536_v48, %v3728_v31  ;;  %v6064_v31 = vld [vmem:[%s8735_s30 + $0x64] sm:$0xf0] }
 0x32a   : > { %v4057_v23 = vpop.f32.mrf.mxu1 }
 0x32b   : > { %v4058_v63 = vadd.f32 %v4057_v23, %v3729_v36  ;;  %4514 = vmatmul.bf16.vlgmr.msrb.gmra.mxu3 %v6031_v61  ;;  %4843 = vmatmul.bf16.vlgmr.msrb.gmra.mxu0 %v6035_v45  ;;  %v8083_v61 = vld [vmem:[%s8735_s30 + $0x68] sm:$0xf0]  ;;  %v6063_v36 = vor.u32 %v8082_v27, %v6062_v39 }
 0x32c   : > { %8004 = vmatmul.msk.bf16.vlgmr.msrb.gmra.mxu2 %vm3326_vm0, %v6043_v1  ;;  %v8079_v45 = vld [vmem:[%s8735_s30 + $0x4c] sm:$0xf] }
 0x32d   : > { %5172 = vmatmul.bf16.vlgmr.msrb.gmra.mxu1 %v6039_v25 }
 0x32e   : > { %v4466_v29 = vpop.f32.mrf.mxu3 }
 0x32f   : > { %v4386_v43 = vpop.f32.mrf.mxu2  ;;  %v9737_v5 = vadd.f32 %v4466_v29, %v9366_v62 }
 0x330   : > { %v9739_v38 = vadd.f32 %v4386_v43, %v4058_v63  ;;  %v3730_v10 = vpop.f32.mrf.mxu0  ;;  %v6059_v63 = vor.u32 %v8078_v24, %v6056_v53 }
 0x331   : > { %10866 = vst [vmem:[#allocation72_spill] sm:$0xff] %v9737_v5  ;;  %v3731_v23 = vadd.f32 %v9536_v48, %v3730_v10  ;;  %v6071_v10 = vor.u32 %v8083_v61, %v6070_v60  ;;  %v8085_v61 = vld [vmem:[%s8735_s30 + $0x7c] sm:$0xf] }
 0x332   : > { %v4059_v15 = vpop.f32.mrf.mxu1 }
 0x333   : > { %v4060_v51 = vadd.f32 %v4059_v15, %v3731_v23  ;;  %v6067_v23 = vor.u32 %v8079_v45, %v6064_v31  ;;  %v6084_v45 = vld [vmem:[%s8735_s30 + $0x94] sm:$0xf0]  ;;  %v6090_v31 = vld [vmem:[%s8735_s30 + $0x80] sm:$0xf] }
 0x336   : > { %v4468_v1 = vpop.f32.mrf.mxu3 }
 0x337   : > { %v4388_v25 = vpop.f32.mrf.mxu2  ;;  %v9751_v62 = vadd.f32 %v4468_v1, %v9381_v16  ;;  %v8089_v1 = vld [vmem:[%s8735_s30 + $0x98] sm:$0xf0] }
 0x338   : > { %v9753_v29 = vadd.f32 %v4388_v25, %v4060_v51  ;;  %v3733_v43 = vpop.f32.mrf.mxu0  ;;  %v6098_v25 = vld [vmem:[%s8735_s30 + $0x88] sm:$0xf] }
 0x339   : > { %10867 = vst [vmem:[#allocation73_spill] sm:$0xff] %v9751_v62  ;;  %v3734_v15 = vadd.f32 %v9536_v48, %v3733_v43  ;;  %v6092_v43 = vld [vmem:[%s8735_s30 + $0x9c] sm:$0xf0] }
 0x33a   : > { %v4062_v5 = vpop.f32.mrf.mxu1 }
 0x33b   : > { %v4063_v41 = vadd.f32 %v4062_v5, %v3734_v15  ;;  %4519 = vmatmul.bf16.gmra.mxu3 %v6059_v63  ;;  %4848 = vmatmul.bf16.gmra.mxu0 %v6063_v36  ;;  %v8090_v63 = vld [vmem:[%s8735_s30 + $0xa0] sm:$0xf0]  ;;  %v6091_v15 = vor.u32 %v8089_v1, %v6090_v31 }
 0x33c   : > { %8005 = vmatmul.msk.bf16.gmra.mxu2 %vm3326_vm0, %v6071_v10  ;;  %v8086_v36 = vld [vmem:[%s8735_s30 + $0x84] sm:$0xf] }
 0x33d   : > { %5177 = vmatmul.bf16.gmra.mxu1 %v6067_v23 }
 0x33e   : > { %v4471_v16 = vpop.f32.mrf.mxu3 }
 0x33f   : > { %v4391_v51 = vpop.f32.mrf.mxu2  ;;  %v9758_v24 = vadd.f32 %v4471_v16, %v9388_v54 }
 0x340   : > { %v9760_v53 = vadd.f32 %v4391_v51, %v4063_v41  ;;  %v3735_v39 = vpop.f32.mrf.mxu0  ;;  %v6087_v41 = vor.u32 %v8085_v61, %v6084_v45 }
 0x341   : > { %10868 = vst [vmem:[#allocation74_spill] sm:$0xff] %v9758_v24  ;;  %v3736_v5 = vadd.f32 %v9536_v48, %v3735_v39  ;;  %v6099_v39 = vor.u32 %v8090_v63, %v6098_v25  ;;  %v8092_v63 = vld [vmem:[%s8735_s30 + $0xb4] sm:$0xf] }
 0x342   : > { %v4064_v27 = vpop.f32.mrf.mxu1 }
 0x343   : > { %v4065_v60 = vadd.f32 %v4064_v27, %v3736_v5  ;;  %v6095_v5 = vor.u32 %v8086_v36, %v6092_v43  ;;  %v6112_v36 = vld [vmem:[%s8735_s30 + $0xcc] sm:$0xf0]  ;;  %v6118_v43 = vld [vmem:[%s8735_s30 + $0xb8] sm:$0xf] }
 0x346   : > { %v4473_v10 = vpop.f32.mrf.mxu3 }
 0x347   : > { %v4393_v23 = vpop.f32.mrf.mxu2  ;;  %v9772_v54 = vadd.f32 %v4473_v10, %v9403_v58  ;;  %v8096_v10 = vld [vmem:[%s8735_s30 + $0xd0] sm:$0xf0] }
 0x348   : > { %v9774_v16 = vadd.f32 %v4393_v23, %v4065_v60  ;;  %v3738_v51 = vpop.f32.mrf.mxu0  ;;  %v6126_v23 = vld [vmem:[%s8735_s30 + $0xc0] sm:$0xf] }
 0x349   : > { %10869 = vst [vmem:[#allocation75_spill] sm:$0xff] %v9772_v54  ;;  %v3739_v27 = vadd.f32 %v9536_v48, %v3738_v51  ;;  %v6120_v51 = vld [vmem:[%s8735_s30 + $0xd4] sm:$0xf0] }
 0x34a   : > { %v4067_v24 = vpop.f32.mrf.mxu1 }
 0x34b   : > { %v4068_v62 = vadd.f32 %v4067_v24, %v3739_v27  ;;  %4524 = vmatmul.bf16.gmra.mxu3 %v6087_v41  ;;  %4853 = vmatmul.bf16.gmra.mxu0 %v6091_v15  ;;  %v8097_v41 = vld [vmem:[%s8735_s30 + $0xd8] sm:$0xf0]  ;;  %v6119_v27 = vor.u32 %v8096_v10, %v6118_v43 }
 0x34c   : > { %8006 = vmatmul.msk.bf16.gmra.mxu2 %vm3326_vm0, %v6099_v39  ;;  %v8093_v15 = vld [vmem:[%s8735_s30 + $0xbc] sm:$0xf] }
 0x34d   : > { %5182 = vmatmul.bf16.gmra.mxu1 %v6095_v5 }
 0x34e   : > { %v4476_v58 = vpop.f32.mrf.mxu3 }
 0x34f   : > { %v4396_v60 = vpop.f32.mrf.mxu2  ;;  %v9779_v61 = vadd.f32 %v4476_v58, %v9413_v50 }
 0x350   : > { %v9781_v45 = vadd.f32 %v4396_v60, %v4068_v62  ;;  %v3740_v31 = vpop.f32.mrf.mxu0  ;;  %v6115_v62 = vor.u32 %v8092_v63, %v6112_v36 }
 0x351   : > { %10870 = vst [vmem:[#allocation76_spill] sm:$0xff] %v9779_v61  ;;  %v3741_v24 = vadd.f32 %v9536_v48, %v3740_v31  ;;  %v6127_v31 = vor.u32 %v8097_v41, %v6126_v23  ;;  %v8099_v41 = vld [vmem:[%s8735_s30 + $0xec] sm:$0xf] }
 0x352   : > { %v4069_v1 = vpop.f32.mrf.mxu1 }
 0x353   : > { %v4070_v25 = vadd.f32 %v4069_v1, %v3741_v24  ;;  %v6123_v24 = vor.u32 %v8093_v15, %v6120_v51  ;;  %v6140_v15 = vld [vmem:[%s8735_s30 + $0x104] sm:$0xf0]  ;;  %v6146_v51 = vld [vmem:[%s8735_s30 + $0xf0] sm:$0xf] }
 0x356   : > { %v4478_v39 = vpop.f32.mrf.mxu3 }
 0x357   : > { %v4398_v5 = vpop.f32.mrf.mxu2  ;;  %v9793_v50 = vadd.f32 %v4478_v39, %v9434_v0  ;;  %v8103_v39 = vld [vmem:[%s8735_s30 + $0x108] sm:$0xf0] }
 0x358   : > { %v9795_v58 = vadd.f32 %v4398_v5, %v4070_v25  ;;  %v3743_v60 = vpop.f32.mrf.mxu0  ;;  %v6154_v5 = vld [vmem:[%s8735_s30 + $0xf8] sm:$0xf] }
 0x359   : > { %10871 = vst [vmem:[#allocation77_spill] sm:$0xff] %v9793_v50  ;;  %v3744_v1 = vadd.f32 %v9536_v48, %v3743_v60  ;;  %v6148_v60 = vld [vmem:[%s8735_s30 + $0x10c] sm:$0xf0] }
 0x35a   : > { %v4072_v61 = vpop.f32.mrf.mxu1 }
 0x35b   : > { %v4073_v54 = vadd.f32 %v4072_v61, %v3744_v1  ;;  %4529 = vmatmul.bf16.gmra.mxu3 %v6115_v62  ;;  %4858 = vmatmul.bf16.gmra.mxu0 %v6119_v27  ;;  %v8104_v62 = vld [vmem:[%s8735_s30 + $0x110] sm:$0xf0]  ;;  %v6147_v1 = vor.u32 %v8103_v39, %v6146_v51 }
 0x35c   : > { %8007 = vmatmul.msk.bf16.gmra.mxu2 %vm3326_vm0, %v6127_v31  ;;  %v8100_v27 = vld [vmem:[%s8735_s30 + $0xf4] sm:$0xf] }
 0x35d   : > { %5187 = vmatmul.bf16.gmra.mxu1 %v6123_v24 }
 0x35e   : > { %v4481_v0 = vpop.f32.mrf.mxu3 }
 0x35f   : > { %v4401_v25 = vpop.f32.mrf.mxu2  ;;  %v9800_v63 = vadd.f32 %v4481_v0, %v9441_v55 }
 0x360   : > { %v9802_v36 = vadd.f32 %v4401_v25, %v4073_v54  ;;  %v3745_v43 = vpop.f32.mrf.mxu0  ;;  %v6143_v54 = vor.u32 %v8099_v41, %v6140_v15 }
 0x361   : > { %10872 = vst [vmem:[#allocation78_spill] sm:$0xff] %v9800_v63  ;;  %v3746_v61 = vadd.f32 %v9536_v48, %v3745_v43  ;;  %v6155_v43 = vor.u32 %v8104_v62, %v6154_v5  ;;  %v8106_v62 = vld [vmem:[%s8735_s30 + $0x124] sm:$0xf] }
 0x362   : > { %v4074_v10 = vpop.f32.mrf.mxu1 }
 0x363   : > { %v4075_v23 = vadd.f32 %v4074_v10, %v3746_v61  ;;  %v6151_v61 = vor.u32 %v8100_v27, %v6148_v60  ;;  %v6168_v27 = vld [vmem:[%s8735_s30 + $0x13c] sm:$0xf0]  ;;  %v6174_v60 = vld [vmem:[%s8735_s30 + $0x128] sm:$0xf] }
 0x366   : > { %v4483_v31 = vpop.f32.mrf.mxu3 }
 0x367   : > { %v4403_v24 = vpop.f32.mrf.mxu2  ;;  %v9814_v55 = vadd.f32 %v4483_v31, %v9456_v35  ;;  %v8110_v31 = vld [vmem:[%s8735_s30 + $0x140] sm:$0xf0] }
 0x368   : > { %v9816_v0 = vadd.f32 %v4403_v24, %v4075_v23  ;;  %v3748_v25 = vpop.f32.mrf.mxu0  ;;  %v6182_v24 = vld [vmem:[%s8735_s30 + $0x130] sm:$0xf] }
 0x369   : > { %10873 = vst [vmem:[#allocation79_spill] sm:$0xff] %v9814_v55  ;;  %v3749_v10 = vadd.f32 %v9536_v48, %v3748_v25  ;;  %v6176_v25 = vld [vmem:[%s8735_s30 + $0x144] sm:$0xf0] }
 0x36a   : > { %v4077_v63 = vpop.f32.mrf.mxu1 }
 0x36b   : > { %v4078_v50 = vadd.f32 %v4077_v63, %v3749_v10  ;;  %4534 = vmatmul.bf16.gmra.mxu3 %v6143_v54  ;;  %4863 = vmatmul.bf16.gmra.mxu0 %v6147_v1  ;;  %v8111_v54 = vld [vmem:[%s8735_s30 + $0x148] sm:$0xf0]  ;;  %v6175_v10 = vor.u32 %v8110_v31, %v6174_v60 }
 0x36c   : > { %8008 = vmatmul.msk.bf16.gmra.mxu2 %vm3326_vm0, %v6155_v43  ;;  %v8107_v1 = vld [vmem:[%s8735_s30 + $0x12c] sm:$0xf] }
 0x36d   : > { %5192 = vmatmul.bf16.gmra.mxu1 %v6151_v61 }
 0x36e   : > { %v4486_v35 = vpop.f32.mrf.mxu3 }
 0x36f   : > { %v4406_v23 = vpop.f32.mrf.mxu2  ;;  %v9821_v41 = vadd.f32 %v4486_v35, %v9466_v40 }
 0x370   : > { %v9823_v15 = vadd.f32 %v4406_v23, %v4078_v50  ;;  %v3750_v51 = vpop.f32.mrf.mxu0  ;;  %v6171_v50 = vor.u32 %v8106_v62, %v6168_v27 }
 0x371   : > { %10874 = vst [vmem:[#allocation80_spill] sm:$0xff] %v9821_v41  ;;  %v3751_v63 = vadd.f32 %v9536_v48, %v3750_v51  ;;  %v6183_v51 = vor.u32 %v8111_v54, %v6182_v24  ;;  %v8113_v54 = vld [vmem:[%s8735_s30 + $0x15c] sm:$0xf] }
 0x372   : > { %v4079_v39 = vpop.f32.mrf.mxu1 }
 0x373   : > { %v4080_v5 = vadd.f32 %v4079_v39, %v3751_v63  ;;  %v6179_v63 = vor.u32 %v8107_v1, %v6176_v25  ;;  %v6196_v1 = vld [vmem:[%s8735_s30 + $0x174] sm:$0xf0]  ;;  %v6202_v25 = vld [vmem:[%s8735_s30 + $0x160] sm:$0xf] }
 0x376   : > { %v4488_v43 = vpop.f32.mrf.mxu3 }
 0x377   : > { %v4408_v61 = vpop.f32.mrf.mxu2  ;;  %v9835_v40 = vadd.f32 %v4488_v43, %v9481_v4  ;;  %v8117_v43 = vld [vmem:[%s8735_s30 + $0x178] sm:$0xf0] }
 0x378   : > { %v9837_v35 = vadd.f32 %v4408_v61, %v4080_v5  ;;  %v3753_v23 = vpop.f32.mrf.mxu0  ;;  %v6210_v61 = vld [vmem:[%s8735_s30 + $0x168] sm:$0xf] }
 0x379   : > { %10875 = vst [vmem:[#allocation81_spill] sm:$0xff] %v9835_v40  ;;  %v3754_v39 = vadd.f32 %v9536_v48, %v3753_v23  ;;  %v6204_v23 = vld [vmem:[%s8735_s30 + $0x17c] sm:$0xf0] }
 0x37a   : > { %v4082_v41 = vpop.f32.mrf.mxu1 }
 0x37b   : > { %v4083_v55 = vadd.f32 %v4082_v41, %v3754_v39  ;;  %4539 = vmatmul.bf16.gmra.mxu3 %v6171_v50  ;;  %4868 = vmatmul.bf16.gmra.mxu0 %v6175_v10  ;;  %v8118_v50 = vld [vmem:[%s8735_s30 + $0x180] sm:$0xf0]  ;;  %v6203_v39 = vor.u32 %v8117_v43, %v6202_v25 }
 0x37c   : > { %8009 = vmatmul.msk.bf16.gmra.mxu2 %vm3326_vm0, %v6183_v51  ;;  %v8114_v10 = vld [vmem:[%s8735_s30 + $0x164] sm:$0xf] }
 0x37d   : > { %5197 = vmatmul.bf16.gmra.mxu1 %v6179_v63 }
 0x37e   : > { %v4491_v4 = vpop.f32.mrf.mxu3 }
 0x37f   : > { %v4411_v5 = vpop.f32.mrf.mxu2  ;;  %v9842_v62 = vadd.f32 %v4491_v4, %v9488_v2 }
 0x380   : > { %v9844_v27 = vadd.f32 %v4411_v5, %v4083_v55  ;;  %v3755_v60 = vpop.f32.mrf.mxu0  ;;  %v6199_v55 = vor.u32 %v8113_v54, %v6196_v1 }
 0x381   : > { %10876 = vst [vmem:[#allocation82_spill] sm:$0xff] %v9842_v62  ;;  %v3756_v41 = vadd.f32 %v9536_v48, %v3755_v60  ;;  %v6211_v60 = vor.u32 %v8118_v50, %v6210_v61  ;;  %v8120_v50 = vld [vmem:[%s8735_s30 + $0x194] sm:$0xf] }
 0x382   : > { %v4084_v31 = vpop.f32.mrf.mxu1 }
 0x383   : > { %v4085_v24 = vadd.f32 %v4084_v31, %v3756_v41  ;;  %v6207_v41 = vor.u32 %v8114_v10, %v6204_v23  ;;  %v6224_v10 = vld [vmem:[%s8735_s30 + $0x1ac] sm:$0xf0]  ;;  %v6230_v23 = vld [vmem:[%s8735_s30 + $0x198] sm:$0xf] }
 0x386   : > { %v4493_v51 = vpop.f32.mrf.mxu3 }
 0x387   : > { %v4413_v63 = vpop.f32.mrf.mxu2  ;;  %v9856_v2 = vadd.f32 %v4493_v51, %v9503_v34  ;;  %v8124_v51 = vld [vmem:[%s8735_s30 + $0x1b0] sm:$0xf0] }
 0x388   : > { %v9858_v4 = vadd.f32 %v4413_v63, %v4085_v24  ;;  %v3758_v5 = vpop.f32.mrf.mxu0  ;;  %v6238_v63 = vld [vmem:[%s8735_s30 + $0x1a0] sm:$0xf] }
 0x389   : > { %10877 = vst [vmem:[#allocation83_spill] sm:$0xff] %v9856_v2  ;;  %v3759_v31 = vadd.f32 %v9536_v48, %v3758_v5  ;;  %v6232_v5 = vld [vmem:[%s8735_s30 + $0x1b4] sm:$0xf0] }
 0x38a   : > { %v4087_v62 = vpop.f32.mrf.mxu1 }
 0x38b   : > { %v4088_v40 = vadd.f32 %v4087_v62, %v3759_v31  ;;  %4544 = vmatmul.bf16.gmra.mxu3 %v6199_v55  ;;  %4873 = vmatmul.bf16.gmra.mxu0 %v6203_v39  ;;  %v8125_v55 = vld [vmem:[%s8735_s30 + $0x1b8] sm:$0xf0]  ;;  %v6231_v31 = vor.u32 %v8124_v51, %v6230_v23 }
 0x38c   : > { %8010 = vmatmul.msk.bf16.gmra.mxu2 %vm3326_vm0, %v6211_v60  ;;  %v8121_v39 = vld [vmem:[%s8735_s30 + $0x19c] sm:$0xf] }
 0x38d   : > { %5202 = vmatmul.bf16.gmra.mxu1 %v6207_v41 }
 0x38e   : > { %v4496_v34 = vpop.f32.mrf.mxu3 }
 0x38f   : > { %v4416_v24 = vpop.f32.mrf.mxu2  ;;  %v9863_v54 = vadd.f32 %v4496_v34, %v9513_v8 }
 0x390   : > { %v9865_v1 = vadd.f32 %v4416_v24, %v4088_v40  ;;  %v3760_v25 = vpop.f32.mrf.mxu0  ;;  %v6227_v40 = vor.u32 %v8120_v50, %v6224_v10  ;;  %v6239_v24 = vor.u32 %v8125_v55, %v6238_v63  ;;  %v8127_v55 = vld [vmem:[%s8735_s30 + $0x1cc] sm:$0xf] }
 0x391   : > { %10878 = vst [vmem:[#allocation84_spill] sm:$0xff] %v9863_v54  ;;  %v3761_v62 = vadd.f32 %v9536_v48, %v3760_v25  ;;  %v6235_v25 = vor.u32 %v8121_v39, %v6232_v5  ;;  %v6252_v39 = vld [vmem:[%s8735_s30 + $0x1e4] sm:$0xf0]  ;;  %v6258_v5 = vld [vmem:[%s8735_s30 + $0x1d0] sm:$0xf] }
 0x392   : > { %v4089_v43 = vpop.f32.mrf.mxu1 }
 0x393   : > { %v4090_v61 = vadd.f32 %v4089_v43, %v3761_v62  ;;  %v8603_v62 = vld [vmem:[%s10794_s2] ss:$0 sm:$0xff] }
 0x396   : > { %v4498_v60 = vpop.f32.mrf.mxu3 }
 0x397   : > { %v4418_v41 = vpop.f32.mrf.mxu2  ;;  %v9877_v8 = vadd.f32 %v4498_v60, %v9528_v9  ;;  %v8131_v60 = vld [vmem:[%s8735_s30 + $0x1e8] sm:$0xf0] }
 0x398   : > { %v9879_v34 = vadd.f32 %v4418_v41, %v4090_v61  ;;  %v3763_v48 = vpop.f32.mrf.mxu0  ;;  %v6266_v41 = vld [vmem:[%s8735_s30 + $0x1d8] sm:$0xf] }
 0x399   : > { %10879 = vst [vmem:[#allocation85_spill] sm:$0xff] %v9877_v8  ;;  %v3764_v43 = vadd.f32 %v8603_v62, %v3763_v48  ;;  %v6260_v48 = vld [vmem:[%s8735_s30 + $0x1ec] sm:$0xf0] }
 0x39a   : > { %v4092_v54 = vpop.f32.mrf.mxu1 }
 0x39b   : > { %v4093_v2 = vadd.f32 %v4092_v54, %v3764_v43  ;;  %4549 = vmatmul.bf16.gmra.mxu3 %v6227_v40  ;;  %4878 = vmatmul.bf16.gmra.mxu0 %v6231_v31  ;;  %v8132_v40 = vld [vmem:[%s8735_s30 + $0x1f0] sm:$0xf0] }
 0x39c   : > { %8011 = vmatmul.msk.bf16.gmra.mxu2 %vm3326_vm0, %v6239_v24  ;;  %v8128_v31 = vld [vmem:[%s8735_s30 + $0x1d4] sm:$0xf] }
 0x39d   : > { %5207 = vmatmul.bf16.gmra.mxu1 %v6235_v25 }
 0x39e   : > { %v4501_v9 = vpop.f32.mrf.mxu3 }
 0x39f   : > { %v4421_v61 = vpop.f32.mrf.mxu2  ;;  %v9886_v50 = vadd.f32 %v4501_v9, %v9540_v49  ;;  %v6255_v49 = vor.u32 %v8127_v55, %v6252_v39 }
 0x3a0   : > { %v9888_v10 = vadd.f32 %v4421_v61, %v4093_v2  ;;  %v3765_v23 = vpop.f32.mrf.mxu0  ;;  %v6259_v2 = vor.u32 %v8131_v60, %v6258_v5  ;;  %v6267_v61 = vor.u32 %v8132_v40, %v6266_v41  ;;  %v8134_v41 = vld [vmem:[%s8735_s30 + $0x204] sm:$0xf]  ;;  %v6280_v40 = vld [vmem:[%s8735_s30 + $0x21c] sm:$0xf0] }
 0x3a1   : > { %10880 = vst [vmem:[#allocation86_spill] sm:$0xff] %v9886_v50  ;;  %v3766_v51 = vadd.f32 %v8603_v62, %v3765_v23  ;;  %v6263_v23 = vor.u32 %v8128_v31, %v6260_v48  ;;  %v6286_v31 = vld [vmem:[%s8735_s30 + $0x208] sm:$0xf]  ;;  %v8138_v48 = vld [vmem:[%s8735_s30 + $0x220] sm:$0xf0] }
 0x3a2   : > { %v4094_v54 = vpop.f32.mrf.mxu1 }
 0x3a3   : > { %v4095_v63 = vadd.f32 %v4094_v54, %v3766_v51 }
 0x3a6   : > { %v4503_v24 = vpop.f32.mrf.mxu3 }
 0x3a7   : > { %v4423_v25 = vpop.f32.mrf.mxu2  ;;  %v9899_v43 = vadd.f32 %v4503_v24, %v9555_v46 }
 0x3a8   : > { %v9901_v9 = vadd.f32 %v4423_v25, %v4095_v63  ;;  %v4844_v62 = vpop.f32.mrf.mxu0  ;;  %v8139_v25 = vld [vmem:[%s8735_s30 + $0x228] sm:$0xf0] }
 0x3a9   : > { %10881 = vst [vmem:[#allocation87_spill] sm:$0xff] %v9899_v43 }
 0x3aa   : > { %v5173_v51 = vpop.f32.mrf.mxu1 }
 0x3ab   : > { %4554 = vmatmul.bf16.gmra.mxu3 %v6255_v49  ;;  %4883 = vmatmul.bf16.gmra.mxu0 %v6259_v2  ;;  %v8135_v49 = vld [vmem:[%s8735_s30 + $0x20c] sm:$0xf]  ;;  %v6288_v2 = vld [vmem:[%s8735_s30 + $0x224] sm:$0xf0] }
 0x3ac   : > { %8012 = vmatmul.msk.bf16.gmra.mxu2 %vm3326_vm0, %v6267_v61  ;;  %v6291_v43 = vor.u32 %v8135_v49, %v6288_v2  ;;  %v8146_v2 = vld [vmem:[%s8735_s30 + $0x260] sm:$0xf0] }
 0x3ad   : > { %5212 = vmatmul.bf16.gmra.mxu1 %v6263_v23 }
 0x3ae   : > { %v4515_v46 = vpop.f32.mrf.mxu3 }
 0x3af   : > { %v4516_v54 = vadd.f32 %v4515_v46, %v8867_v18  ;;  %v5502_v63 = vpop.f32.mrf.mxu2  ;;  %v6294_v18 = vld [vmem:[%s8735_s30 + $0x210] sm:$0xf]  ;;  %v6287_v46 = vor.u32 %v8138_v48, %v6286_v31  ;;  %v8141_v48 = vld [vmem:[%s8735_s30 + $0x23c] sm:$0xf] }
 0x3b0   : > { %v4846_v55 = vpop.f32.mrf.mxu0 }
 0x3b1   : > { %v4845_v39 = vadd.f32 %v4844_v62, %v4516_v54 }
 0x3b2   : > { %v5175_v5 = vpop.f32.mrf.mxu1 }
 0x3b3   : > { %v5174_v60 = vadd.f32 %v5173_v51, %v4845_v39  ;;  %v6283_v51 = vor.u32 %v8134_v41, %v6280_v40  ;;  %v6295_v39 = vor.u32 %v8139_v25, %v6294_v18  ;;  %v6308_v18 = vld [vmem:[%s8735_s30 + $0x254] sm:$0xf0]  ;;  %v8145_v25 = vld [vmem:[%s8735_s30 + $0x258] sm:$0xf0] }
 0x3b5   : > { %v5503_v24 = vadd.f32 %v5502_v63, %v5174_v60 }
 0x3b6   : > { %v4517_v62 = vpop.f32.mrf.mxu3 }
 0x3b7   : > { %5823 = vst.msk [vmem:[%s9911_s29] sm:$0xff] %vm5822_vm1, %v5503_v24  ;;  %v4518_v61 = vadd.f32 %v4517_v62, %v8880_v33  ;;  %v5504_v23 = vpop.f32.mrf.mxu2  ;;  %v6314_v24 = vld [vmem:[%s8735_s30 + $0x240] sm:$0xf]  ;;  %v8142_v62 = vld [vmem:[%s8735_s30 + $0x244] sm:$0xf] }
 0x3b8   : > { %v4849_v54 = vpop.f32.mrf.mxu0 }
 0x3b9   : > { %v4847_v50 = vadd.f32 %v4846_v55, %v4518_v61  ;;  %v6316_v61 = vld [vmem:[%s8735_s30 + $0x25c] sm:$0xf0] }
 0x3ba   : > { %v5178_v8 = vpop.f32.mrf.mxu1 }
 0x3bb   : > { %v5176_v63 = vadd.f32 %v5175_v5, %v4847_v50  ;;  %4559 = vmatmul.bf16.gmra.mxu3 %v6283_v51  ;;  %4888 = vmatmul.bf16.gmra.mxu0 %v6287_v46  ;;  %v6311_v46 = vor.u32 %v8141_v48, %v6308_v18 }
 0x3bc   : > { %8013 = vmatmul.msk.bf16.gmra.mxu2 %vm3326_vm0, %v6295_v39 }
 0x3bd   : > { %5217 = vmatmul.bf16.gmra.mxu1 %v6291_v43  ;;  %v5505_v33 = vadd.f32 %v5504_v23, %v5176_v63  ;;  %v6322_v43 = vld [vmem:[%s8735_s30 + $0x248] sm:$0xf]  ;;  %v6319_v63 = vor.u32 %v8142_v62, %v6316_v61  ;;  %v8153_v61 = vld [vmem:[%s8735_s30 + $0x298] sm:$0xf0] }
 0x3be   : > { %v4520_v60 = vpop.f32.mrf.mxu3 }
 0x3bf   : > { %5824 = vst.msk [vmem:[%s9911_s29 + $0x8] sm:$0xff] %vm5822_vm1, %v5505_v33  ;;  %v4521_v55 = vadd.f32 %v4520_v60, %v8885_v42  ;;  %v5507_v41 = vpop.f32.mrf.mxu2 }
 0x3c0   : > { %v4851_v50 = vpop.f32.mrf.mxu0 }
 0x3c1   : > { %v4850_v5 = vadd.f32 %v4849_v54, %v4521_v55  ;;  %v6315_v54 = vor.u32 %v8145_v25, %v6314_v24  ;;  %v8148_v24 = vld [vmem:[%s8735_s30 + $0x274] sm:$0xf]  ;;  %v6336_v25 = vld [vmem:[%s8735_s30 + $0x28c] sm:$0xf0] }
 0x3c2   : > { %v5180_v40 = vpop.f32.mrf.mxu1 }
 0x3c3   : > { %v5179_v31 = vadd.f32 %v5178_v8, %v4850_v5  ;;  %v6323_v8 = vor.u32 %v8146_v2, %v6322_v43  ;;  %v6342_v43 = vld [vmem:[%s8735_s30 + $0x278] sm:$0xf]  ;;  %v6350_v2 = vld [vmem:[%s8735_s30 + $0x280] sm:$0xf] }
 0x3c5   : > { %v5508_v49 = vadd.f32 %v5507_v41, %v5179_v31 }
 0x3c6   : > { %v4522_v23 = vpop.f32.mrf.mxu3 }
 0x3c7   : > { %5825 = vst.msk [vmem:[%s9911_s29 + $0x10] sm:$0xff] %vm5822_vm1, %v5508_v49  ;;  %v4523_v42 = vadd.f32 %v4522_v23, %v8898_v59  ;;  %v5509_v51 = vpop.f32.mrf.mxu2  ;;  %v8152_v49 = vld [vmem:[%s8735_s30 + $0x290] sm:$0xf0]  ;;  %v8149_v23 = vld [vmem:[%s8735_s30 + $0x27c] sm:$0xf] }
 0x3c8   : > { %v4854_v39 = vpop.f32.mrf.mxu0 }
 0x3c9   : > { %v4852_v33 = vadd.f32 %v4851_v50, %v4523_v42  ;;  %v6344_v42 = vld [vmem:[%s8735_s30 + $0x294] sm:$0xf0] }
 0x3ca   : > { %v5183_v60 = vpop.f32.mrf.mxu1 }
 0x3cb   : > { %v5181_v55 = vadd.f32 %v5180_v40, %v4852_v33  ;;  %4564 = vmatmul.bf16.gmra.mxu3 %v6311_v46  ;;  %4893 = vmatmul.bf16.gmra.mxu0 %v6315_v54  ;;  %v6339_v54 = vor.u32 %v8148_v24, %v6336_v25  ;;  %v6347_v33 = vor.u32 %v8149_v23, %v6344_v42  ;;  %v8155_v24 = vld [vmem:[%s8735_s30 + $0x2ac] sm:$0xf]  ;;  %v6364_v25 = vld [vmem:[%s8735_s30 + $0x2c4] sm:$0xf0]  ;;  %v8156_v23 = vld [vmem:[%s8735_s30 + $0x2b4] sm:$0xf] }
 0x3cc   : > { %8014 = vmatmul.msk.bf16.gmra.mxu2 %vm3326_vm0, %v6323_v8  ;;  %v6372_v42 = vld [vmem:[%s8735_s30 + $0x2cc] sm:$0xf0] }
 0x3cd   : > { %5222 = vmatmul.bf16.gmra.mxu1 %v6319_v63  ;;  %v5510_v59 = vadd.f32 %v5509_v51, %v5181_v55  ;;  %v6351_v63 = vor.u32 %v8153_v61, %v6350_v2  ;;  %v6378_v2 = vld [vmem:[%s8735_s30 + $0x2b8] sm:$0xf]  ;;  %v8160_v61 = vld [vmem:[%s8735_s30 + $0x2d0] sm:$0xf0] }
 0x3ce   : > { %v4525_v41 = vpop.f32.mrf.mxu3 }
 0x3cf   : > { %5826 = vst.msk [vmem:[%s9911_s29 + $0x18] sm:$0xff] %vm5822_vm1, %v5510_v59  ;;  %v4526_v50 = vadd.f32 %v4525_v41, %v8903_v6  ;;  %v5512_v5 = vpop.f32.mrf.mxu2 }
 0x3d0   : > { %v4856_v40 = vpop.f32.mrf.mxu0 }
 0x3d1   : > { %v4855_v31 = vadd.f32 %v4854_v39, %v4526_v50  ;;  %v6343_v39 = vor.u32 %v8152_v49, %v6342_v43  ;;  %v6370_v43 = vld [vmem:[%s8735_s30 + $0x2b0] sm:$0xf]  ;;  %v8159_v49 = vld [vmem:[%s8735_s30 + $0x2c8] sm:$0xf0] }
 0x3d2   : > { %v5185_v48 = vpop.f32.mrf.mxu1 }
 0x3d3   : > { %v5184_v18 = vadd.f32 %v5183_v60, %v4855_v31 }
 0x3d5   : > { %v5513_v62 = vadd.f32 %v5512_v5, %v5184_v18 }
 0x3d6   : > { %v4527_v51 = vpop.f32.mrf.mxu3 }
 0x3d7   : > { %5827 = vst.msk [vmem:[%s9911_s29 + $0x20] sm:$0xff] %vm5822_vm1, %v5513_v62  ;;  %v4528_v6 = vadd.f32 %v4527_v51, %v8922_v26  ;;  %v5514_v46 = vpop.f32.mrf.mxu2 }
 0x3d8   : > { %v4859_v8 = vpop.f32.mrf.mxu0 }
 0x3d9   : > { %v4857_v60 = vadd.f32 %v4856_v40, %v4528_v6 }
 0x3da   : > { %v5188_v55 = vpop.f32.mrf.mxu1 }
 0x3db   : > { %v5186_v59 = vadd.f32 %v5185_v48, %v4857_v60  ;;  %4569 = vmatmul.bf16.gmra.mxu3 %v6339_v54  ;;  %4898 = vmatmul.bf16.gmra.mxu0 %v6343_v39  ;;  %v6371_v54 = vor.u32 %v8159_v49, %v6370_v43  ;;  %v8166_v43 = vld [vmem:[%s8735_s30 + $0x300] sm:$0xf0]  ;;  %v6406_v49 = vld [vmem:[%s8735_s30 + $0x2f0] sm:$0xf] }
 0x3dc   : > { %8015 = vmatmul.msk.bf16.gmra.mxu2 %vm3326_vm0, %v6351_v63  ;;  %v6375_v63 = vor.u32 %v8156_v23, %v6372_v42  ;;  %v6400_v23 = vld [vmem:[%s8735_s30 + $0x304] sm:$0xf0] }
 0x3dd   : > { %5227 = vmatmul.bf16.gmra.mxu1 %v6347_v33  ;;  %v5515_v26 = vadd.f32 %v5514_v46, %v5186_v59  ;;  %v6367_v46 = vor.u32 %v8155_v24, %v6364_v25  ;;  %v6392_v24 = vld [vmem:[%s8735_s30 + $0x2fc] sm:$0xf0]  ;;  %v6398_v25 = vld [vmem:[%s8735_s30 + $0x2e8] sm:$0xf] }
 0x3de   : > { %v4530_v41 = vpop.f32.mrf.mxu3 }
 0x3df   : > { %5828 = vst.msk [vmem:[%s9911_s29 + $0x28] sm:$0xff] %vm5822_vm1, %v5515_v26  ;;  %v4531_v50 = vadd.f32 %v4530_v41, %v8927_v37  ;;  %v5517_v5 = vpop.f32.mrf.mxu2  ;;  %v10882_v26 = vld [vmem:[#allocation2_spill] sm:$0xff] }
 0x3e0   : > { %v4861_v40 = vpop.f32.mrf.mxu0 }
 0x3e1   : > { %v4860_v31 = vadd.f32 %v4859_v8, %v4531_v50  ;;  %v6379_v8 = vor.u32 %v8160_v61, %v6378_v2  ;;  %v8163_v61 = vld [vmem:[%s8735_s30 + $0x2ec] sm:$0xf] }
 0x3e2   : > { %v5190_v48 = vpop.f32.mrf.mxu1 }
 0x3e3   : > { %v5189_v18 = vadd.f32 %v5188_v55, %v4860_v31 }
 0x3e5   : > { %v5518_v62 = vadd.f32 %v5517_v5, %v5189_v18  ;;  %v8162_v18 = vld [vmem:[%s8735_s30 + $0x2e4] sm:$0xf] }
 0x3e6   : > { %v4532_v51 = vpop.f32.mrf.mxu3 }
 0x3e7   : > { %5829 = vst.msk [vmem:[%s9911_s29 + $0x30] sm:$0xff] %vm5822_vm1, %v5518_v62  ;;  %v4533_v37 = vadd.f32 %v4532_v51, %v8940_v57  ;;  %v5519_v6 = vpop.f32.mrf.mxu2  ;;  %v8167_v62 = vld [vmem:[%s8735_s30 + $0x308] sm:$0xf0] }
 0x3e8   : > { %v4864_v39 = vpop.f32.mrf.mxu0  ;;  %v10883_v51 = vld [vmem:[#allocation3_spill] sm:$0xff] }
 0x3e9   : > { %v4862_v33 = vadd.f32 %v4861_v40, %v4533_v37 }
 0x3ea   : > { %v5193_v60 = vpop.f32.mrf.mxu1 }
 0x3eb   : > { %v5191_v55 = vadd.f32 %v5190_v48, %v4862_v33  ;;  %4574 = vmatmul.bf16.gmra.mxu3 %v6367_v46  ;;  %4903 = vmatmul.bf16.gmra.mxu0 %v6371_v54  ;;  %v6395_v46 = vor.u32 %v8162_v18, %v6392_v24  ;;  %v6399_v54 = vor.u32 %v8166_v43, %v6398_v25  ;;  %v8169_v18 = vld [vmem:[%s8735_s30 + $0x31c] sm:$0xf]  ;;  %v6420_v24 = vld [vmem:[%s8735_s30 + $0x334] sm:$0xf0]  ;;  %v6426_v25 = vld [vmem:[%s8735_s30 + $0x320] sm:$0xf] }
 0x3ec   : > { %8016 = vmatmul.msk.bf16.gmra.mxu2 %vm3326_vm0, %v6379_v8  ;;  %v6407_v8 = vor.u32 %v8167_v62, %v6406_v49  ;;  %v8173_v43 = vld [vmem:[%s8735_s30 + $0x338] sm:$0xf0]  ;;  %v6434_v49 = vld [vmem:[%s8735_s30 + $0x328] sm:$0xf]  ;;  %v8174_v62 = vld [vmem:[%s8735_s30 + $0x340] sm:$0xf0] }
 0x3ed   : > { %5232 = vmatmul.bf16.gmra.mxu1 %v6375_v63  ;;  %v5520_v57 = vadd.f32 %v5519_v6, %v5191_v55  ;;  %v6403_v63 = vor.u32 %v8163_v61, %v6400_v23  ;;  %v8170_v61 = vld [vmem:[%s8735_s30 + $0x324] sm:$0xf]  ;;  %v6428_v23 = vld [vmem:[%s8735_s30 + $0x33c] sm:$0xf0] }
 0x3ee   : > { %v4535_v59 = vpop.f32.mrf.mxu3 }
 0x3ef   : > { %5830 = vst.msk [vmem:[%s9911_s29 + $0x38] sm:$0xff] %vm5822_vm1, %v5520_v57  ;;  %v4536_v41 = vadd.f32 %v4535_v59, %v10882_v26  ;;  %v5522_v50 = vpop.f32.mrf.mxu2  ;;  %v10884_v26 = vld [vmem:[#allocation4_spill] sm:$0xff] }
 0x3f0   : > { %v4866_v5 = vpop.f32.mrf.mxu0 }
 0x3f1   : > { %v4865_v40 = vadd.f32 %v4864_v39, %v4536_v41 }
 0x3f2   : > { %v5195_v31 = vpop.f32.mrf.mxu1 }
 0x3f3   : > { %v5194_v48 = vadd.f32 %v5193_v60, %v4865_v40 }
 0x3f5   : > { %v5523_v2 = vadd.f32 %v5522_v50, %v5194_v48 }
 0x3f6   : > { %v4537_v42 = vpop.f32.mrf.mxu3 }
 0x3f7   : > { %5831 = vst.msk [vmem:[%s9911_s29 + $0x40] sm:$0xff] %vm5822_vm1, %v5523_v2  ;;  %v4538_v37 = vadd.f32 %v4537_v42, %v10883_v51  ;;  %v5524_v6 = vpop.f32.mrf.mxu2  ;;  %v10885_v51 = vld [vmem:[#allocation5_spill] sm:$0xff] }
 0x3f8   : > { %v4869_v39 = vpop.f32.mrf.mxu0 }
 0x3f9   : > { %v4867_v33 = vadd.f32 %v4866_v5, %v4538_v37 }
 0x3fa   : > { %v5198_v60 = vpop.f32.mrf.mxu1 }
 0x3fb   : > { %v5196_v55 = vadd.f32 %v5195_v31, %v4867_v33  ;;  %4579 = vmatmul.bf16.gmra.mxu3 %v6395_v46  ;;  %4908 = vmatmul.bf16.gmra.mxu0 %v6399_v54  ;;  %v6423_v46 = vor.u32 %v8169_v18, %v6420_v24  ;;  %v6427_v54 = vor.u32 %v8173_v43, %v6426_v25  ;;  %v8176_v18 = vld [vmem:[%s8735_s30 + $0x354] sm:$0xf]  ;;  %v6448_v24 = vld [vmem:[%s8735_s30 + $0x36c] sm:$0xf0]  ;;  %v6454_v25 = vld [vmem:[%s8735_s30 + $0x358] sm:$0xf] }
 0x3fc   : > { %8017 = vmatmul.msk.bf16.gmra.mxu2 %vm3326_vm0, %v6407_v8  ;;  %v6435_v8 = vor.u32 %v8174_v62, %v6434_v49  ;;  %v8180_v43 = vld [vmem:[%s8735_s30 + $0x370] sm:$0xf0]  ;;  %v6462_v49 = vld [vmem:[%s8735_s30 + $0x360] sm:$0xf]  ;;  %v8181_v62 = vld [vmem:[%s8735_s30 + $0x378] sm:$0xf0] }
 0x3fd   : > { %5237 = vmatmul.bf16.gmra.mxu1 %v6403_v63  ;;  %v5525_v57 = vadd.f32 %v5524_v6, %v5196_v55  ;;  %v6431_v63 = vor.u32 %v8170_v61, %v6428_v23  ;;  %v8177_v61 = vld [vmem:[%s8735_s30 + $0x35c] sm:$0xf]  ;;  %v6456_v23 = vld [vmem:[%s8735_s30 + $0x374] sm:$0xf0] }
 0x3fe   : > { %v4540_v59 = vpop.f32.mrf.mxu3 }
 0x3ff   : > { %5832 = vst.msk [vmem:[%s9911_s29 + $0x48] sm:$0xff] %vm5822_vm1, %v5525_v57  ;;  %v4541_v41 = vadd.f32 %v4540_v59, %v10884_v26  ;;  %v5527_v50 = vpop.f32.mrf.mxu2  ;;  %v10886_v26 = vld [vmem:[#allocation6_spill] sm:$0xff] }
 0x400   : > { %v4871_v5 = vpop.f32.mrf.mxu0 }
 0x401   : > { %v4870_v40 = vadd.f32 %v4869_v39, %v4541_v41 }
 0x402   : > { %v5200_v31 = vpop.f32.mrf.mxu1 }
 0x403   : > { %v5199_v48 = vadd.f32 %v5198_v60, %v4870_v40 }
 0x405   : > { %v5528_v2 = vadd.f32 %v5527_v50, %v5199_v48 }
 0x406   : > { %v4542_v42 = vpop.f32.mrf.mxu3 }
 0x407   : > { %5833 = vst.msk [vmem:[%s9911_s29 + $0x50] sm:$0xff] %vm5822_vm1, %v5528_v2  ;;  %v4543_v37 = vadd.f32 %v4542_v42, %v10885_v51  ;;  %v5529_v6 = vpop.f32.mrf.mxu2  ;;  %v10887_v51 = vld [vmem:[#allocation7_spill] sm:$0xff] }
 0x408   : > { %v4874_v39 = vpop.f32.mrf.mxu0 }
 0x409   : > { %v4872_v33 = vadd.f32 %v4871_v5, %v4543_v37 }
 0x40a   : > { %v5203_v60 = vpop.f32.mrf.mxu1 }
 0x40b   : > { %v5201_v55 = vadd.f32 %v5200_v31, %v4872_v33  ;;  %4584 = vmatmul.bf16.gmra.mxu3 %v6423_v46  ;;  %4913 = vmatmul.bf16.gmra.mxu0 %v6427_v54  ;;  %v6451_v46 = vor.u32 %v8176_v18, %v6448_v24  ;;  %v6455_v54 = vor.u32 %v8180_v43, %v6454_v25  ;;  %v8183_v18 = vld [vmem:[%s8735_s30 + $0x38c] sm:$0xf]  ;;  %v6476_v24 = vld [vmem:[%s8735_s30 + $0x3a4] sm:$0xf0]  ;;  %v6482_v25 = vld [vmem:[%s8735_s30 + $0x390] sm:$0xf] }
 0x40c   : > { %8018 = vmatmul.msk.bf16.gmra.mxu2 %vm3326_vm0, %v6435_v8  ;;  %v6463_v8 = vor.u32 %v8181_v62, %v6462_v49  ;;  %v8187_v43 = vld [vmem:[%s8735_s30 + $0x3a8] sm:$0xf0]  ;;  %v6490_v49 = vld [vmem:[%s8735_s30 + $0x398] sm:$0xf]  ;;  %v8188_v62 = vld [vmem:[%s8735_s30 + $0x3b0] sm:$0xf0] }
 0x40d   : > { %5242 = vmatmul.bf16.gmra.mxu1 %v6431_v63  ;;  %v5530_v57 = vadd.f32 %v5529_v6, %v5201_v55  ;;  %v6459_v63 = vor.u32 %v8177_v61, %v6456_v23  ;;  %v8184_v61 = vld [vmem:[%s8735_s30 + $0x394] sm:$0xf]  ;;  %v6484_v23 = vld [vmem:[%s8735_s30 + $0x3ac] sm:$0xf0] }
 0x40e   : > { %v4545_v59 = vpop.f32.mrf.mxu3 }
 0x40f   : > { %5834 = vst.msk [vmem:[%s9911_s29 + $0x58] sm:$0xff] %vm5822_vm1, %v5530_v57  ;;  %v4546_v41 = vadd.f32 %v4545_v59, %v10886_v26  ;;  %v5532_v50 = vpop.f32.mrf.mxu2  ;;  %v10888_v26 = vld [vmem:[#allocation8_spill] sm:$0xff] }
 0x410   : > { %v4876_v5 = vpop.f32.mrf.mxu0 }
 0x411   : > { %v4875_v40 = vadd.f32 %v4874_v39, %v4546_v41 }
 0x412   : > { %v5205_v31 = vpop.f32.mrf.mxu1 }
 0x413   : > { %v5204_v48 = vadd.f32 %v5203_v60, %v4875_v40 }
 0x415   : > { %v5533_v2 = vadd.f32 %v5532_v50, %v5204_v48 }
 0x416   : > { %v4547_v42 = vpop.f32.mrf.mxu3 }
 0x417   : > { %5835 = vst.msk [vmem:[%s9911_s29 + $0x60] sm:$0xff] %vm5822_vm1, %v5533_v2  ;;  %v4548_v37 = vadd.f32 %v4547_v42, %v10887_v51  ;;  %v5534_v6 = vpop.f32.mrf.mxu2  ;;  %v10889_v51 = vld [vmem:[#allocation9_spill] sm:$0xff] }
 0x418   : > { %v4879_v39 = vpop.f32.mrf.mxu0 }
 0x419   : > { %v4877_v33 = vadd.f32 %v4876_v5, %v4548_v37 }
 0x41a   : > { %v5208_v60 = vpop.f32.mrf.mxu1 }
 0x41b   : > { %v5206_v55 = vadd.f32 %v5205_v31, %v4877_v33  ;;  %4589 = vmatmul.bf16.gmra.mxu3 %v6451_v46  ;;  %4918 = vmatmul.bf16.gmra.mxu0 %v6455_v54  ;;  %v6479_v46 = vor.u32 %v8183_v18, %v6476_v24  ;;  %v6483_v54 = vor.u32 %v8187_v43, %v6482_v25  ;;  %v8190_v18 = vld [vmem:[%s8735_s30 + $0x3c4] sm:$0xf]  ;;  %v6504_v24 = vld [vmem:[%s8735_s30 + $0x3dc] sm:$0xf0]  ;;  %v6510_v25 = vld [vmem:[%s8735_s30 + $0x3c8] sm:$0xf] }
 0x41c   : > { %8019 = vmatmul.msk.bf16.gmra.mxu2 %vm3326_vm0, %v6463_v8  ;;  %v6491_v8 = vor.u32 %v8188_v62, %v6490_v49  ;;  %v8194_v43 = vld [vmem:[%s8735_s30 + $0x3e0] sm:$0xf0]  ;;  %v6518_v49 = vld [vmem:[%s8735_s30 + $0x3d0] sm:$0xf]  ;;  %v8195_v62 = vld [vmem:[%s8735_s30 + $0x3e8] sm:$0xf0] }
 0x41d   : > { %5247 = vmatmul.bf16.gmra.mxu1 %v6459_v63  ;;  %v5535_v57 = vadd.f32 %v5534_v6, %v5206_v55  ;;  %v6487_v63 = vor.u32 %v8184_v61, %v6484_v23  ;;  %v8191_v61 = vld [vmem:[%s8735_s30 + $0x3cc] sm:$0xf]  ;;  %v6512_v23 = vld [vmem:[%s8735_s30 + $0x3e4] sm:$0xf0] }
 0x41e   : > { %v4550_v59 = vpop.f32.mrf.mxu3 }
 0x41f   : > { %5836 = vst.msk [vmem:[%s9911_s29 + $0x68] sm:$0xff] %vm5822_vm1, %v5535_v57  ;;  %v4551_v41 = vadd.f32 %v4550_v59, %v10888_v26  ;;  %v5537_v50 = vpop.f32.mrf.mxu2  ;;  %v10890_v26 = vld [vmem:[#allocation10_spill] sm:$0xff] }
 0x420   : > { %v4881_v5 = vpop.f32.mrf.mxu0 }
 0x421   : > { %v4880_v40 = vadd.f32 %v4879_v39, %v4551_v41 }
 0x422   : > { %v5210_v31 = vpop.f32.mrf.mxu1 }
 0x423   : > { %v5209_v48 = vadd.f32 %v5208_v60, %v4880_v40 }
 0x425   : > { %v5538_v2 = vadd.f32 %v5537_v50, %v5209_v48 }
 0x426   : > { %v4552_v42 = vpop.f32.mrf.mxu3 }
 0x427   : > { %5837 = vst.msk [vmem:[%s9911_s29 + $0x70] sm:$0xff] %vm5822_vm1, %v5538_v2  ;;  %v4553_v37 = vadd.f32 %v4552_v42, %v10889_v51  ;;  %v5539_v6 = vpop.f32.mrf.mxu2  ;;  %v10891_v51 = vld [vmem:[#allocation11_spill] sm:$0xff] }
 0x428   : > { %v4884_v39 = vpop.f32.mrf.mxu0 }
 0x429   : > { %v4882_v33 = vadd.f32 %v4881_v5, %v4553_v37 }
 0x42a   : > { %v5213_v60 = vpop.f32.mrf.mxu1 }
 0x42b   : > { %v5211_v55 = vadd.f32 %v5210_v31, %v4882_v33  ;;  %4594 = vmatmul.bf16.gmra.mxu3 %v6479_v46  ;;  %4923 = vmatmul.bf16.gmra.mxu0 %v6483_v54  ;;  %v6507_v46 = vor.u32 %v8190_v18, %v6504_v24  ;;  %v6511_v54 = vor.u32 %v8194_v43, %v6510_v25  ;;  %v8197_v18 = vld [vmem:[%s8735_s30 + $0x3fc] sm:$0xf]  ;;  %v6532_v24 = vld [vmem:[%s8735_s30 + $0x414] sm:$0xf0]  ;;  %v6538_v25 = vld [vmem:[%s8735_s30 + $0x400] sm:$0xf] }
 0x42c   : > { %8020 = vmatmul.msk.bf16.gmra.mxu2 %vm3326_vm0, %v6491_v8  ;;  %v6519_v8 = vor.u32 %v8195_v62, %v6518_v49  ;;  %v8201_v43 = vld [vmem:[%s8735_s30 + $0x418] sm:$0xf0]  ;;  %v6546_v49 = vld [vmem:[%s8735_s30 + $0x408] sm:$0xf]  ;;  %v8202_v62 = vld [vmem:[%s8735_s30 + $0x420] sm:$0xf0] }
 0x42d   : > { %5252 = vmatmul.bf16.gmra.mxu1 %v6487_v63  ;;  %v5540_v57 = vadd.f32 %v5539_v6, %v5211_v55  ;;  %v6515_v63 = vor.u32 %v8191_v61, %v6512_v23  ;;  %v8198_v61 = vld [vmem:[%s8735_s30 + $0x404] sm:$0xf]  ;;  %v6540_v23 = vld [vmem:[%s8735_s30 + $0x41c] sm:$0xf0] }
 0x42e   : > { %v4555_v59 = vpop.f32.mrf.mxu3 }
 0x42f   : > { %5838 = vst.msk [vmem:[%s9911_s29 + $0x78] sm:$0xff] %vm5822_vm1, %v5540_v57  ;;  %v4556_v41 = vadd.f32 %v4555_v59, %v10890_v26  ;;  %v5542_v50 = vpop.f32.mrf.mxu2  ;;  %v10892_v26 = vld [vmem:[#allocation12_spill] sm:$0xff] }
 0x430   : > { %v4886_v5 = vpop.f32.mrf.mxu0 }
 0x431   : > { %v4885_v40 = vadd.f32 %v4884_v39, %v4556_v41 }
 0x432   : > { %v5215_v31 = vpop.f32.mrf.mxu1 }
 0x433   : > { %v5214_v48 = vadd.f32 %v5213_v60, %v4885_v40 }
 0x435   : > { %v5543_v2 = vadd.f32 %v5542_v50, %v5214_v48 }
 0x436   : > { %v4557_v42 = vpop.f32.mrf.mxu3 }
 0x437   : > { %5839 = vst.msk [vmem:[%s9911_s29 + $0x80] sm:$0xff] %vm5822_vm1, %v5543_v2  ;;  %v4558_v37 = vadd.f32 %v4557_v42, %v10891_v51  ;;  %v5544_v6 = vpop.f32.mrf.mxu2  ;;  %v10893_v51 = vld [vmem:[#allocation13_spill] sm:$0xff] }
 0x438   : > { %v4889_v39 = vpop.f32.mrf.mxu0 }
 0x439   : > { %v4887_v33 = vadd.f32 %v4886_v5, %v4558_v37 }
 0x43a   : > { %v5218_v60 = vpop.f32.mrf.mxu1 }
 0x43b   : > { %v5216_v55 = vadd.f32 %v5215_v31, %v4887_v33  ;;  %4599 = vmatmul.bf16.gmra.mxu3 %v6507_v46  ;;  %4928 = vmatmul.bf16.gmra.mxu0 %v6511_v54  ;;  %v6535_v46 = vor.u32 %v8197_v18, %v6532_v24  ;;  %v6539_v54 = vor.u32 %v8201_v43, %v6538_v25  ;;  %v8204_v18 = vld [vmem:[%s8735_s30 + $0x434] sm:$0xf]  ;;  %v6560_v24 = vld [vmem:[%s8735_s30 + $0x44c] sm:$0xf0]  ;;  %v6566_v25 = vld [vmem:[%s8735_s30 + $0x438] sm:$0xf] }
 0x43c   : > { %8021 = vmatmul.msk.bf16.gmra.mxu2 %vm3326_vm0, %v6519_v8  ;;  %v6547_v8 = vor.u32 %v8202_v62, %v6546_v49  ;;  %v8208_v43 = vld [vmem:[%s8735_s30 + $0x450] sm:$0xf0]  ;;  %v6574_v49 = vld [vmem:[%s8735_s30 + $0x440] sm:$0xf]  ;;  %v8209_v62 = vld [vmem:[%s8735_s30 + $0x458] sm:$0xf0] }
 0x43d   : > { %5257 = vmatmul.bf16.gmra.mxu1 %v6515_v63  ;;  %v5545_v57 = vadd.f32 %v5544_v6, %v5216_v55  ;;  %v6543_v63 = vor.u32 %v8198_v61, %v6540_v23  ;;  %v8205_v61 = vld [vmem:[%s8735_s30 + $0x43c] sm:$0xf]  ;;  %v6568_v23 = vld [vmem:[%s8735_s30 + $0x454] sm:$0xf0] }
 0x43e   : > { %v4560_v59 = vpop.f32.mrf.mxu3 }
 0x43f   : > { %5840 = vst.msk [vmem:[%s9911_s29 + $0x88] sm:$0xff] %vm5822_vm1, %v5545_v57  ;;  %v4561_v41 = vadd.f32 %v4560_v59, %v10892_v26  ;;  %v5547_v50 = vpop.f32.mrf.mxu2  ;;  %v10894_v26 = vld [vmem:[#allocation14_spill] sm:$0xff] }
 0x440   : > { %v4891_v5 = vpop.f32.mrf.mxu0 }
 0x441   : > { %v4890_v40 = vadd.f32 %v4889_v39, %v4561_v41 }
 0x442   : > { %v5220_v31 = vpop.f32.mrf.mxu1 }
 0x443   : > { %v5219_v48 = vadd.f32 %v5218_v60, %v4890_v40 }
 0x445   : > { %v5548_v2 = vadd.f32 %v5547_v50, %v5219_v48 }
 0x446   : > { %v4562_v42 = vpop.f32.mrf.mxu3 }
 0x447   : > { %5841 = vst.msk [vmem:[%s9911_s29 + $0x90] sm:$0xff] %vm5822_vm1, %v5548_v2  ;;  %v4563_v37 = vadd.f32 %v4562_v42, %v10893_v51  ;;  %v5549_v6 = vpop.f32.mrf.mxu2  ;;  %v10895_v51 = vld [vmem:[#allocation15_spill] sm:$0xff] }
 0x448   : > { %v4894_v39 = vpop.f32.mrf.mxu0 }
 0x449   : > { %v4892_v33 = vadd.f32 %v4891_v5, %v4563_v37 }
 0x44a   : > { %v5223_v60 = vpop.f32.mrf.mxu1 }
 0x44b   : > { %v5221_v55 = vadd.f32 %v5220_v31, %v4892_v33  ;;  %4604 = vmatmul.bf16.gmra.mxu3 %v6535_v46  ;;  %4933 = vmatmul.bf16.gmra.mxu0 %v6539_v54  ;;  %v6563_v46 = vor.u32 %v8204_v18, %v6560_v24  ;;  %v6567_v54 = vor.u32 %v8208_v43, %v6566_v25  ;;  %v8211_v18 = vld [vmem:[%s8735_s30 + $0x46c] sm:$0xf]  ;;  %v6588_v24 = vld [vmem:[%s8735_s30 + $0x484] sm:$0xf0]  ;;  %v6594_v25 = vld [vmem:[%s8735_s30 + $0x470] sm:$0xf] }
 0x44c   : > { %8022 = vmatmul.msk.bf16.gmra.mxu2 %vm3326_vm0, %v6547_v8  ;;  %v6575_v8 = vor.u32 %v8209_v62, %v6574_v49  ;;  %v8215_v43 = vld [vmem:[%s8735_s30 + $0x488] sm:$0xf0]  ;;  %v6602_v49 = vld [vmem:[%s8735_s30 + $0x478] sm:$0xf]  ;;  %v8216_v62 = vld [vmem:[%s8735_s30 + $0x490] sm:$0xf0] }
 0x44d   : > { %5262 = vmatmul.bf16.gmra.mxu1 %v6543_v63  ;;  %v5550_v57 = vadd.f32 %v5549_v6, %v5221_v55  ;;  %v6571_v63 = vor.u32 %v8205_v61, %v6568_v23  ;;  %v8212_v61 = vld [vmem:[%s8735_s30 + $0x474] sm:$0xf]  ;;  %v6596_v23 = vld [vmem:[%s8735_s30 + $0x48c] sm:$0xf0] }
 0x44e   : > { %v4565_v59 = vpop.f32.mrf.mxu3 }
 0x44f   : > { %5842 = vst.msk [vmem:[%s9911_s29 + $0x98] sm:$0xff] %vm5822_vm1, %v5550_v57  ;;  %v4566_v41 = vadd.f32 %v4565_v59, %v10894_v26  ;;  %v5552_v50 = vpop.f32.mrf.mxu2  ;;  %v10896_v26 = vld [vmem:[#allocation16_spill] sm:$0xff] }
 0x450   : > { %v4896_v5 = vpop.f32.mrf.mxu0 }
 0x451   : > { %v4895_v40 = vadd.f32 %v4894_v39, %v4566_v41 }
 0x452   : > { %v5225_v31 = vpop.f32.mrf.mxu1 }
 0x453   : > { %v5224_v48 = vadd.f32 %v5223_v60, %v4895_v40 }
 0x455   : > { %v5553_v2 = vadd.f32 %v5552_v50, %v5224_v48 }
 0x456   : > { %v4567_v42 = vpop.f32.mrf.mxu3 }
 0x457   : > { %5843 = vst.msk [vmem:[%s9911_s29 + $0xa0] sm:$0xff] %vm5822_vm1, %v5553_v2  ;;  %v4568_v37 = vadd.f32 %v4567_v42, %v10895_v51  ;;  %v5554_v6 = vpop.f32.mrf.mxu2  ;;  %v10897_v51 = vld [vmem:[#allocation17_spill] sm:$0xff] }
 0x458   : > { %v4899_v39 = vpop.f32.mrf.mxu0 }
 0x459   : > { %v4897_v33 = vadd.f32 %v4896_v5, %v4568_v37 }
 0x45a   : > { %v5228_v60 = vpop.f32.mrf.mxu1 }
 0x45b   : > { %v5226_v55 = vadd.f32 %v5225_v31, %v4897_v33  ;;  %4609 = vmatmul.bf16.gmra.mxu3 %v6563_v46  ;;  %4938 = vmatmul.bf16.gmra.mxu0 %v6567_v54  ;;  %v6591_v46 = vor.u32 %v8211_v18, %v6588_v24  ;;  %v6595_v54 = vor.u32 %v8215_v43, %v6594_v25  ;;  %v8218_v18 = vld [vmem:[%s8735_s30 + $0x4a4] sm:$0xf]  ;;  %v6616_v24 = vld [vmem:[%s8735_s30 + $0x4bc] sm:$0xf0]  ;;  %v6622_v25 = vld [vmem:[%s8735_s30 + $0x4a8] sm:$0xf] }
 0x45c   : > { %8023 = vmatmul.msk.bf16.gmra.mxu2 %vm3326_vm0, %v6575_v8  ;;  %v6603_v8 = vor.u32 %v8216_v62, %v6602_v49  ;;  %v8222_v43 = vld [vmem:[%s8735_s30 + $0x4c0] sm:$0xf0]  ;;  %v6630_v49 = vld [vmem:[%s8735_s30 + $0x4b0] sm:$0xf]  ;;  %v8223_v62 = vld [vmem:[%s8735_s30 + $0x4c8] sm:$0xf0] }
 0x45d   : > { %5267 = vmatmul.bf16.gmra.mxu1 %v6571_v63  ;;  %v5555_v57 = vadd.f32 %v5554_v6, %v5226_v55  ;;  %v6599_v63 = vor.u32 %v8212_v61, %v6596_v23  ;;  %v8219_v61 = vld [vmem:[%s8735_s30 + $0x4ac] sm:$0xf]  ;;  %v6624_v23 = vld [vmem:[%s8735_s30 + $0x4c4] sm:$0xf0] }
 0x45e   : > { %v4570_v59 = vpop.f32.mrf.mxu3 }
 0x45f   : > { %5844 = vst.msk [vmem:[%s9911_s29 + $0xa8] sm:$0xff] %vm5822_vm1, %v5555_v57  ;;  %v4571_v41 = vadd.f32 %v4570_v59, %v10896_v26  ;;  %v5557_v50 = vpop.f32.mrf.mxu2  ;;  %v10898_v26 = vld [vmem:[#allocation18_spill] sm:$0xff] }
 0x460   : > { %v4901_v5 = vpop.f32.mrf.mxu0 }
 0x461   : > { %v4900_v40 = vadd.f32 %v4899_v39, %v4571_v41 }
 0x462   : > { %v5230_v31 = vpop.f32.mrf.mxu1 }
 0x463   : > { %v5229_v48 = vadd.f32 %v5228_v60, %v4900_v40 }
 0x465   : > { %v5558_v2 = vadd.f32 %v5557_v50, %v5229_v48 }
 0x466   : > { %v4572_v42 = vpop.f32.mrf.mxu3 }
 0x467   : > { %5845 = vst.msk [vmem:[%s9911_s29 + $0xb0] sm:$0xff] %vm5822_vm1, %v5558_v2  ;;  %v4573_v37 = vadd.f32 %v4572_v42, %v10897_v51  ;;  %v5559_v6 = vpop.f32.mrf.mxu2  ;;  %v10899_v51 = vld [vmem:[#allocation19_spill] sm:$0xff] }
 0x468   : > { %v4904_v39 = vpop.f32.mrf.mxu0 }
 0x469   : > { %v4902_v33 = vadd.f32 %v4901_v5, %v4573_v37 }
 0x46a   : > { %v5233_v60 = vpop.f32.mrf.mxu1 }
 0x46b   : > { %v5231_v55 = vadd.f32 %v5230_v31, %v4902_v33  ;;  %4614 = vmatmul.bf16.gmra.mxu3 %v6591_v46  ;;  %4943 = vmatmul.bf16.gmra.mxu0 %v6595_v54  ;;  %v6619_v46 = vor.u32 %v8218_v18, %v6616_v24  ;;  %v6623_v54 = vor.u32 %v8222_v43, %v6622_v25  ;;  %v8225_v18 = vld [vmem:[%s8735_s30 + $0x4dc] sm:$0xf]  ;;  %v6644_v24 = vld [vmem:[%s8735_s30 + $0x4f4] sm:$0xf0]  ;;  %v6650_v25 = vld [vmem:[%s8735_s30 + $0x4e0] sm:$0xf] }
 0x46c   : > { %8024 = vmatmul.msk.bf16.gmra.mxu2 %vm3326_vm0, %v6603_v8  ;;  %v6631_v8 = vor.u32 %v8223_v62, %v6630_v49  ;;  %v8229_v43 = vld [vmem:[%s8735_s30 + $0x4f8] sm:$0xf0]  ;;  %v6658_v49 = vld [vmem:[%s8735_s30 + $0x4e8] sm:$0xf]  ;;  %v8230_v62 = vld [vmem:[%s8735_s30 + $0x500] sm:$0xf0] }
 0x46d   : > { %5272 = vmatmul.bf16.gmra.mxu1 %v6599_v63  ;;  %v5560_v57 = vadd.f32 %v5559_v6, %v5231_v55  ;;  %v6627_v63 = vor.u32 %v8219_v61, %v6624_v23  ;;  %v8226_v61 = vld [vmem:[%s8735_s30 + $0x4e4] sm:$0xf]  ;;  %v6652_v23 = vld [vmem:[%s8735_s30 + $0x4fc] sm:$0xf0] }
 0x46e   : > { %v4575_v59 = vpop.f32.mrf.mxu3 }
 0x46f   : > { %5846 = vst.msk [vmem:[%s9911_s29 + $0xb8] sm:$0xff] %vm5822_vm1, %v5560_v57  ;;  %v4576_v41 = vadd.f32 %v4575_v59, %v10898_v26  ;;  %v5562_v50 = vpop.f32.mrf.mxu2  ;;  %v10900_v26 = vld [vmem:[#allocation20_spill] sm:$0xff] }
 0x470   : > { %v4906_v5 = vpop.f32.mrf.mxu0 }
 0x471   : > { %v4905_v40 = vadd.f32 %v4904_v39, %v4576_v41 }
 0x472   : > { %v5235_v31 = vpop.f32.mrf.mxu1 }
 0x473   : > { %v5234_v48 = vadd.f32 %v5233_v60, %v4905_v40 }
 0x475   : > { %v5563_v2 = vadd.f32 %v5562_v50, %v5234_v48 }
 0x476   : > { %v4577_v42 = vpop.f32.mrf.mxu3 }
 0x477   : > { %5847 = vst.msk [vmem:[%s9911_s29 + $0xc0] sm:$0xff] %vm5822_vm1, %v5563_v2  ;;  %v4578_v37 = vadd.f32 %v4577_v42, %v10899_v51  ;;  %v5564_v6 = vpop.f32.mrf.mxu2  ;;  %v10901_v51 = vld [vmem:[#allocation21_spill] sm:$0xff] }
 0x478   : > { %v4909_v39 = vpop.f32.mrf.mxu0 }
 0x479   : > { %v4907_v33 = vadd.f32 %v4906_v5, %v4578_v37 }
 0x47a   : > { %v5238_v60 = vpop.f32.mrf.mxu1 }
 0x47b   : > { %v5236_v55 = vadd.f32 %v5235_v31, %v4907_v33  ;;  %4619 = vmatmul.bf16.gmra.mxu3 %v6619_v46  ;;  %4948 = vmatmul.bf16.gmra.mxu0 %v6623_v54  ;;  %v6647_v46 = vor.u32 %v8225_v18, %v6644_v24  ;;  %v6651_v54 = vor.u32 %v8229_v43, %v6650_v25  ;;  %v8232_v18 = vld [vmem:[%s8735_s30 + $0x514] sm:$0xf]  ;;  %v6672_v24 = vld [vmem:[%s8735_s30 + $0x52c] sm:$0xf0]  ;;  %v6678_v25 = vld [vmem:[%s8735_s30 + $0x518] sm:$0xf] }
 0x47c   : > { %8025 = vmatmul.msk.bf16.gmra.mxu2 %vm3326_vm0, %v6631_v8  ;;  %v6659_v8 = vor.u32 %v8230_v62, %v6658_v49  ;;  %v8236_v43 = vld [vmem:[%s8735_s30 + $0x530] sm:$0xf0]  ;;  %v6686_v49 = vld [vmem:[%s8735_s30 + $0x520] sm:$0xf]  ;;  %v8237_v62 = vld [vmem:[%s8735_s30 + $0x538] sm:$0xf0] }
 0x47d   : > { %5277 = vmatmul.bf16.gmra.mxu1 %v6627_v63  ;;  %v5565_v57 = vadd.f32 %v5564_v6, %v5236_v55  ;;  %v6655_v63 = vor.u32 %v8226_v61, %v6652_v23  ;;  %v8233_v61 = vld [vmem:[%s8735_s30 + $0x51c] sm:$0xf]  ;;  %v6680_v23 = vld [vmem:[%s8735_s30 + $0x534] sm:$0xf0] }
 0x47e   : > { %v4580_v59 = vpop.f32.mrf.mxu3 }
 0x47f   : > { %5848 = vst.msk [vmem:[%s9911_s29 + $0xc8] sm:$0xff] %vm5822_vm1, %v5565_v57  ;;  %v4581_v41 = vadd.f32 %v4580_v59, %v10900_v26  ;;  %v5567_v50 = vpop.f32.mrf.mxu2  ;;  %v10902_v26 = vld [vmem:[#allocation22_spill] sm:$0xff] }
 0x480   : > { %v4911_v5 = vpop.f32.mrf.mxu0 }
 0x481   : > { %v4910_v40 = vadd.f32 %v4909_v39, %v4581_v41 }
 0x482   : > { %v5240_v31 = vpop.f32.mrf.mxu1 }
 0x483   : > { %v5239_v48 = vadd.f32 %v5238_v60, %v4910_v40 }
 0x485   : > { %v5568_v2 = vadd.f32 %v5567_v50, %v5239_v48 }
 0x486   : > { %v4582_v42 = vpop.f32.mrf.mxu3 }
 0x487   : > { %5849 = vst.msk [vmem:[%s9911_s29 + $0xd0] sm:$0xff] %vm5822_vm1, %v5568_v2  ;;  %v4583_v37 = vadd.f32 %v4582_v42, %v10901_v51  ;;  %v5569_v6 = vpop.f32.mrf.mxu2  ;;  %v10903_v51 = vld [vmem:[#allocation23_spill] sm:$0xff] }
 0x488   : > { %v4914_v39 = vpop.f32.mrf.mxu0 }
 0x489   : > { %v4912_v33 = vadd.f32 %v4911_v5, %v4583_v37 }
 0x48a   : > { %v5243_v60 = vpop.f32.mrf.mxu1 }
 0x48b   : > { %v5241_v55 = vadd.f32 %v5240_v31, %v4912_v33  ;;  %4624 = vmatmul.bf16.gmra.mxu3 %v6647_v46  ;;  %4953 = vmatmul.bf16.gmra.mxu0 %v6651_v54  ;;  %v6675_v46 = vor.u32 %v8232_v18, %v6672_v24  ;;  %v6679_v54 = vor.u32 %v8236_v43, %v6678_v25  ;;  %v8239_v18 = vld [vmem:[%s8735_s30 + $0x54c] sm:$0xf]  ;;  %v6700_v24 = vld [vmem:[%s8735_s30 + $0x564] sm:$0xf0]  ;;  %v6706_v25 = vld [vmem:[%s8735_s30 + $0x550] sm:$0xf] }
 0x48c   : > { %8026 = vmatmul.msk.bf16.gmra.mxu2 %vm3326_vm0, %v6659_v8  ;;  %v6687_v8 = vor.u32 %v8237_v62, %v6686_v49  ;;  %v8243_v43 = vld [vmem:[%s8735_s30 + $0x568] sm:$0xf0]  ;;  %v6714_v49 = vld [vmem:[%s8735_s30 + $0x558] sm:$0xf]  ;;  %v8244_v62 = vld [vmem:[%s8735_s30 + $0x570] sm:$0xf0] }
 0x48d   : > { %5282 = vmatmul.bf16.gmra.mxu1 %v6655_v63  ;;  %v5570_v57 = vadd.f32 %v5569_v6, %v5241_v55  ;;  %v6683_v63 = vor.u32 %v8233_v61, %v6680_v23  ;;  %v8240_v61 = vld [vmem:[%s8735_s30 + $0x554] sm:$0xf]  ;;  %v6708_v23 = vld [vmem:[%s8735_s30 + $0x56c] sm:$0xf0] }
 0x48e   : > { %v4585_v59 = vpop.f32.mrf.mxu3 }
 0x48f   : > { %5850 = vst.msk [vmem:[%s9911_s29 + $0xd8] sm:$0xff] %vm5822_vm1, %v5570_v57  ;;  %v4586_v41 = vadd.f32 %v4585_v59, %v10902_v26  ;;  %v5572_v50 = vpop.f32.mrf.mxu2  ;;  %v10904_v26 = vld [vmem:[#allocation24_spill] sm:$0xff] }
 0x490   : > { %v4916_v5 = vpop.f32.mrf.mxu0 }
 0x491   : > { %v4915_v40 = vadd.f32 %v4914_v39, %v4586_v41 }
 0x492   : > { %v5245_v31 = vpop.f32.mrf.mxu1 }
 0x493   : > { %v5244_v48 = vadd.f32 %v5243_v60, %v4915_v40 }
 0x495   : > { %v5573_v2 = vadd.f32 %v5572_v50, %v5244_v48 }
 0x496   : > { %v4587_v42 = vpop.f32.mrf.mxu3 }
 0x497   : > { %5851 = vst.msk [vmem:[%s9911_s29 + $0xe0] sm:$0xff] %vm5822_vm1, %v5573_v2  ;;  %v4588_v37 = vadd.f32 %v4587_v42, %v10903_v51  ;;  %v5574_v6 = vpop.f32.mrf.mxu2  ;;  %v10905_v51 = vld [vmem:[#allocation25_spill] sm:$0xff] }
 0x498   : > { %v4919_v39 = vpop.f32.mrf.mxu0 }
 0x499   : > { %v4917_v33 = vadd.f32 %v4916_v5, %v4588_v37 }
 0x49a   : > { %v5248_v60 = vpop.f32.mrf.mxu1 }
 0x49b   : > { %v5246_v55 = vadd.f32 %v5245_v31, %v4917_v33  ;;  %4629 = vmatmul.bf16.gmra.mxu3 %v6675_v46  ;;  %4958 = vmatmul.bf16.gmra.mxu0 %v6679_v54  ;;  %v6703_v46 = vor.u32 %v8239_v18, %v6700_v24  ;;  %v6707_v54 = vor.u32 %v8243_v43, %v6706_v25  ;;  %v8246_v18 = vld [vmem:[%s8735_s30 + $0x584] sm:$0xf]  ;;  %v6728_v24 = vld [vmem:[%s8735_s30 + $0x59c] sm:$0xf0]  ;;  %v6734_v25 = vld [vmem:[%s8735_s30 + $0x588] sm:$0xf] }
 0x49c   : > { %8027 = vmatmul.msk.bf16.gmra.mxu2 %vm3326_vm0, %v6687_v8  ;;  %v6715_v8 = vor.u32 %v8244_v62, %v6714_v49  ;;  %v8250_v43 = vld [vmem:[%s8735_s30 + $0x5a0] sm:$0xf0]  ;;  %v6742_v49 = vld [vmem:[%s8735_s30 + $0x590] sm:$0xf]  ;;  %v8251_v62 = vld [vmem:[%s8735_s30 + $0x5a8] sm:$0xf0] }
 0x49d   : > { %5287 = vmatmul.bf16.gmra.mxu1 %v6683_v63  ;;  %v5575_v57 = vadd.f32 %v5574_v6, %v5246_v55  ;;  %v6711_v63 = vor.u32 %v8240_v61, %v6708_v23  ;;  %v8247_v61 = vld [vmem:[%s8735_s30 + $0x58c] sm:$0xf]  ;;  %v6736_v23 = vld [vmem:[%s8735_s30 + $0x5a4] sm:$0xf0] }
 0x49e   : > { %v4590_v59 = vpop.f32.mrf.mxu3 }
 0x49f   : > { %5852 = vst.msk [vmem:[%s9911_s29 + $0xe8] sm:$0xff] %vm5822_vm1, %v5575_v57  ;;  %v4591_v41 = vadd.f32 %v4590_v59, %v10904_v26  ;;  %v5577_v50 = vpop.f32.mrf.mxu2  ;;  %v10906_v26 = vld [vmem:[#allocation26_spill] sm:$0xff] }
 0x4a0   : > { %v4921_v5 = vpop.f32.mrf.mxu0 }
 0x4a1   : > { %v4920_v40 = vadd.f32 %v4919_v39, %v4591_v41 }
 0x4a2   : > { %v5250_v31 = vpop.f32.mrf.mxu1 }
 0x4a3   : > { %v5249_v48 = vadd.f32 %v5248_v60, %v4920_v40 }
 0x4a5   : > { %v5578_v2 = vadd.f32 %v5577_v50, %v5249_v48 }
 0x4a6   : > { %v4592_v42 = vpop.f32.mrf.mxu3 }
 0x4a7   : > { %5853 = vst.msk [vmem:[%s9911_s29 + $0xf0] sm:$0xff] %vm5822_vm1, %v5578_v2  ;;  %v4593_v37 = vadd.f32 %v4592_v42, %v10905_v51  ;;  %v5579_v6 = vpop.f32.mrf.mxu2  ;;  %v10907_v51 = vld [vmem:[#allocation27_spill] sm:$0xff] }
 0x4a8   : > { %v4924_v39 = vpop.f32.mrf.mxu0 }
 0x4a9   : > { %v4922_v33 = vadd.f32 %v4921_v5, %v4593_v37 }
 0x4aa   : > { %v5253_v60 = vpop.f32.mrf.mxu1 }
 0x4ab   : > { %v5251_v55 = vadd.f32 %v5250_v31, %v4922_v33  ;;  %4634 = vmatmul.bf16.gmra.mxu3 %v6703_v46  ;;  %4963 = vmatmul.bf16.gmra.mxu0 %v6707_v54  ;;  %v6731_v46 = vor.u32 %v8246_v18, %v6728_v24  ;;  %v6735_v54 = vor.u32 %v8250_v43, %v6734_v25  ;;  %v8253_v18 = vld [vmem:[%s8735_s30 + $0x5bc] sm:$0xf]  ;;  %v6756_v24 = vld [vmem:[%s8735_s30 + $0x5d4] sm:$0xf0]  ;;  %v6762_v25 = vld [vmem:[%s8735_s30 + $0x5c0] sm:$0xf] }
 0x4ac   : > { %8028 = vmatmul.msk.bf16.gmra.mxu2 %vm3326_vm0, %v6715_v8  ;;  %v6743_v8 = vor.u32 %v8251_v62, %v6742_v49  ;;  %v8257_v43 = vld [vmem:[%s8735_s30 + $0x5d8] sm:$0xf0]  ;;  %v6770_v49 = vld [vmem:[%s8735_s30 + $0x5c8] sm:$0xf]  ;;  %v8258_v62 = vld [vmem:[%s8735_s30 + $0x5e0] sm:$0xf0] }
 0x4ad   : > { %5292 = vmatmul.bf16.gmra.mxu1 %v6711_v63  ;;  %v5580_v57 = vadd.f32 %v5579_v6, %v5251_v55  ;;  %v6739_v63 = vor.u32 %v8247_v61, %v6736_v23  ;;  %v8254_v61 = vld [vmem:[%s8735_s30 + $0x5c4] sm:$0xf]  ;;  %v6764_v23 = vld [vmem:[%s8735_s30 + $0x5dc] sm:$0xf0] }
 0x4ae   : > { %v4595_v59 = vpop.f32.mrf.mxu3 }
 0x4af   : > { %5854 = vst.msk [vmem:[%s9911_s29 + $0xf8] sm:$0xff] %vm5822_vm1, %v5580_v57  ;;  %v4596_v41 = vadd.f32 %v4595_v59, %v10906_v26  ;;  %v5582_v50 = vpop.f32.mrf.mxu2  ;;  %v10908_v26 = vld [vmem:[#allocation28_spill] sm:$0xff] }
 0x4b0   : > { %v4926_v5 = vpop.f32.mrf.mxu0 }
 0x4b1   : > { %v4925_v40 = vadd.f32 %v4924_v39, %v4596_v41 }
 0x4b2   : > { %v5255_v31 = vpop.f32.mrf.mxu1 }
 0x4b3   : > { %v5254_v48 = vadd.f32 %v5253_v60, %v4925_v40 }
 0x4b5   : > { %v5583_v2 = vadd.f32 %v5582_v50, %v5254_v48 }
 0x4b6   : > { %v4597_v42 = vpop.f32.mrf.mxu3 }
 0x4b7   : > { %5855 = vst.msk [vmem:[%s9911_s29 + $0x100] sm:$0xff] %vm5822_vm1, %v5583_v2  ;;  %v4598_v37 = vadd.f32 %v4597_v42, %v10907_v51  ;;  %v5584_v6 = vpop.f32.mrf.mxu2  ;;  %v10909_v51 = vld [vmem:[#allocation29_spill] sm:$0xff] }
 0x4b8   : > { %v4929_v39 = vpop.f32.mrf.mxu0 }
 0x4b9   : > { %v4927_v33 = vadd.f32 %v4926_v5, %v4598_v37 }
 0x4ba   : > { %v5258_v60 = vpop.f32.mrf.mxu1 }
 0x4bb   : > { %v5256_v55 = vadd.f32 %v5255_v31, %v4927_v33  ;;  %4639 = vmatmul.bf16.gmra.mxu3 %v6731_v46  ;;  %4968 = vmatmul.bf16.gmra.mxu0 %v6735_v54  ;;  %v6759_v46 = vor.u32 %v8253_v18, %v6756_v24  ;;  %v6763_v54 = vor.u32 %v8257_v43, %v6762_v25  ;;  %v8260_v18 = vld [vmem:[%s8735_s30 + $0x5f4] sm:$0xf]  ;;  %v6784_v24 = vld [vmem:[%s8735_s30 + $0x60c] sm:$0xf0]  ;;  %v6790_v25 = vld [vmem:[%s8735_s30 + $0x5f8] sm:$0xf] }
 0x4bc   : > { %8029 = vmatmul.msk.bf16.gmra.mxu2 %vm3326_vm0, %v6743_v8  ;;  %v6771_v8 = vor.u32 %v8258_v62, %v6770_v49  ;;  %v8264_v43 = vld [vmem:[%s8735_s30 + $0x610] sm:$0xf0]  ;;  %v6798_v49 = vld [vmem:[%s8735_s30 + $0x600] sm:$0xf]  ;;  %v8265_v62 = vld [vmem:[%s8735_s30 + $0x618] sm:$0xf0] }
 0x4bd   : > { %5297 = vmatmul.bf16.gmra.mxu1 %v6739_v63  ;;  %v5585_v57 = vadd.f32 %v5584_v6, %v5256_v55  ;;  %v6767_v63 = vor.u32 %v8254_v61, %v6764_v23  ;;  %v8261_v61 = vld [vmem:[%s8735_s30 + $0x5fc] sm:$0xf]  ;;  %v6792_v23 = vld [vmem:[%s8735_s30 + $0x614] sm:$0xf0] }
 0x4be   : > { %v4600_v59 = vpop.f32.mrf.mxu3 }
 0x4bf   : > { %5856 = vst.msk [vmem:[%s9911_s29 + $0x108] sm:$0xff] %vm5822_vm1, %v5585_v57  ;;  %v4601_v41 = vadd.f32 %v4600_v59, %v10908_v26  ;;  %v5587_v50 = vpop.f32.mrf.mxu2  ;;  %v10910_v26 = vld [vmem:[#allocation30_spill] sm:$0xff] }
 0x4c0   : > { %v4931_v5 = vpop.f32.mrf.mxu0 }
 0x4c1   : > { %v4930_v40 = vadd.f32 %v4929_v39, %v4601_v41 }
 0x4c2   : > { %v5260_v31 = vpop.f32.mrf.mxu1 }
 0x4c3   : > { %v5259_v48 = vadd.f32 %v5258_v60, %v4930_v40 }
 0x4c5   : > { %v5588_v2 = vadd.f32 %v5587_v50, %v5259_v48 }
 0x4c6   : > { %v4602_v42 = vpop.f32.mrf.mxu3 }
 0x4c7   : > { %5857 = vst.msk [vmem:[%s9911_s29 + $0x110] sm:$0xff] %vm5822_vm1, %v5588_v2  ;;  %v4603_v37 = vadd.f32 %v4602_v42, %v10909_v51  ;;  %v5589_v6 = vpop.f32.mrf.mxu2  ;;  %v10911_v51 = vld [vmem:[#allocation31_spill] sm:$0xff] }
 0x4c8   : > { %v4934_v39 = vpop.f32.mrf.mxu0 }
 0x4c9   : > { %v4932_v33 = vadd.f32 %v4931_v5, %v4603_v37 }
 0x4ca   : > { %v5263_v60 = vpop.f32.mrf.mxu1 }
 0x4cb   : > { %v5261_v55 = vadd.f32 %v5260_v31, %v4932_v33  ;;  %4644 = vmatmul.bf16.gmra.mxu3 %v6759_v46  ;;  %4973 = vmatmul.bf16.gmra.mxu0 %v6763_v54  ;;  %v6787_v46 = vor.u32 %v8260_v18, %v6784_v24  ;;  %v6791_v54 = vor.u32 %v8264_v43, %v6790_v25  ;;  %v8267_v18 = vld [vmem:[%s8735_s30 + $0x62c] sm:$0xf]  ;;  %v6812_v24 = vld [vmem:[%s8735_s30 + $0x644] sm:$0xf0]  ;;  %v6818_v25 = vld [vmem:[%s8735_s30 + $0x630] sm:$0xf] }
 0x4cc   : > { %8030 = vmatmul.msk.bf16.gmra.mxu2 %vm3326_vm0, %v6771_v8  ;;  %v6799_v8 = vor.u32 %v8265_v62, %v6798_v49  ;;  %v8271_v43 = vld [vmem:[%s8735_s30 + $0x648] sm:$0xf0]  ;;  %v6826_v49 = vld [vmem:[%s8735_s30 + $0x638] sm:$0xf]  ;;  %v8272_v62 = vld [vmem:[%s8735_s30 + $0x650] sm:$0xf0] }
 0x4cd   : > { %5302 = vmatmul.bf16.gmra.mxu1 %v6767_v63  ;;  %v5590_v57 = vadd.f32 %v5589_v6, %v5261_v55  ;;  %v6795_v63 = vor.u32 %v8261_v61, %v6792_v23  ;;  %v8268_v61 = vld [vmem:[%s8735_s30 + $0x634] sm:$0xf]  ;;  %v6820_v23 = vld [vmem:[%s8735_s30 + $0x64c] sm:$0xf0] }
 0x4ce   : > { %v4605_v59 = vpop.f32.mrf.mxu3 }
 0x4cf   : > { %5858 = vst.msk [vmem:[%s9911_s29 + $0x118] sm:$0xff] %vm5822_vm1, %v5590_v57  ;;  %v4606_v41 = vadd.f32 %v4605_v59, %v10910_v26  ;;  %v5592_v50 = vpop.f32.mrf.mxu2  ;;  %v10912_v26 = vld [vmem:[#allocation32_spill] sm:$0xff] }
 0x4d0   : > { %v4936_v5 = vpop.f32.mrf.mxu0 }
 0x4d1   : > { %v4935_v40 = vadd.f32 %v4934_v39, %v4606_v41 }
 0x4d2   : > { %v5265_v31 = vpop.f32.mrf.mxu1 }
 0x4d3   : > { %v5264_v48 = vadd.f32 %v5263_v60, %v4935_v40 }
 0x4d5   : > { %v5593_v2 = vadd.f32 %v5592_v50, %v5264_v48 }
 0x4d6   : > { %v4607_v42 = vpop.f32.mrf.mxu3 }
 0x4d7   : > { %5859 = vst.msk [vmem:[%s9911_s29 + $0x120] sm:$0xff] %vm5822_vm1, %v5593_v2  ;;  %v4608_v37 = vadd.f32 %v4607_v42, %v10911_v51  ;;  %v5594_v6 = vpop.f32.mrf.mxu2  ;;  %v10913_v51 = vld [vmem:[#allocation33_spill] sm:$0xff] }
 0x4d8   : > { %v4939_v39 = vpop.f32.mrf.mxu0 }
 0x4d9   : > { %v4937_v33 = vadd.f32 %v4936_v5, %v4608_v37 }
 0x4da   : > { %v5268_v60 = vpop.f32.mrf.mxu1 }
 0x4db   : > { %v5266_v55 = vadd.f32 %v5265_v31, %v4937_v33  ;;  %4649 = vmatmul.bf16.gmra.mxu3 %v6787_v46  ;;  %4978 = vmatmul.bf16.gmra.mxu0 %v6791_v54  ;;  %v6815_v46 = vor.u32 %v8267_v18, %v6812_v24  ;;  %v6819_v54 = vor.u32 %v8271_v43, %v6818_v25  ;;  %v8274_v18 = vld [vmem:[%s8735_s30 + $0x664] sm:$0xf]  ;;  %v6840_v24 = vld [vmem:[%s8735_s30 + $0x67c] sm:$0xf0]  ;;  %v6846_v25 = vld [vmem:[%s8735_s30 + $0x668] sm:$0xf] }
 0x4dc   : > { %8031 = vmatmul.msk.bf16.gmra.mxu2 %vm3326_vm0, %v6799_v8  ;;  %v6827_v8 = vor.u32 %v8272_v62, %v6826_v49  ;;  %v8278_v43 = vld [vmem:[%s8735_s30 + $0x680] sm:$0xf0]  ;;  %v6854_v49 = vld [vmem:[%s8735_s30 + $0x670] sm:$0xf]  ;;  %v8279_v62 = vld [vmem:[%s8735_s30 + $0x688] sm:$0xf0] }
 0x4dd   : > { %5307 = vmatmul.bf16.gmra.mxu1 %v6795_v63  ;;  %v5595_v57 = vadd.f32 %v5594_v6, %v5266_v55  ;;  %v6823_v63 = vor.u32 %v8268_v61, %v6820_v23  ;;  %v8275_v61 = vld [vmem:[%s8735_s30 + $0x66c] sm:$0xf]  ;;  %v6848_v23 = vld [vmem:[%s8735_s30 + $0x684] sm:$0xf0] }
 0x4de   : > { %v4610_v59 = vpop.f32.mrf.mxu3 }
 0x4df   : > { %5860 = vst.msk [vmem:[%s9911_s29 + $0x128] sm:$0xff] %vm5822_vm1, %v5595_v57  ;;  %v4611_v41 = vadd.f32 %v4610_v59, %v10912_v26  ;;  %v5597_v50 = vpop.f32.mrf.mxu2  ;;  %v10914_v26 = vld [vmem:[#allocation34_spill] sm:$0xff] }
 0x4e0   : > { %v4941_v5 = vpop.f32.mrf.mxu0 }
 0x4e1   : > { %v4940_v40 = vadd.f32 %v4939_v39, %v4611_v41 }
 0x4e2   : > { %v5270_v31 = vpop.f32.mrf.mxu1 }
 0x4e3   : > { %v5269_v48 = vadd.f32 %v5268_v60, %v4940_v40 }
 0x4e5   : > { %v5598_v2 = vadd.f32 %v5597_v50, %v5269_v48 }
 0x4e6   : > { %v4612_v42 = vpop.f32.mrf.mxu3 }
 0x4e7   : > { %5861 = vst.msk [vmem:[%s9911_s29 + $0x130] sm:$0xff] %vm5822_vm1, %v5598_v2  ;;  %v4613_v37 = vadd.f32 %v4612_v42, %v10913_v51  ;;  %v5599_v6 = vpop.f32.mrf.mxu2  ;;  %v10915_v51 = vld [vmem:[#allocation35_spill] sm:$0xff] }
 0x4e8   : > { %v4944_v39 = vpop.f32.mrf.mxu0 }
 0x4e9   : > { %v4942_v33 = vadd.f32 %v4941_v5, %v4613_v37 }
 0x4ea   : > { %v5273_v60 = vpop.f32.mrf.mxu1 }
 0x4eb   : > { %v5271_v55 = vadd.f32 %v5270_v31, %v4942_v33  ;;  %4654 = vmatmul.bf16.gmra.mxu3 %v6815_v46  ;;  %4983 = vmatmul.bf16.gmra.mxu0 %v6819_v54  ;;  %v6843_v46 = vor.u32 %v8274_v18, %v6840_v24  ;;  %v6847_v54 = vor.u32 %v8278_v43, %v6846_v25  ;;  %v8281_v18 = vld [vmem:[%s8735_s30 + $0x69c] sm:$0xf]  ;;  %v6868_v24 = vld [vmem:[%s8735_s30 + $0x6b4] sm:$0xf0]  ;;  %v6874_v25 = vld [vmem:[%s8735_s30 + $0x6a0] sm:$0xf] }
 0x4ec   : > { %8032 = vmatmul.msk.bf16.gmra.mxu2 %vm3326_vm0, %v6827_v8  ;;  %v6855_v8 = vor.u32 %v8279_v62, %v6854_v49  ;;  %v8285_v43 = vld [vmem:[%s8735_s30 + $0x6b8] sm:$0xf0]  ;;  %v6882_v49 = vld [vmem:[%s8735_s30 + $0x6a8] sm:$0xf]  ;;  %v8286_v62 = vld [vmem:[%s8735_s30 + $0x6c0] sm:$0xf0] }
 0x4ed   : > { %5312 = vmatmul.bf16.gmra.mxu1 %v6823_v63  ;;  %v5600_v57 = vadd.f32 %v5599_v6, %v5271_v55  ;;  %v6851_v63 = vor.u32 %v8275_v61, %v6848_v23  ;;  %v8282_v61 = vld [vmem:[%s8735_s30 + $0x6a4] sm:$0xf]  ;;  %v6876_v23 = vld [vmem:[%s8735_s30 + $0x6bc] sm:$0xf0] }
 0x4ee   : > { %v4615_v59 = vpop.f32.mrf.mxu3 }
 0x4ef   : > { %5862 = vst.msk [vmem:[%s9911_s29 + $0x138] sm:$0xff] %vm5822_vm1, %v5600_v57  ;;  %v4616_v41 = vadd.f32 %v4615_v59, %v10914_v26  ;;  %v5602_v50 = vpop.f32.mrf.mxu2  ;;  %v10916_v26 = vld [vmem:[#allocation36_spill] sm:$0xff] }
 0x4f0   : > { %v4946_v5 = vpop.f32.mrf.mxu0 }
 0x4f1   : > { %v4945_v40 = vadd.f32 %v4944_v39, %v4616_v41 }
 0x4f2   : > { %v5275_v31 = vpop.f32.mrf.mxu1 }
 0x4f3   : > { %v5274_v48 = vadd.f32 %v5273_v60, %v4945_v40 }
 0x4f5   : > { %v5603_v2 = vadd.f32 %v5602_v50, %v5274_v48 }
 0x4f6   : > { %v4617_v42 = vpop.f32.mrf.mxu3 }
 0x4f7   : > { %5863 = vst.msk [vmem:[%s9911_s29 + $0x140] sm:$0xff] %vm5822_vm1, %v5603_v2  ;;  %v4618_v37 = vadd.f32 %v4617_v42, %v10915_v51  ;;  %v5604_v6 = vpop.f32.mrf.mxu2  ;;  %v10917_v51 = vld [vmem:[#allocation37_spill] sm:$0xff] }
 0x4f8   : > { %v4949_v39 = vpop.f32.mrf.mxu0 }
 0x4f9   : > { %v4947_v33 = vadd.f32 %v4946_v5, %v4618_v37 }
 0x4fa   : > { %v5278_v60 = vpop.f32.mrf.mxu1 }
 0x4fb   : > { %v5276_v55 = vadd.f32 %v5275_v31, %v4947_v33  ;;  %4659 = vmatmul.bf16.gmra.mxu3 %v6843_v46  ;;  %4988 = vmatmul.bf16.gmra.mxu0 %v6847_v54  ;;  %v6871_v46 = vor.u32 %v8281_v18, %v6868_v24  ;;  %v6875_v54 = vor.u32 %v8285_v43, %v6874_v25  ;;  %v8288_v18 = vld [vmem:[%s8735_s30 + $0x6d4] sm:$0xf]  ;;  %v6896_v24 = vld [vmem:[%s8735_s30 + $0x6ec] sm:$0xf0]  ;;  %v6902_v25 = vld [vmem:[%s8735_s30 + $0x6d8] sm:$0xf] }
 0x4fc   : > { %8033 = vmatmul.msk.bf16.gmra.mxu2 %vm3326_vm0, %v6855_v8  ;;  %v6883_v8 = vor.u32 %v8286_v62, %v6882_v49  ;;  %v8292_v43 = vld [vmem:[%s8735_s30 + $0x6f0] sm:$0xf0]  ;;  %v6910_v49 = vld [vmem:[%s8735_s30 + $0x6e0] sm:$0xf]  ;;  %v8293_v62 = vld [vmem:[%s8735_s30 + $0x6f8] sm:$0xf0] }
 0x4fd   : > { %5317 = vmatmul.bf16.gmra.mxu1 %v6851_v63  ;;  %v5605_v57 = vadd.f32 %v5604_v6, %v5276_v55  ;;  %v6879_v63 = vor.u32 %v8282_v61, %v6876_v23  ;;  %v8289_v61 = vld [vmem:[%s8735_s30 + $0x6dc] sm:$0xf]  ;;  %v6904_v23 = vld [vmem:[%s8735_s30 + $0x6f4] sm:$0xf0] }
 0x4fe   : > { %v4620_v59 = vpop.f32.mrf.mxu3 }
 0x4ff   : > { %5864 = vst.msk [vmem:[%s9911_s29 + $0x148] sm:$0xff] %vm5822_vm1, %v5605_v57  ;;  %v4621_v41 = vadd.f32 %v4620_v59, %v10916_v26  ;;  %v5607_v50 = vpop.f32.mrf.mxu2  ;;  %v10918_v26 = vld [vmem:[#allocation38_spill] sm:$0xff] }
 0x500   : > { %v4951_v5 = vpop.f32.mrf.mxu0 }
 0x501   : > { %v4950_v40 = vadd.f32 %v4949_v39, %v4621_v41 }
 0x502   : > { %v5280_v31 = vpop.f32.mrf.mxu1 }
 0x503   : > { %v5279_v48 = vadd.f32 %v5278_v60, %v4950_v40 }
 0x505   : > { %v5608_v2 = vadd.f32 %v5607_v50, %v5279_v48 }
 0x506   : > { %v4622_v42 = vpop.f32.mrf.mxu3 }
 0x507   : > { %5865 = vst.msk [vmem:[%s9911_s29 + $0x150] sm:$0xff] %vm5822_vm1, %v5608_v2  ;;  %v4623_v37 = vadd.f32 %v4622_v42, %v10917_v51  ;;  %v5609_v6 = vpop.f32.mrf.mxu2  ;;  %v10919_v51 = vld [vmem:[#allocation39_spill] sm:$0xff] }
 0x508   : > { %v4954_v39 = vpop.f32.mrf.mxu0 }
 0x509   : > { %v4952_v33 = vadd.f32 %v4951_v5, %v4623_v37 }
 0x50a   : > { %v5283_v60 = vpop.f32.mrf.mxu1 }
 0x50b   : > { %v5281_v55 = vadd.f32 %v5280_v31, %v4952_v33  ;;  %4664 = vmatmul.bf16.gmra.mxu3 %v6871_v46  ;;  %4993 = vmatmul.bf16.gmra.mxu0 %v6875_v54  ;;  %v6899_v46 = vor.u32 %v8288_v18, %v6896_v24  ;;  %v6903_v54 = vor.u32 %v8292_v43, %v6902_v25  ;;  %v8295_v18 = vld [vmem:[%s8735_s30 + $0x70c] sm:$0xf]  ;;  %v6924_v24 = vld [vmem:[%s8735_s30 + $0x724] sm:$0xf0]  ;;  %v6930_v25 = vld [vmem:[%s8735_s30 + $0x710] sm:$0xf] }
 0x50c   : > { %8034 = vmatmul.msk.bf16.gmra.mxu2 %vm3326_vm0, %v6883_v8  ;;  %v6911_v8 = vor.u32 %v8293_v62, %v6910_v49  ;;  %v8299_v43 = vld [vmem:[%s8735_s30 + $0x728] sm:$0xf0]  ;;  %v6938_v49 = vld [vmem:[%s8735_s30 + $0x718] sm:$0xf]  ;;  %v8300_v62 = vld [vmem:[%s8735_s30 + $0x730] sm:$0xf0] }
 0x50d   : > { %5322 = vmatmul.bf16.gmra.mxu1 %v6879_v63  ;;  %v5610_v57 = vadd.f32 %v5609_v6, %v5281_v55  ;;  %v6907_v63 = vor.u32 %v8289_v61, %v6904_v23  ;;  %v8296_v61 = vld [vmem:[%s8735_s30 + $0x714] sm:$0xf]  ;;  %v6932_v23 = vld [vmem:[%s8735_s30 + $0x72c] sm:$0xf0] }
 0x50e   : > { %v4625_v59 = vpop.f32.mrf.mxu3 }
 0x50f   : > { %5866 = vst.msk [vmem:[%s9911_s29 + $0x158] sm:$0xff] %vm5822_vm1, %v5610_v57  ;;  %v4626_v41 = vadd.f32 %v4625_v59, %v10918_v26  ;;  %v5612_v50 = vpop.f32.mrf.mxu2  ;;  %v10920_v26 = vld [vmem:[#allocation40_spill] sm:$0xff] }
 0x510   : > { %v4956_v5 = vpop.f32.mrf.mxu0 }
 0x511   : > { %v4955_v40 = vadd.f32 %v4954_v39, %v4626_v41 }
 0x512   : > { %v5285_v31 = vpop.f32.mrf.mxu1 }
 0x513   : > { %v5284_v48 = vadd.f32 %v5283_v60, %v4955_v40 }
 0x515   : > { %v5613_v2 = vadd.f32 %v5612_v50, %v5284_v48 }
 0x516   : > { %v4627_v42 = vpop.f32.mrf.mxu3 }
 0x517   : > { %5867 = vst.msk [vmem:[%s9911_s29 + $0x160] sm:$0xff] %vm5822_vm1, %v5613_v2  ;;  %v4628_v37 = vadd.f32 %v4627_v42, %v10919_v51  ;;  %v5614_v6 = vpop.f32.mrf.mxu2  ;;  %v10921_v51 = vld [vmem:[#allocation41_spill] sm:$0xff] }
 0x518   : > { %v4959_v39 = vpop.f32.mrf.mxu0 }
 0x519   : > { %v4957_v33 = vadd.f32 %v4956_v5, %v4628_v37 }
 0x51a   : > { %v5288_v60 = vpop.f32.mrf.mxu1 }
 0x51b   : > { %v5286_v55 = vadd.f32 %v5285_v31, %v4957_v33  ;;  %4669 = vmatmul.bf16.gmra.mxu3 %v6899_v46  ;;  %4998 = vmatmul.bf16.gmra.mxu0 %v6903_v54  ;;  %v6927_v46 = vor.u32 %v8295_v18, %v6924_v24  ;;  %v6931_v54 = vor.u32 %v8299_v43, %v6930_v25  ;;  %v8302_v18 = vld [vmem:[%s8735_s30 + $0x744] sm:$0xf]  ;;  %v6952_v24 = vld [vmem:[%s8735_s30 + $0x75c] sm:$0xf0]  ;;  %v6958_v25 = vld [vmem:[%s8735_s30 + $0x748] sm:$0xf] }
 0x51c   : > { %8035 = vmatmul.msk.bf16.gmra.mxu2 %vm3326_vm0, %v6911_v8  ;;  %v6939_v8 = vor.u32 %v8300_v62, %v6938_v49  ;;  %v8306_v43 = vld [vmem:[%s8735_s30 + $0x760] sm:$0xf0]  ;;  %v6966_v49 = vld [vmem:[%s8735_s30 + $0x750] sm:$0xf]  ;;  %v8307_v62 = vld [vmem:[%s8735_s30 + $0x768] sm:$0xf0] }
 0x51d   : > { %5327 = vmatmul.bf16.gmra.mxu1 %v6907_v63  ;;  %v5615_v57 = vadd.f32 %v5614_v6, %v5286_v55  ;;  %v6935_v63 = vor.u32 %v8296_v61, %v6932_v23  ;;  %v8303_v61 = vld [vmem:[%s8735_s30 + $0x74c] sm:$0xf]  ;;  %v6960_v23 = vld [vmem:[%s8735_s30 + $0x764] sm:$0xf0] }
 0x51e   : > { %v4630_v59 = vpop.f32.mrf.mxu3 }
 0x51f   : > { %5868 = vst.msk [vmem:[%s9911_s29 + $0x168] sm:$0xff] %vm5822_vm1, %v5615_v57  ;;  %v4631_v41 = vadd.f32 %v4630_v59, %v10920_v26  ;;  %v5617_v50 = vpop.f32.mrf.mxu2  ;;  %v10922_v26 = vld [vmem:[#allocation42_spill] sm:$0xff] }
 0x520   : > { %v4961_v5 = vpop.f32.mrf.mxu0 }
 0x521   : > { %v4960_v40 = vadd.f32 %v4959_v39, %v4631_v41 }
 0x522   : > { %v5290_v31 = vpop.f32.mrf.mxu1 }
 0x523   : > { %v5289_v48 = vadd.f32 %v5288_v60, %v4960_v40 }
 0x525   : > { %v5618_v2 = vadd.f32 %v5617_v50, %v5289_v48 }
 0x526   : > { %v4632_v42 = vpop.f32.mrf.mxu3 }
 0x527   : > { %5869 = vst.msk [vmem:[%s9911_s29 + $0x170] sm:$0xff] %vm5822_vm1, %v5618_v2  ;;  %v4633_v37 = vadd.f32 %v4632_v42, %v10921_v51  ;;  %v5619_v6 = vpop.f32.mrf.mxu2  ;;  %v10923_v51 = vld [vmem:[#allocation43_spill] sm:$0xff] }
 0x528   : > { %v4964_v39 = vpop.f32.mrf.mxu0 }
 0x529   : > { %v4962_v33 = vadd.f32 %v4961_v5, %v4633_v37 }
 0x52a   : > { %v5293_v60 = vpop.f32.mrf.mxu1 }
 0x52b   : > { %v5291_v55 = vadd.f32 %v5290_v31, %v4962_v33  ;;  %4674 = vmatmul.bf16.gmra.mxu3 %v6927_v46  ;;  %5003 = vmatmul.bf16.gmra.mxu0 %v6931_v54  ;;  %v6955_v46 = vor.u32 %v8302_v18, %v6952_v24  ;;  %v6959_v54 = vor.u32 %v8306_v43, %v6958_v25  ;;  %v8309_v18 = vld [vmem:[%s8735_s30 + $0x77c] sm:$0xf]  ;;  %v6980_v24 = vld [vmem:[%s8735_s30 + $0x794] sm:$0xf0]  ;;  %v6986_v25 = vld [vmem:[%s8735_s30 + $0x780] sm:$0xf] }
 0x52c   : > { %8036 = vmatmul.msk.bf16.gmra.mxu2 %vm3326_vm0, %v6939_v8  ;;  %v6967_v8 = vor.u32 %v8307_v62, %v6966_v49  ;;  %v8313_v43 = vld [vmem:[%s8735_s30 + $0x798] sm:$0xf0]  ;;  %v6994_v49 = vld [vmem:[%s8735_s30 + $0x788] sm:$0xf]  ;;  %v8314_v62 = vld [vmem:[%s8735_s30 + $0x7a0] sm:$0xf0] }
 0x52d   : > { %5332 = vmatmul.bf16.gmra.mxu1 %v6935_v63  ;;  %v5620_v57 = vadd.f32 %v5619_v6, %v5291_v55  ;;  %v6963_v63 = vor.u32 %v8303_v61, %v6960_v23  ;;  %v8310_v61 = vld [vmem:[%s8735_s30 + $0x784] sm:$0xf]  ;;  %v6988_v23 = vld [vmem:[%s8735_s30 + $0x79c] sm:$0xf0] }
 0x52e   : > { %v4635_v59 = vpop.f32.mrf.mxu3 }
 0x52f   : > { %5870 = vst.msk [vmem:[%s9911_s29 + $0x178] sm:$0xff] %vm5822_vm1, %v5620_v57  ;;  %v4636_v41 = vadd.f32 %v4635_v59, %v10922_v26  ;;  %v5622_v50 = vpop.f32.mrf.mxu2  ;;  %v10924_v26 = vld [vmem:[#allocation44_spill] sm:$0xff] }
 0x530   : > { %v4966_v5 = vpop.f32.mrf.mxu0 }
 0x531   : > { %v4965_v40 = vadd.f32 %v4964_v39, %v4636_v41 }
 0x532   : > { %v5295_v31 = vpop.f32.mrf.mxu1 }
 0x533   : > { %v5294_v48 = vadd.f32 %v5293_v60, %v4965_v40 }
 0x535   : > { %v5623_v2 = vadd.f32 %v5622_v50, %v5294_v48 }
 0x536   : > { %v4637_v42 = vpop.f32.mrf.mxu3 }
 0x537   : > { %5871 = vst.msk [vmem:[%s9911_s29 + $0x180] sm:$0xff] %vm5822_vm1, %v5623_v2  ;;  %v4638_v37 = vadd.f32 %v4637_v42, %v10923_v51  ;;  %v5624_v6 = vpop.f32.mrf.mxu2  ;;  %v10925_v51 = vld [vmem:[#allocation45_spill] sm:$0xff] }
 0x538   : > { %v4969_v39 = vpop.f32.mrf.mxu0 }
 0x539   : > { %v4967_v33 = vadd.f32 %v4966_v5, %v4638_v37 }
 0x53a   : > { %v5298_v60 = vpop.f32.mrf.mxu1 }
 0x53b   : > { %v5296_v55 = vadd.f32 %v5295_v31, %v4967_v33  ;;  %4679 = vmatmul.bf16.gmra.mxu3 %v6955_v46  ;;  %5008 = vmatmul.bf16.gmra.mxu0 %v6959_v54  ;;  %v6983_v46 = vor.u32 %v8309_v18, %v6980_v24  ;;  %v6987_v54 = vor.u32 %v8313_v43, %v6986_v25  ;;  %v8316_v18 = vld [vmem:[%s8735_s30 + $0x7b4] sm:$0xf]  ;;  %v7008_v24 = vld [vmem:[%s8735_s30 + $0x7cc] sm:$0xf0]  ;;  %v7014_v25 = vld [vmem:[%s8735_s30 + $0x7b8] sm:$0xf] }
 0x53c   : > { %8037 = vmatmul.msk.bf16.gmra.mxu2 %vm3326_vm0, %v6967_v8  ;;  %v6995_v8 = vor.u32 %v8314_v62, %v6994_v49  ;;  %v8320_v43 = vld [vmem:[%s8735_s30 + $0x7d0] sm:$0xf0]  ;;  %v7022_v49 = vld [vmem:[%s8735_s30 + $0x7c0] sm:$0xf]  ;;  %v8321_v62 = vld [vmem:[%s8735_s30 + $0x7d8] sm:$0xf0] }
 0x53d   : > { %5337 = vmatmul.bf16.gmra.mxu1 %v6963_v63  ;;  %v5625_v57 = vadd.f32 %v5624_v6, %v5296_v55  ;;  %v6991_v63 = vor.u32 %v8310_v61, %v6988_v23  ;;  %v8317_v61 = vld [vmem:[%s8735_s30 + $0x7bc] sm:$0xf]  ;;  %v7016_v23 = vld [vmem:[%s8735_s30 + $0x7d4] sm:$0xf0] }
 0x53e   : > { %v4640_v59 = vpop.f32.mrf.mxu3 }
 0x53f   : > { %5872 = vst.msk [vmem:[%s9911_s29 + $0x188] sm:$0xff] %vm5822_vm1, %v5625_v57  ;;  %v4641_v41 = vadd.f32 %v4640_v59, %v10924_v26  ;;  %v5627_v50 = vpop.f32.mrf.mxu2  ;;  %v10926_v26 = vld [vmem:[#allocation46_spill] sm:$0xff] }
 0x540   : > { %v4971_v5 = vpop.f32.mrf.mxu0 }
 0x541   : > { %v4970_v40 = vadd.f32 %v4969_v39, %v4641_v41 }
 0x542   : > { %v5300_v31 = vpop.f32.mrf.mxu1 }
 0x543   : > { %v5299_v48 = vadd.f32 %v5298_v60, %v4970_v40 }
 0x545   : > { %v5628_v2 = vadd.f32 %v5627_v50, %v5299_v48 }
 0x546   : > { %v4642_v42 = vpop.f32.mrf.mxu3 }
 0x547   : > { %5873 = vst.msk [vmem:[%s9911_s29 + $0x190] sm:$0xff] %vm5822_vm1, %v5628_v2  ;;  %v4643_v37 = vadd.f32 %v4642_v42, %v10925_v51  ;;  %v5629_v6 = vpop.f32.mrf.mxu2 }
 0x548   : > { %v4974_v39 = vpop.f32.mrf.mxu0 }
 0x549   : > { %v4972_v33 = vadd.f32 %v4971_v5, %v4643_v37 }
 0x54a   : > { %v5303_v60 = vpop.f32.mrf.mxu1 }
 0x54b   : > { %v5301_v55 = vadd.f32 %v5300_v31, %v4972_v33  ;;  %4684 = vmatmul.bf16.gmra.mxu3 %v6983_v46  ;;  %5013 = vmatmul.bf16.gmra.mxu0 %v6987_v54  ;;  %v7015_v46 = vor.u32 %v8320_v43, %v7014_v25  ;;  %v7050_v25 = vld [vmem:[%s8735_s30 + $0x7f8] sm:$0xf] }
 0x54c   : > { %8038 = vmatmul.msk.bf16.gmra.mxu2 %vm3326_vm0, %v6995_v8  ;;  %v7019_v8 = vor.u32 %v8317_v61, %v7016_v23  ;;  %v10928_v23 = vld [vmem:[#allocation48_spill] sm:$0xff] }
 0x54d   : > { %5342 = vmatmul.bf16.gmra.mxu1 %v6991_v63  ;;  %v5630_v57 = vadd.f32 %v5629_v6, %v5301_v55  ;;  %v7011_v6 = vor.u32 %v8316_v18, %v7008_v24  ;;  %v7042_v18 = vld [vmem:[%s8735_s30 + $0x7f0] sm:$0xf]  ;;  %v8327_v24 = vld [vmem:[%s8735_s30 + $0x808] sm:$0xf0] }
 0x54e   : > { %v4645_v59 = vpop.f32.mrf.mxu3 }
 0x54f   : > { %5874 = vst.msk [vmem:[%s9911_s29 + $0x198] sm:$0xff] %vm5822_vm1, %v5630_v57  ;;  %v4646_v41 = vadd.f32 %v4645_v59, %v10926_v26  ;;  %v5632_v50 = vpop.f32.mrf.mxu2  ;;  %v10927_v57 = vld [vmem:[#allocation47_spill] sm:$0xff] }
 0x550   : > { %v4976_v5 = vpop.f32.mrf.mxu0 }
 0x551   : > { %v4975_v40 = vadd.f32 %v4974_v39, %v4646_v41  ;;  %v7023_v39 = vor.u32 %v8321_v62, %v7022_v49  ;;  %v8328_v49 = vld [vmem:[%s8735_s30 + $0x810] sm:$0xf0]  ;;  %v7044_v62 = vld [vmem:[%s8735_s30 + $0x80c] sm:$0xf0] }
 0x552   : > { %v5305_v31 = vpop.f32.mrf.mxu1 }
 0x553   : > { %v5304_v48 = vadd.f32 %v5303_v60, %v4975_v40 }
 0x555   : > { %v5633_v2 = vadd.f32 %v5632_v50, %v5304_v48  ;;  %v7036_v48 = vld [vmem:[%s8735_s30 + $0x804] sm:$0xf0] }
 0x556   : > { %v4647_v42 = vpop.f32.mrf.mxu3 }
 0x557   : > { %5875 = vst.msk [vmem:[%s9911_s29 + $0x1a0] sm:$0xff] %vm5822_vm1, %v5633_v2  ;;  %v4648_v51 = vadd.f32 %v4647_v42, %v9436_v12  ;;  %v5634_v37 = vpop.f32.mrf.mxu2  ;;  %v8324_v2 = vld [vmem:[%s8735_s30 + $0x7f4] sm:$0xf] }
 0x558   : > { %v4979_v54 = vpop.f32.mrf.mxu0 }
 0x559   : > { %v4977_v63 = vadd.f32 %v4976_v5, %v4648_v51 }
 0x55a   : > { %v5308_v33 = vpop.f32.mrf.mxu1 }
 0x55b   : > { %v5306_v60 = vadd.f32 %v5305_v31, %v4977_v63  ;;  %4689 = vmatmul.bf16.gmra.mxu3 %v7011_v6  ;;  %5018 = vmatmul.bf16.gmra.mxu0 %v7015_v46  ;;  %v8323_v31 = vld [vmem:[%s8735_s30 + $0x7ec] sm:$0xf]  ;;  %v7043_v6 = vor.u32 %v8327_v24, %v7042_v18  ;;  %v8334_v18 = vld [vmem:[%s8735_s30 + $0x840] sm:$0xf0]  ;;  %v7078_v24 = vld [vmem:[%s8735_s30 + $0x830] sm:$0xf] }
 0x55c   : > { %8039 = vmatmul.msk.bf16.gmra.mxu2 %vm3326_vm0, %v7023_v39  ;;  %v7047_v39 = vor.u32 %v8324_v2, %v7044_v62  ;;  %v7072_v2 = vld [vmem:[%s8735_s30 + $0x844] sm:$0xf0] }
 0x55d   : > { %5347 = vmatmul.bf16.gmra.mxu1 %v7019_v8  ;;  %v5635_v12 = vadd.f32 %v5634_v37, %v5306_v60  ;;  %v7039_v37 = vor.u32 %v8323_v31, %v7036_v48  ;;  %v7064_v31 = vld [vmem:[%s8735_s30 + $0x83c] sm:$0xf0]  ;;  %v7070_v48 = vld [vmem:[%s8735_s30 + $0x828] sm:$0xf] }
 0x55e   : > { %v4650_v55 = vpop.f32.mrf.mxu3 }
 0x55f   : > { %5876 = vst.msk [vmem:[%s9911_s29 + $0x1a8] sm:$0xff] %vm5822_vm1, %v5635_v12  ;;  %v4651_v59 = vadd.f32 %v4650_v55, %v10927_v57  ;;  %v5637_v26 = vpop.f32.mrf.mxu2  ;;  %v10929_v55 = vld [vmem:[#allocation49_spill] sm:$0xff] }
 0x560   : > { %v4981_v41 = vpop.f32.mrf.mxu0 }
 0x561   : > { %v4980_v50 = vadd.f32 %v4979_v54, %v4651_v59  ;;  %v7051_v54 = vor.u32 %v8328_v49, %v7050_v25  ;;  %v8331_v49 = vld [vmem:[%s8735_s30 + $0x82c] sm:$0xf] }
 0x562   : > { %v5310_v5 = vpop.f32.mrf.mxu1 }
 0x563   : > { %v5309_v40 = vadd.f32 %v5308_v33, %v4980_v50 }
 0x565   : > { %v5638_v43 = vadd.f32 %v5637_v26, %v5309_v40  ;;  %v8330_v40 = vld [vmem:[%s8735_s30 + $0x824] sm:$0xf] }
 0x566   : > { %v4652_v61 = vpop.f32.mrf.mxu3 }
 0x567   : > { %5877 = vst.msk [vmem:[%s9911_s29 + $0x1b0] sm:$0xff] %vm5822_vm1, %v5638_v43  ;;  %v4653_v42 = vadd.f32 %v4652_v61, %v10928_v23  ;;  %v5639_v51 = vpop.f32.mrf.mxu2  ;;  %v8335_v43 = vld [vmem:[%s8735_s30 + $0x848] sm:$0xf0]  ;;  %v10930_v61 = vld [vmem:[#allocation50_spill] sm:$0xff] }
 0x568   : > { %v4984_v46 = vpop.f32.mrf.mxu0 }
 0x569   : > { %v4982_v8 = vadd.f32 %v4981_v41, %v4653_v42 }
 0x56a   : > { %v5313_v63 = vpop.f32.mrf.mxu1 }
 0x56b   : > { %v5311_v33 = vadd.f32 %v5310_v5, %v4982_v8  ;;  %4694 = vmatmul.bf16.gmra.mxu3 %v7039_v37  ;;  %5023 = vmatmul.bf16.gmra.mxu0 %v7043_v6  ;;  %v7071_v37 = vor.u32 %v8334_v18, %v7070_v48  ;;  %v8341_v48 = vld [vmem:[%s8735_s30 + $0x878] sm:$0xf0]  ;;  %v7106_v18 = vld [vmem:[%s8735_s30 + $0x868] sm:$0xf] }
 0x56c   : > { %8040 = vmatmul.msk.bf16.gmra.mxu2 %vm3326_vm0, %v7051_v54  ;;  %v7075_v54 = vor.u32 %v8331_v49, %v7072_v2  ;;  %v7100_v49 = vld [vmem:[%s8735_s30 + $0x87c] sm:$0xf0] }
 0x56d   : > { %5352 = vmatmul.bf16.gmra.mxu1 %v7047_v39  ;;  %v5640_v60 = vadd.f32 %v5639_v51, %v5311_v33  ;;  %v7067_v51 = vor.u32 %v8330_v40, %v7064_v31  ;;  %v7092_v40 = vld [vmem:[%s8735_s30 + $0x874] sm:$0xf0]  ;;  %v7098_v31 = vld [vmem:[%s8735_s30 + $0x860] sm:$0xf] }
 0x56e   : > { %v4655_v12 = vpop.f32.mrf.mxu3 }
 0x56f   : > { %5878 = vst.msk [vmem:[%s9911_s29 + $0x1b8] sm:$0xff] %vm5822_vm1, %v5640_v60  ;;  %v4656_v57 = vadd.f32 %v4655_v12, %v10929_v55  ;;  %v5642_v59 = vpop.f32.mrf.mxu2  ;;  %v10931_v12 = vld [vmem:[#allocation51_spill] sm:$0xff] }
 0x570   : > { %v4986_v26 = vpop.f32.mrf.mxu0 }
 0x571   : > { %v4985_v41 = vadd.f32 %v4984_v46, %v4656_v57  ;;  %v7079_v46 = vor.u32 %v8335_v43, %v7078_v24  ;;  %v8338_v43 = vld [vmem:[%s8735_s30 + $0x864] sm:$0xf] }
 0x572   : > { %v5315_v50 = vpop.f32.mrf.mxu1 }
 0x573   : > { %v5314_v5 = vadd.f32 %v5313_v63, %v4985_v41 }
 0x575   : > { %v5643_v25 = vadd.f32 %v5642_v59, %v5314_v5  ;;  %v8337_v5 = vld [vmem:[%s8735_s30 + $0x85c] sm:$0xf] }
 0x576   : > { %v4657_v62 = vpop.f32.mrf.mxu3 }
 0x577   : > { %5879 = vst.msk [vmem:[%s9911_s29 + $0x1c0] sm:$0xff] %vm5822_vm1, %v5643_v25  ;;  %v4658_v23 = vadd.f32 %v4657_v62, %v10930_v61  ;;  %v5644_v42 = vpop.f32.mrf.mxu2  ;;  %v8342_v25 = vld [vmem:[%s8735_s30 + $0x880] sm:$0xf0]  ;;  %v10932_v62 = vld [vmem:[#allocation52_spill] sm:$0xff] }
 0x578   : > { %v4989_v6 = vpop.f32.mrf.mxu0 }
 0x579   : > { %v4987_v39 = vadd.f32 %v4986_v26, %v4658_v23 }
 0x57a   : > { %v5318_v8 = vpop.f32.mrf.mxu1 }
 0x57b   : > { %v5316_v63 = vadd.f32 %v5315_v50, %v4987_v39  ;;  %4699 = vmatmul.bf16.gmra.mxu3 %v7067_v51  ;;  %5028 = vmatmul.bf16.gmra.mxu0 %v7071_v37  ;;  %v7099_v51 = vor.u32 %v8341_v48, %v7098_v31  ;;  %v8348_v31 = vld [vmem:[%s8735_s30 + $0x8b0] sm:$0xf0]  ;;  %v7134_v48 = vld [vmem:[%s8735_s30 + $0x8a0] sm:$0xf] }
 0x57c   : > { %8041 = vmatmul.msk.bf16.gmra.mxu2 %vm3326_vm0, %v7079_v46  ;;  %v7103_v46 = vor.u32 %v8338_v43, %v7100_v49  ;;  %v7128_v43 = vld [vmem:[%s8735_s30 + $0x8b4] sm:$0xf0] }
 0x57d   : > { %5357 = vmatmul.bf16.gmra.mxu1 %v7075_v54  ;;  %v5645_v33 = vadd.f32 %v5644_v42, %v5316_v63  ;;  %v7095_v42 = vor.u32 %v8337_v5, %v7092_v40  ;;  %v7120_v5 = vld [vmem:[%s8735_s30 + $0x8ac] sm:$0xf0]  ;;  %v7126_v40 = vld [vmem:[%s8735_s30 + $0x898] sm:$0xf] }
 0x57e   : > { %v4660_v60 = vpop.f32.mrf.mxu3 }
 0x57f   : > { %5880 = vst.msk [vmem:[%s9911_s29 + $0x1c8] sm:$0xff] %vm5822_vm1, %v5645_v33  ;;  %v4661_v55 = vadd.f32 %v4660_v60, %v10931_v12  ;;  %v5647_v57 = vpop.f32.mrf.mxu2  ;;  %v10933_v60 = vld [vmem:[#allocation53_spill] sm:$0xff] }
 0x580   : > { %v4991_v59 = vpop.f32.mrf.mxu0 }
 0x581   : > { %v4990_v26 = vadd.f32 %v4989_v6, %v4661_v55  ;;  %v7107_v6 = vor.u32 %v8342_v25, %v7106_v18  ;;  %v8345_v25 = vld [vmem:[%s8735_s30 + $0x89c] sm:$0xf] }
 0x582   : > { %v5320_v41 = vpop.f32.mrf.mxu1 }
 0x583   : > { %v5319_v50 = vadd.f32 %v5318_v8, %v4990_v26 }
 0x585   : > { %v5648_v24 = vadd.f32 %v5647_v57, %v5319_v50  ;;  %v8344_v50 = vld [vmem:[%s8735_s30 + $0x894] sm:$0xf] }
 0x586   : > { %v4662_v2 = vpop.f32.mrf.mxu3 }
 0x587   : > { %5881 = vst.msk [vmem:[%s9911_s29 + $0x1d0] sm:$0xff] %vm5822_vm1, %v5648_v24  ;;  %v4663_v61 = vadd.f32 %v4662_v2, %v10932_v62  ;;  %v5649_v23 = vpop.f32.mrf.mxu2  ;;  %v8349_v24 = vld [vmem:[%s8735_s30 + $0x8b8] sm:$0xf0]  ;;  %v10934_v2 = vld [vmem:[#allocation54_spill] sm:$0xff] }
 0x588   : > { %v4994_v37 = vpop.f32.mrf.mxu0 }
 0x589   : > { %v4992_v54 = vadd.f32 %v4991_v59, %v4663_v61 }
 0x58a   : > { %v5323_v39 = vpop.f32.mrf.mxu1 }
 0x58b   : > { %v5321_v8 = vadd.f32 %v5320_v41, %v4992_v54  ;;  %4704 = vmatmul.bf16.gmra.mxu3 %v7095_v42  ;;  %5033 = vmatmul.bf16.gmra.mxu0 %v7099_v51  ;;  %v7127_v42 = vor.u32 %v8348_v31, %v7126_v40  ;;  %v8355_v40 = vld [vmem:[%s8735_s30 + $0x8e8] sm:$0xf0]  ;;  %v7162_v31 = vld [vmem:[%s8735_s30 + $0x8d8] sm:$0xf] }
 0x58c   : > { %8042 = vmatmul.msk.bf16.gmra.mxu2 %vm3326_vm0, %v7107_v6  ;;  %v7131_v6 = vor.u32 %v8345_v25, %v7128_v43  ;;  %v7156_v25 = vld [vmem:[%s8735_s30 + $0x8ec] sm:$0xf0] }
 0x58d   : > { %5362 = vmatmul.bf16.gmra.mxu1 %v7103_v46  ;;  %v5650_v63 = vadd.f32 %v5649_v23, %v5321_v8  ;;  %v7123_v23 = vor.u32 %v8344_v50, %v7120_v5  ;;  %v7148_v50 = vld [vmem:[%s8735_s30 + $0x8e4] sm:$0xf0]  ;;  %v7154_v5 = vld [vmem:[%s8735_s30 + $0x8d0] sm:$0xf] }
 0x58e   : > { %v4665_v33 = vpop.f32.mrf.mxu3 }
 0x58f   : > { %5882 = vst.msk [vmem:[%s9911_s29 + $0x1d8] sm:$0xff] %vm5822_vm1, %v5650_v63  ;;  %v4666_v12 = vadd.f32 %v4665_v33, %v10933_v60  ;;  %v5652_v55 = vpop.f32.mrf.mxu2  ;;  %v10935_v33 = vld [vmem:[#allocation55_spill] sm:$0xff] }
 0x590   : > { %v4996_v57 = vpop.f32.mrf.mxu0 }
 0x591   : > { %v4995_v59 = vadd.f32 %v4994_v37, %v4666_v12  ;;  %v7135_v37 = vor.u32 %v8349_v24, %v7134_v48  ;;  %v8352_v24 = vld [vmem:[%s8735_s30 + $0x8d4] sm:$0xf] }
 0x592   : > { %v5325_v26 = vpop.f32.mrf.mxu1 }
 0x593   : > { %v5324_v41 = vadd.f32 %v5323_v39, %v4995_v59 }
 0x595   : > { %v5653_v18 = vadd.f32 %v5652_v55, %v5324_v41  ;;  %v8351_v41 = vld [vmem:[%s8735_s30 + $0x8cc] sm:$0xf] }
 0x596   : > { %v4667_v49 = vpop.f32.mrf.mxu3 }
 0x597   : > { %5883 = vst.msk [vmem:[%s9911_s29 + $0x1e0] sm:$0xff] %vm5822_vm1, %v5653_v18  ;;  %v4668_v62 = vadd.f32 %v4667_v49, %v10934_v2  ;;  %v5654_v61 = vpop.f32.mrf.mxu2  ;;  %v8356_v18 = vld [vmem:[%s8735_s30 + $0x8f0] sm:$0xf0] }
 0x598   : > { %v4999_v51 = vpop.f32.mrf.mxu0 }
 0x599   : > { %v4997_v46 = vadd.f32 %v4996_v57, %v4668_v62  ;;  %v7151_v62 = vor.u32 %v8351_v41, %v7148_v50  ;;  %v8362_v41 = vld [vmem:[%s8735_s30 + $0x920] sm:$0xf0]  ;;  %v7190_v50 = vld [vmem:[%s8735_s30 + $0x910] sm:$0xf] }
 0x59a   : > { %v5328_v54 = vpop.f32.mrf.mxu1 }
 0x59b   : > { %v5326_v39 = vadd.f32 %v5325_v26, %v4997_v46  ;;  %4709 = vmatmul.bf16.gmra.mxu3 %v7123_v23  ;;  %5038 = vmatmul.bf16.gmra.mxu0 %v7127_v42  ;;  %v7163_v42 = vor.u32 %v8356_v18, %v7162_v31  ;;  %v8359_v31 = vld [vmem:[%s8735_s30 + $0x90c] sm:$0xf] }
 0x59c   : > { %8043 = vmatmul.msk.bf16.gmra.mxu2 %vm3326_vm0, %v7135_v37 }
 0x59d   : > { %5367 = vmatmul.bf16.gmra.mxu1 %v7131_v6  ;;  %v5655_v8 = vadd.f32 %v5654_v61, %v5326_v39  ;;  %v7155_v61 = vor.u32 %v8355_v40, %v7154_v5  ;;  %v10936_v39 = vld [vmem:[#allocation57_spill] sm:$0xff]  ;;  %v8363_v40 = vld [vmem:[%s8735_s30 + $0x928] sm:$0xf0] }
 0x59e   : > { %v4670_v63 = vpop.f32.mrf.mxu3 }
 0x59f   : > { %5884 = vst.msk [vmem:[%s9911_s29 + $0x1e8] sm:$0xff] %vm5822_vm1, %v5655_v8  ;;  %v4671_v60 = vadd.f32 %v4670_v63, %v10935_v33  ;;  %v5657_v12 = vpop.f32.mrf.mxu2 }
 0x5a0   : > { %v5001_v55 = vpop.f32.mrf.mxu0 }
 0x5a1   : > { %v5000_v57 = vadd.f32 %v4999_v51, %v4671_v60  ;;  %v7159_v51 = vor.u32 %v8352_v24, %v7156_v25 }
 0x5a2   : > { %v5330_v59 = vpop.f32.mrf.mxu1 }
 0x5a3   : > { %v5329_v26 = vadd.f32 %v5328_v54, %v5000_v57  ;;  %v8358_v57 = vld [vmem:[%s8735_s30 + $0x904] sm:$0xf] }
 0x5a5   : > { %v5658_v48 = vadd.f32 %v5657_v12, %v5329_v26  ;;  %v7182_v26 = vld [vmem:[%s8735_s30 + $0x908] sm:$0xf] }
 0x5a6   : > { %v4672_v43 = vpop.f32.mrf.mxu3 }
 0x5a7   : > { %5885 = vst.msk [vmem:[%s9911_s29 + $0x1f0] sm:$0xff] %vm5822_vm1, %v5658_v48  ;;  %v4673_v49 = vadd.f32 %v4672_v43, %v9557_v21  ;;  %v5659_v2 = vpop.f32.mrf.mxu2  ;;  %v7184_v48 = vld [vmem:[%s8735_s30 + $0x924] sm:$0xf0] }
 0x5a8   : > { %v5004_v23 = vpop.f32.mrf.mxu0 }
 0x5a9   : > { %v5002_v37 = vadd.f32 %v5001_v55, %v4673_v49  ;;  %v7183_v49 = vor.u32 %v8362_v41, %v7182_v26  ;;  %v8366_v26 = vld [vmem:[%s8735_s30 + $0x944] sm:$0xf]  ;;  %v7212_v41 = vld [vmem:[%s8735_s30 + $0x95c] sm:$0xf0] }
 0x5aa   : > { %v5333_v6 = vpop.f32.mrf.mxu1 }
 0x5ab   : > { %v5331_v46 = vadd.f32 %v5330_v59, %v5002_v37  ;;  %4714 = vmatmul.bf16.gmra.mxu3 %v7151_v62  ;;  %5043 = vmatmul.bf16.gmra.mxu0 %v7155_v61  ;;  %v7176_v59 = vld [vmem:[%s8735_s30 + $0x91c] sm:$0xf0]  ;;  %v7191_v62 = vor.u32 %v8363_v40, %v7190_v50  ;;  %v7187_v61 = vor.u32 %v8359_v31, %v7184_v48 }
 0x5ac   : > { %8044 = vmatmul.msk.bf16.gmra.mxu2 %vm3326_vm0, %v7163_v42  ;;  %v7179_v43 = vor.u32 %v8358_v57, %v7176_v59  ;;  %v8370_v59 = vld [vmem:[%s8735_s30 + $0x960] sm:$0xf0] }
 0x5ad   : > { %5372 = vmatmul.bf16.gmra.mxu1 %v7159_v51  ;;  %v5660_v21 = vadd.f32 %v5659_v2, %v5331_v46 }
 0x5ae   : > { %v4675_v54 = vpop.f32.mrf.mxu3 }
 0x5af   : > { %5886 = vst.msk [vmem:[%s9911_s29 + $0x1f8] sm:$0xff] %vm5822_vm1, %v5660_v21  ;;  %v4676_v8 = vadd.f32 %v4675_v54, %v10936_v39  ;;  %v5662_v63 = vpop.f32.mrf.mxu2 }
 0x5b0   : > { %v5006_v33 = vpop.f32.mrf.mxu0 }
 0x5b1   : > { %v5005_v60 = vadd.f32 %v5004_v23, %v4676_v8 }
 0x5b2   : > { %v5335_v12 = vpop.f32.mrf.mxu1 }
 0x5b3   : > { %v5334_v55 = vadd.f32 %v5333_v6, %v5005_v60  ;;  %v7210_v60 = vld [vmem:[%s8735_s30 + $0x940] sm:$0xf] }
 0x5b5   : > { %v5663_v5 = vadd.f32 %v5662_v63, %v5334_v55  ;;  %v8365_v63 = vld [vmem:[%s8735_s30 + $0x93c] sm:$0xf]  ;;  %v7218_v55 = vld [vmem:[%s8735_s30 + $0x948] sm:$0xf] }
 0x5b6   : > { %v4677_v18 = vpop.f32.mrf.mxu3 }
 0x5b7   : > { %5887 = vst.msk [vmem:[%s9911_s29 + $0x200] sm:$0xff] %vm5822_vm1, %v5663_v5  ;;  %v4678_v24 = vadd.f32 %v4677_v18, %v9586_v52  ;;  %v5664_v25 = vpop.f32.mrf.mxu2  ;;  %v7219_v18 = vor.u32 %v8370_v59, %v7218_v55 }
 0x5b8   : > { %v5009_v2 = vpop.f32.mrf.mxu0 }
 0x5b9   : > { %v5007_v23 = vadd.f32 %v5006_v33, %v4678_v24  ;;  %v7204_v33 = vld [vmem:[%s8735_s30 + $0x954] sm:$0xf0]  ;;  %v7215_v24 = vor.u32 %v8366_v26, %v7212_v41 }
 0x5ba   : > { %v5338_v42 = vpop.f32.mrf.mxu1  ;;  %v7207_v40 = vor.u32 %v8365_v63, %v7204_v33  ;;  %v8373_v63 = vld [vmem:[%s8735_s30 + $0x97c] sm:$0xf]  ;;  %v7240_v33 = vld [vmem:[%s8735_s30 + $0x994] sm:$0xf0] }
 0x5bb   : > { %v5336_v51 = vadd.f32 %v5335_v12, %v5007_v23  ;;  %4719 = vmatmul.bf16.gmra.mxu3 %v7179_v43  ;;  %5048 = vmatmul.bf16.gmra.mxu0 %v7183_v49  ;;  %v8369_v12 = vld [vmem:[%s8735_s30 + $0x958] sm:$0xf0]  ;;  %v7243_v41 = vor.u32 %v8373_v63, %v7240_v33 }
 0x5bc   : > { %8045 = vmatmul.msk.bf16.gmra.mxu2 %vm3326_vm0, %v7191_v62  ;;  %v7211_v31 = vor.u32 %v8369_v12, %v7210_v60 }
 0x5bd   : > { %5377 = vmatmul.bf16.gmra.mxu1 %v7187_v61  ;;  %v5665_v52 = vadd.f32 %v5664_v25, %v5336_v51 }
 0x5be   : > { %v4680_v37 = vpop.f32.mrf.mxu3 }
 0x5bf   : > { %5888 = vst.msk [vmem:[%s9911_s29 + $0x208] sm:$0xff] %vm5822_vm1, %v5665_v52  ;;  %v4681_v6 = vadd.f32 %v4680_v37, %v9592_v17  ;;  %v5667_v46 = vpop.f32.mrf.mxu2  ;;  %v8372_v37 = vld [vmem:[%s8735_s30 + $0x974] sm:$0xf] }
 0x5c0   : > { %v5011_v21 = vpop.f32.mrf.mxu0 }
 0x5c1   : > { %v5010_v54 = vadd.f32 %v5009_v2, %v4681_v6  ;;  %v7232_v6 = vld [vmem:[%s8735_s30 + $0x98c] sm:$0xf0] }
 0x5c2   : > { %v5340_v39 = vpop.f32.mrf.mxu1  ;;  %v7235_v55 = vor.u32 %v8372_v37, %v7232_v6 }
 0x5c3   : > { %v5339_v8 = vadd.f32 %v5338_v42, %v5010_v54  ;;  %v7246_v54 = vld [vmem:[%s8735_s30 + $0x980] sm:$0xf] }
 0x5c5   : > { %v5668_v57 = vadd.f32 %v5667_v46, %v5339_v8  ;;  %v7238_v46 = vld [vmem:[%s8735_s30 + $0x978] sm:$0xf]  ;;  %v8377_v8 = vld [vmem:[%s8735_s30 + $0x998] sm:$0xf0] }
 0x5c6   : > { %v4682_v50 = vpop.f32.mrf.mxu3  ;;  %v7247_v26 = vor.u32 %v8377_v8, %v7246_v54 }
 0x5c7   : > { %5889 = vst.msk [vmem:[%s9911_s29 + $0x210] sm:$0xff] %vm5822_vm1, %v5668_v57  ;;  %v4683_v17 = vadd.f32 %v4682_v50, %v9606_v20  ;;  %v5669_v5 = vpop.f32.mrf.mxu2 }
 0x5c8   : > { %v5014_v48 = vpop.f32.mrf.mxu0 }
 0x5c9   : > { %v5012_v25 = vadd.f32 %v5011_v21, %v4683_v17  ;;  %v8376_v21 = vld [vmem:[%s8735_s30 + $0x990] sm:$0xf0] }
 0x5ca   : > { %v5343_v43 = vpop.f32.mrf.mxu1  ;;  %v7239_v57 = vor.u32 %v8376_v21, %v7238_v46 }
 0x5cb   : > { %v5341_v49 = vadd.f32 %v5340_v39, %v5012_v25  ;;  %4724 = vmatmul.bf16.gmra.mxu3 %v7207_v40  ;;  %5053 = vmatmul.bf16.gmra.mxu0 %v7211_v31 }
 0x5cc   : > { %8046 = vmatmul.msk.bf16.gmra.mxu2 %vm3326_vm0, %v7219_v18 }
 0x5cd   : > { %5382 = vmatmul.bf16.gmra.mxu1 %v7215_v24  ;;  %v5670_v20 = vadd.f32 %v5669_v5, %v5341_v49  ;;  %v8379_v49 = vld [vmem:[%s8735_s30 + $0x9ac] sm:$0xf] }
 0x5ce   : > { %v4685_v2 = vpop.f32.mrf.mxu3 }
 0x5cf   : > { %5890 = vst.msk [vmem:[%s9911_s29 + $0x218] sm:$0xff] %vm5822_vm1, %v5670_v20  ;;  %v4686_v62 = vadd.f32 %v4685_v2, %v9615_v28  ;;  %v5672_v61 = vpop.f32.mrf.mxu2  ;;  %v7260_v20 = vld [vmem:[%s8735_s30 + $0x9c4] sm:$0xf0]  ;;  %v7266_v2 = vld [vmem:[%s8735_s30 + $0x9b0] sm:$0xf] }
 0x5d0   : > { %v5016_v23 = vpop.f32.mrf.mxu0  ;;  %v7263_v46 = vor.u32 %v8379_v49, %v7260_v20 }
 0x5d1   : > { %v5015_v42 = vadd.f32 %v5014_v48, %v4686_v62  ;;  %v8383_v62 = vld [vmem:[%s8735_s30 + $0x9c8] sm:$0xf0] }
 0x5d2   : > { %v5345_v51 = vpop.f32.mrf.mxu1  ;;  %v7267_v21 = vor.u32 %v8383_v62, %v7266_v2 }
 0x5d3   : > { %v5344_v52 = vadd.f32 %v5343_v43, %v5015_v42  ;;  %v8384_v42 = vld [vmem:[%s8735_s30 + $0x9d0] sm:$0xf0] }
 0x5d5   : > { %v5673_v39 = vadd.f32 %v5672_v61, %v5344_v52  ;;  %v7274_v61 = vld [vmem:[%s8735_s30 + $0x9b8] sm:$0xf]  ;;  %v7268_v52 = vld [vmem:[%s8735_s30 + $0x9cc] sm:$0xf0] }
 0x5d6   : > { %v4687_v60 = vpop.f32.mrf.mxu3 }
 0x5d7   : > { %5891 = vst.msk [vmem:[%s9911_s29 + $0x220] sm:$0xff] %vm5822_vm1, %v5673_v39  ;;  %v4688_v28 = vadd.f32 %v4687_v60, %v9629_v32  ;;  %v5674_v12 = vpop.f32.mrf.mxu2  ;;  %v7275_v39 = vor.u32 %v8384_v42, %v7274_v61 }
 0x5d8   : > { %v5019_v59 = vpop.f32.mrf.mxu0 }
 0x5d9   : > { %v5017_v50 = vadd.f32 %v5016_v23, %v4688_v28 }
 0x5da   : > { %v5348_v17 = vpop.f32.mrf.mxu1 }
 0x5db   : > { %v5346_v5 = vadd.f32 %v5345_v51, %v5017_v50  ;;  %4729 = vmatmul.bf16.gmra.mxu3 %v7235_v55  ;;  %5058 = vmatmul.bf16.gmra.mxu0 %v7239_v57  ;;  %v8380_v51 = vld [vmem:[%s8735_s30 + $0x9b4] sm:$0xf]  ;;  %v8386_v50 = vld [vmem:[%s8735_s30 + $0x9e4] sm:$0xf] }
 0x5dc   : > { %8047 = vmatmul.msk.bf16.gmra.mxu2 %vm3326_vm0, %v7247_v26  ;;  %v7271_v8 = vor.u32 %v8380_v51, %v7268_v52 }
 0x5dd   : > { %5387 = vmatmul.bf16.gmra.mxu1 %v7243_v41  ;;  %v5675_v32 = vadd.f32 %v5674_v12, %v5346_v5  ;;  %v7294_v5 = vld [vmem:[%s8735_s30 + $0x9e8] sm:$0xf] }
 0x5de   : > { %v4690_v40 = vpop.f32.mrf.mxu3 }
 0x5df   : > { %5892 = vst.msk [vmem:[%s9911_s29 + $0x228] sm:$0xff] %vm5822_vm1, %v5675_v32  ;;  %v4691_v31 = vadd.f32 %v4690_v40, %v9635_v56  ;;  %v5677_v48 = vpop.f32.mrf.mxu2  ;;  %v8390_v32 = vld [vmem:[%s8735_s30 + $0xa00] sm:$0xf0]  ;;  %v7302_v40 = vld [vmem:[%s8735_s30 + $0x9f0] sm:$0xf] }
 0x5e0   : > { %v5021_v18 = vpop.f32.mrf.mxu0  ;;  %v7295_v20 = vor.u32 %v8390_v32, %v7294_v5 }
 0x5e1   : > { %v5020_v24 = vadd.f32 %v5019_v59, %v4691_v31 }
 0x5e2   : > { %v5350_v25 = vpop.f32.mrf.mxu1 }
 0x5e3   : > { %v5349_v43 = vadd.f32 %v5348_v17, %v5020_v24  ;;  %v7288_v17 = vld [vmem:[%s8735_s30 + $0x9fc] sm:$0xf0]  ;;  %v7296_v24 = vld [vmem:[%s8735_s30 + $0xa04] sm:$0xf0] }
 0x5e4   : > { %v7291_v49 = vor.u32 %v8386_v50, %v7288_v17 }
 0x5e5   : > { %v5678_v23 = vadd.f32 %v5677_v48, %v5349_v43  ;;  %v8391_v48 = vld [vmem:[%s8735_s30 + $0xa08] sm:$0xf0] }
 0x5e6   : > { %v4692_v37 = vpop.f32.mrf.mxu3  ;;  %v7303_v62 = vor.u32 %v8391_v48, %v7302_v40 }
 0x5e7   : > { %5893 = vst.msk [vmem:[%s9911_s29 + $0x230] sm:$0xff] %vm5822_vm1, %v5678_v23  ;;  %v4693_v56 = vadd.f32 %v4692_v37, %v9649_v7  ;;  %v5679_v6 = vpop.f32.mrf.mxu2 }
 0x5e8   : > { %v5024_v54 = vpop.f32.mrf.mxu0 }
 0x5e9   : > { %v5022_v63 = vadd.f32 %v5021_v18, %v4693_v56  ;;  %v8387_v18 = vld [vmem:[%s8735_s30 + $0x9ec] sm:$0xf] }
 0x5ea   : > { %v5353_v33 = vpop.f32.mrf.mxu1  ;;  %v7299_v61 = vor.u32 %v8387_v18, %v7296_v24 }
 0x5eb   : > { %v5351_v60 = vadd.f32 %v5350_v25, %v5022_v63  ;;  %4734 = vmatmul.bf16.gmra.mxu3 %v7263_v46  ;;  %5063 = vmatmul.bf16.gmra.mxu0 %v7267_v21  ;;  %v7322_v63 = vld [vmem:[%s8735_s30 + $0xa20] sm:$0xf] }
 0x5ec   : > { %8048 = vmatmul.msk.bf16.gmra.mxu2 %vm3326_vm0, %v7275_v39  ;;  %v8393_v39 = vld [vmem:[%s8735_s30 + $0xa1c] sm:$0xf] }
 0x5ed   : > { %5392 = vmatmul.bf16.gmra.mxu1 %v7271_v8  ;;  %v5680_v7 = vadd.f32 %v5679_v6, %v5351_v60  ;;  %v7316_v8 = vld [vmem:[%s8735_s30 + $0xa34] sm:$0xf0]  ;;  %v7330_v60 = vld [vmem:[%s8735_s30 + $0xa28] sm:$0xf] }
 0x5ee   : > { %v4695_v28 = vpop.f32.mrf.mxu3 }
 0x5ef   : > { %5894 = vst.msk [vmem:[%s9911_s29 + $0x238] sm:$0xff] %vm5822_vm1, %v5680_v7  ;;  %v4696_v12 = vadd.f32 %v4695_v28, %v9658_v11  ;;  %v5682_v55 = vpop.f32.mrf.mxu2  ;;  %v8398_v28 = vld [vmem:[%s8735_s30 + $0xa40] sm:$0xf0] }
 0x5f0   : > { %v5026_v57 = vpop.f32.mrf.mxu0  ;;  %v7331_v17 = vor.u32 %v8398_v28, %v7330_v60 }
 0x5f1   : > { %v5025_v59 = vadd.f32 %v5024_v54, %v4696_v12  ;;  %v8394_v12 = vld [vmem:[%s8735_s30 + $0xa24] sm:$0xf] }
 0x5f2   : > { %v5355_v26 = vpop.f32.mrf.mxu1 }
 0x5f3   : > { %v5354_v41 = vadd.f32 %v5353_v33, %v5025_v59  ;;  %v8397_v33 = vld [vmem:[%s8735_s30 + $0xa38] sm:$0xf0] }
 0x5f5   : > { %v5683_v31 = vadd.f32 %v5682_v55, %v5354_v41  ;;  %v7324_v55 = vld [vmem:[%s8735_s30 + $0xa3c] sm:$0xf0]  ;;  %v7323_v41 = vor.u32 %v8397_v33, %v7322_v63 }
 0x5f6   : > { %v4697_v25 = vpop.f32.mrf.mxu3  ;;  %v7327_v5 = vor.u32 %v8394_v12, %v7324_v55 }
 0x5f7   : > { %5895 = vst.msk [vmem:[%s9911_s29 + $0x240] sm:$0xff] %vm5822_vm1, %v5683_v31  ;;  %v4698_v11 = vadd.f32 %v4697_v25, %v9672_v30  ;;  %v5684_v43 = vpop.f32.mrf.mxu2 }
 0x5f8   : > { %v5029_v2 = vpop.f32.mrf.mxu0 }
 0x5f9   : > { %v5027_v23 = vadd.f32 %v5026_v57, %v4698_v11 }
 0x5fa   : > { %v5358_v42 = vpop.f32.mrf.mxu1 }
 0x5fb   : > { %v5356_v51 = vadd.f32 %v5355_v26, %v5027_v23  ;;  %4739 = vmatmul.bf16.gmra.mxu3 %v7291_v49  ;;  %5068 = vmatmul.bf16.gmra.mxu0 %v7295_v20  ;;  %v7319_v26 = vor.u32 %v8393_v39, %v7316_v8  ;;  %v8400_v20 = vld [vmem:[%s8735_s30 + $0xa54] sm:$0xf]  ;;  %v7358_v23 = vld [vmem:[%s8735_s30 + $0xa60] sm:$0xf] }
 0x5fc   : > { %8049 = vmatmul.msk.bf16.gmra.mxu2 %vm3326_vm0, %v7303_v62  ;;  %v7350_v62 = vld [vmem:[%s8735_s30 + $0xa58] sm:$0xf] }
 0x5fd   : > { %5397 = vmatmul.bf16.gmra.mxu1 %v7299_v61  ;;  %v5685_v30 = vadd.f32 %v5684_v43, %v5356_v51  ;;  %v8404_v61 = vld [vmem:[%s8735_s30 + $0xa70] sm:$0xf0]  ;;  %v8405_v51 = vld [vmem:[%s8735_s30 + $0xa78] sm:$0xf0] }
 0x5fe   : > { %v4700_v52 = vpop.f32.mrf.mxu3 }
 0x5ff   : > { %5896 = vst.msk [vmem:[%s9911_s29 + $0x248] sm:$0xff] %vm5822_vm1, %v5685_v30  ;;  %v4701_v37 = vadd.f32 %v4700_v52, %v9678_v44  ;;  %v5687_v56 = vpop.f32.mrf.mxu2  ;;  %v8401_v30 = vld [vmem:[%s8735_s30 + $0xa5c] sm:$0xf]  ;;  %v7352_v52 = vld [vmem:[%s8735_s30 + $0xa74] sm:$0xf0] }
 0x600   : > { %v5031_v6 = vpop.f32.mrf.mxu0  ;;  %v7355_v39 = vor.u32 %v8401_v30, %v7352_v52 }
 0x601   : > { %v5030_v46 = vadd.f32 %v5029_v2, %v4701_v37  ;;  %v7344_v2 = vld [vmem:[%s8735_s30 + $0xa6c] sm:$0xf0] }
 0x602   : > { %v5360_v21 = vpop.f32.mrf.mxu1 }
 0x603   : > { %v5359_v54 = vadd.f32 %v5358_v42, %v5030_v46  ;;  %v7351_v46 = vor.u32 %v8404_v61, %v7350_v62 }
 0x605   : > { %v5688_v7 = vadd.f32 %v5687_v56, %v5359_v54  ;;  %v7359_v54 = vor.u32 %v8405_v51, %v7358_v23 }
 0x606   : > { %v4702_v57 = vpop.f32.mrf.mxu3 }
 0x607   : > { %5897 = vst.msk [vmem:[%s9911_s29 + $0x250] sm:$0xff] %vm5822_vm1, %v5688_v7  ;;  %v4703_v44 = vadd.f32 %v4702_v57, %v9692_v3  ;;  %v5689_v59 = vpop.f32.mrf.mxu2 }
 0x608   : > { %v5034_v50 = vpop.f32.mrf.mxu0 }
 0x609   : > { %v5032_v32 = vadd.f32 %v5031_v6, %v4703_v44  ;;  %v7347_v6 = vor.u32 %v8400_v20, %v7344_v2 }
 0x60a   : > { %v5363_v40 = vpop.f32.mrf.mxu1 }
 0x60b   : > { %v5361_v31 = vadd.f32 %v5360_v21, %v5032_v32  ;;  %4744 = vmatmul.bf16.gmra.mxu3 %v7319_v26  ;;  %5073 = vmatmul.bf16.gmra.mxu0 %v7323_v41  ;;  %v7372_v26 = vld [vmem:[%s8735_s30 + $0xaa4] sm:$0xf0]  ;;  %v7378_v41 = vld [vmem:[%s8735_s30 + $0xa90] sm:$0xf]  ;;  %v8412_v32 = vld [vmem:[%s8735_s30 + $0xab0] sm:$0xf0] }
 0x60c   : > { %8050 = vmatmul.msk.bf16.gmra.mxu2 %vm3326_vm0, %v7331_v17  ;;  %v7386_v17 = vld [vmem:[%s8735_s30 + $0xa98] sm:$0xf] }
 0x60d   : > { %5402 = vmatmul.bf16.gmra.mxu1 %v7327_v5  ;;  %v5690_v3 = vadd.f32 %v5689_v59, %v5361_v31  ;;  %v8407_v59 = vld [vmem:[%s8735_s30 + $0xa8c] sm:$0xf]  ;;  %v7380_v31 = vld [vmem:[%s8735_s30 + $0xaac] sm:$0xf0] }
 0x60e   : > { %v4705_v48 = vpop.f32.mrf.mxu3 }
 0x60f   : > { %5898 = vst.msk [vmem:[%s9911_s29 + $0x258] sm:$0xff] %vm5822_vm1, %v5690_v3  ;;  %v4706_v18 = vadd.f32 %v4705_v48, %v9698_v47  ;;  %v5692_v24 = vpop.f32.mrf.mxu2 }
 0x610   : > { %v5036_v25 = vpop.f32.mrf.mxu0 }
 0x611   : > { %v5035_v11 = vadd.f32 %v5034_v50, %v4706_v18  ;;  %v8411_v50 = vld [vmem:[%s8735_s30 + $0xaa8] sm:$0xf0]  ;;  %v7375_v18 = vor.u32 %v8407_v59, %v7372_v26 }
 0x612   : > { %v5365_v43 = vpop.f32.mrf.mxu1 }
 0x613   : > { %v5364_v49 = vadd.f32 %v5363_v40, %v5035_v11  ;;  %v8408_v40 = vld [vmem:[%s8735_s30 + $0xa94] sm:$0xf]  ;;  %v7387_v11 = vor.u32 %v8412_v32, %v7386_v17 }
 0x615   : > { %v5693_v42 = vadd.f32 %v5692_v24, %v5364_v49  ;;  %v7379_v24 = vor.u32 %v8411_v50, %v7378_v41 }
 0x616   : > { %v4707_v37 = vpop.f32.mrf.mxu3 }
 0x617   : > { %5899 = vst.msk [vmem:[%s9911_s29 + $0x260] sm:$0xff] %vm5822_vm1, %v5693_v42  ;;  %v4708_v47 = vadd.f32 %v4707_v37, %v9712_v14  ;;  %v5694_v56 = vpop.f32.mrf.mxu2  ;;  %v8414_v37 = vld [vmem:[%s8735_s30 + $0xac4] sm:$0xf] }
 0x618   : > { %v5039_v21 = vpop.f32.mrf.mxu0 }
 0x619   : > { %v5037_v8 = vadd.f32 %v5036_v25, %v4708_v47  ;;  %v7400_v47 = vld [vmem:[%s8735_s30 + $0xadc] sm:$0xf0] }
 0x61a   : > { %v5368_v63 = vpop.f32.mrf.mxu1 }
 0x61b   : > { %v5366_v33 = vadd.f32 %v5365_v43, %v5037_v8  ;;  %4749 = vmatmul.bf16.gmra.mxu3 %v7347_v6  ;;  %5078 = vmatmul.bf16.gmra.mxu0 %v7351_v46  ;;  %v7383_v43 = vor.u32 %v8408_v40, %v7380_v31  ;;  %v8418_v6 = vld [vmem:[%s8735_s30 + $0xae0] sm:$0xf0]  ;;  %v7414_v46 = vld [vmem:[%s8735_s30 + $0xad0] sm:$0xf]  ;;  %v7408_v8 = vld [vmem:[%s8735_s30 + $0xae4] sm:$0xf0] }
 0x61c   : > { %8051 = vmatmul.msk.bf16.gmra.mxu2 %vm3326_vm0, %v7359_v54  ;;  %v8419_v54 = vld [vmem:[%s8735_s30 + $0xae8] sm:$0xf0]  ;;  %v8421_v40 = vld [vmem:[%s8735_s30 + $0xafc] sm:$0xf]  ;;  %v7428_v31 = vld [vmem:[%s8735_s30 + $0xb14] sm:$0xf0] }
 0x61d   : > { %5407 = vmatmul.bf16.gmra.mxu1 %v7355_v39  ;;  %v5695_v14 = vadd.f32 %v5694_v56, %v5366_v33  ;;  %v7406_v56 = vld [vmem:[%s8735_s30 + $0xac8] sm:$0xf]  ;;  %v8415_v39 = vld [vmem:[%s8735_s30 + $0xacc] sm:$0xf] }
 0x61e   : > { %v4710_v60 = vpop.f32.mrf.mxu3 }
 0x61f   : > { %5900 = vst.msk [vmem:[%s9911_s29 + $0x268] sm:$0xff] %vm5822_vm1, %v5695_v14  ;;  %v4711_v7 = vadd.f32 %v4710_v60, %v9718_v22  ;;  %v5697_v28 = vpop.f32.mrf.mxu2  ;;  %v7403_v14 = vor.u32 %v8414_v37, %v7400_v47  ;;  %v7407_v60 = vor.u32 %v8418_v6, %v7406_v56 }
 0x620   : > { %v5041_v12 = vpop.f32.mrf.mxu0 }
 0x621   : > { %v5040_v55 = vadd.f32 %v5039_v21, %v4711_v7 }
 0x622   : > { %v5370_v57 = vpop.f32.mrf.mxu1 }
 0x623   : > { %v5369_v44 = vadd.f32 %v5368_v63, %v5040_v55 }
 0x625   : > { %v5698_v5 = vadd.f32 %v5697_v28, %v5369_v44  ;;  %v7415_v28 = vor.u32 %v8419_v54, %v7414_v46  ;;  %v7456_v54 = vld [vmem:[%s8735_s30 + $0xb4c] sm:$0xf0] }
 0x626   : > { %v4712_v3 = vpop.f32.mrf.mxu3 }
 0x627   : > { %5901 = vst.msk [vmem:[%s9911_s29 + $0x270] sm:$0xff] %vm5822_vm1, %v5698_v5  ;;  %v4713_v22 = vadd.f32 %v4712_v3, %v9732_v19  ;;  %v5699_v48 = vpop.f32.mrf.mxu2  ;;  %v7434_v3 = vld [vmem:[%s8735_s30 + $0xb00] sm:$0xf] }
 0x628   : > { %v5044_v25 = vpop.f32.mrf.mxu0 }
 0x629   : > { %v5042_v49 = vadd.f32 %v5041_v12, %v4713_v22  ;;  %v7411_v12 = vor.u32 %v8415_v39, %v7408_v8  ;;  %v8425_v22 = vld [vmem:[%s8735_s30 + $0xb18] sm:$0xf0]  ;;  %v7462_v39 = vld [vmem:[%s8735_s30 + $0xb38] sm:$0xf]  ;;  %v8432_v8 = vld [vmem:[%s8735_s30 + $0xb50] sm:$0xf0] }
 0x62a   : > { %v5373_v20 = vpop.f32.mrf.mxu1 }
 0x62b   : > { %v5371_v2 = vadd.f32 %v5370_v57, %v5042_v49  ;;  %4754 = vmatmul.bf16.gmra.mxu3 %v7375_v18  ;;  %5083 = vmatmul.bf16.gmra.mxu0 %v7379_v24  ;;  %v8426_v24 = vld [vmem:[%s8735_s30 + $0xb20] sm:$0xf0] }
 0x62c   : > { %8052 = vmatmul.msk.bf16.gmra.mxu2 %vm3326_vm0, %v7387_v11  ;;  %v7436_v11 = vld [vmem:[%s8735_s30 + $0xb1c] sm:$0xf0] }
 0x62d   : > { %5412 = vmatmul.bf16.gmra.mxu1 %v7383_v43  ;;  %v5700_v19 = vadd.f32 %v5699_v48, %v5371_v2  ;;  %v7442_v48 = vld [vmem:[%s8735_s30 + $0xb08] sm:$0xf]  ;;  %v7435_v2 = vor.u32 %v8425_v22, %v7434_v3  ;;  %v8435_v22 = vld [vmem:[%s8735_s30 + $0xb6c] sm:$0xf] }
 0x62e   : > { %v4715_v62 = vpop.f32.mrf.mxu3 }
 0x62f   : > { %5902 = vst.msk [vmem:[%s9911_s29 + $0x278] sm:$0xff] %vm5822_vm1, %v5700_v19  ;;  %v4716_v61 = vadd.f32 %v4715_v62, %v9739_v38  ;;  %v5702_v23 = vpop.f32.mrf.mxu2  ;;  %v7443_v62 = vor.u32 %v8426_v24, %v7442_v48  ;;  %v7484_v48 = vld [vmem:[%s8735_s30 + $0xb84] sm:$0xf0]  ;;  %v8439_v24 = vld [vmem:[%s8735_s30 + $0xb88] sm:$0xf0] }
 0x630   : > { %v5046_v42 = vpop.f32.mrf.mxu0 }
 0x631   : > { %v5045_v51 = vadd.f32 %v5044_v25, %v4716_v61  ;;  %v8422_v25 = vld [vmem:[%s8735_s30 + $0xb04] sm:$0xf] }
 0x632   : > { %v5375_v30 = vpop.f32.mrf.mxu1  ;;  %v7439_v61 = vor.u32 %v8422_v25, %v7436_v11  ;;  %v7498_v25 = vld [vmem:[%s8735_s30 + $0xb78] sm:$0xf] }
 0x633   : > { %v5374_v52 = vadd.f32 %v5373_v20, %v5045_v51  ;;  %v7431_v20 = vor.u32 %v8421_v40, %v7428_v31 }
 0x635   : > { %v5703_v21 = vadd.f32 %v5702_v23, %v5374_v52 }
 0x636   : > { %v4717_v63 = vpop.f32.mrf.mxu3 }
 0x637   : > { %5903 = vst.msk [vmem:[%s9911_s29 + $0x280] sm:$0xff] %vm5822_vm1, %v5703_v21  ;;  %v4718_v38 = vadd.f32 %v4717_v63, %v9753_v29  ;;  %v5704_v33 = vpop.f32.mrf.mxu2  ;;  %v8428_v21 = vld [vmem:[%s8735_s30 + $0xb34] sm:$0xf]  ;;  %v7470_v63 = vld [vmem:[%s8735_s30 + $0xb40] sm:$0xf] }
 0x638   : > { %v5049_v7 = vpop.f32.mrf.mxu0 }
 0x639   : > { %v5047_v55 = vadd.f32 %v5046_v42, %v4718_v38 }
 0x63a   : > { %v5378_v57 = vpop.f32.mrf.mxu1 }
 0x63b   : > { %v5376_v44 = vadd.f32 %v5375_v30, %v5047_v55  ;;  %4759 = vmatmul.bf16.gmra.mxu3 %v7403_v14  ;;  %5088 = vmatmul.bf16.gmra.mxu0 %v7407_v60  ;;  %v8429_v14 = vld [vmem:[%s8735_s30 + $0xb3c] sm:$0xf]  ;;  %v7464_v60 = vld [vmem:[%s8735_s30 + $0xb54] sm:$0xf0]  ;;  %v7463_v55 = vor.u32 %v8432_v8, %v7462_v39  ;;  %v7512_v39 = vld [vmem:[%s8735_s30 + $0xbbc] sm:$0xf0] }
 0x63c   : > { %8053 = vmatmul.msk.bf16.gmra.mxu2 %vm3326_vm0, %v7415_v28  ;;  %v7518_v8 = vld [vmem:[%s8735_s30 + $0xba8] sm:$0xf] }
 0x63d   : > { %5417 = vmatmul.bf16.gmra.mxu1 %v7411_v12  ;;  %v5705_v29 = vadd.f32 %v5704_v33, %v5376_v44  ;;  %v8433_v33 = vld [vmem:[%s8735_s30 + $0xb58] sm:$0xf0]  ;;  %v7459_v12 = vor.u32 %v8428_v21, %v7456_v54  ;;  %v8442_v54 = vld [vmem:[%s8735_s30 + $0xba4] sm:$0xf] }
 0x63e   : > { %v4720_v59 = vpop.f32.mrf.mxu3  ;;  %v7471_v44 = vor.u32 %v8433_v33, %v7470_v63  ;;  %v8446_v63 = vld [vmem:[%s8735_s30 + $0xbc0] sm:$0xf0] }
 0x63f   : > { %5904 = vst.msk [vmem:[%s9911_s29 + $0x288] sm:$0xff] %vm5822_vm1, %v5705_v29  ;;  %v4721_v26 = vadd.f32 %v4720_v59, %v9760_v53  ;;  %v5707_v41 = vpop.f32.mrf.mxu2  ;;  %v7467_v29 = vor.u32 %v8429_v14, %v7464_v60  ;;  %v8447_v14 = vld [vmem:[%s8735_s30 + $0xbc8] sm:$0xf0] }
 0x640   : > { %v5051_v50 = vpop.f32.mrf.mxu0  ;;  %v8443_v60 = vld [vmem:[%s8735_s30 + $0xbac] sm:$0xf] }
 0x641   : > { %v5050_v17 = vadd.f32 %v5049_v7, %v4721_v26 }
 0x642   : > { %v5380_v5 = vpop.f32.mrf.mxu1 }
 0x643   : > { %v5379_v32 = vadd.f32 %v5378_v57, %v5050_v17 }
 0x645   : > { %v5708_v18 = vadd.f32 %v5707_v41, %v5379_v32 }
 0x646   : > { %v4722_v43 = vpop.f32.mrf.mxu3 }
 0x647   : > { %5905 = vst.msk [vmem:[%s9911_s29 + $0x290] sm:$0xff] %vm5822_vm1, %v5708_v18  ;;  %v4723_v53 = vadd.f32 %v4722_v43, %v9774_v16  ;;  %v5709_v49 = vpop.f32.mrf.mxu2  ;;  %v7490_v18 = vld [vmem:[%s8735_s30 + $0xb70] sm:$0xf]  ;;  %v8440_v43 = vld [vmem:[%s8735_s30 + $0xb90] sm:$0xf0] }
 0x648   : > { %v5054_v19 = vpop.f32.mrf.mxu0 }
 0x649   : > { %v5052_v23 = vadd.f32 %v5051_v50, %v4723_v53  ;;  %v8436_v53 = vld [vmem:[%s8735_s30 + $0xb74] sm:$0xf] }
 0x64a   : > { %v5383_v42 = vpop.f32.mrf.mxu1 }
 0x64b   : > { %v5381_v51 = vadd.f32 %v5380_v5, %v5052_v23  ;;  %4764 = vmatmul.bf16.gmra.mxu3 %v7431_v20  ;;  %5093 = vmatmul.bf16.gmra.mxu0 %v7435_v2  ;;  %v7499_v23 = vor.u32 %v8440_v43, %v7498_v25  ;;  %v8450_v43 = vld [vmem:[%s8735_s30 + $0xbe4] sm:$0xf] }
 0x64c   : > { %8054 = vmatmul.msk.bf16.gmra.mxu2 %vm3326_vm0, %v7443_v62  ;;  %v7491_v62 = vor.u32 %v8439_v24, %v7490_v18  ;;  %v8453_v18 = vld [vmem:[%s8735_s30 + $0xbf8] sm:$0xf0]  ;;  %v7554_v24 = vld [vmem:[%s8735_s30 + $0xbe8] sm:$0xf] }
 0x64d   : > { %5422 = vmatmul.bf16.gmra.mxu1 %v7439_v61  ;;  %v5710_v16 = vadd.f32 %v5709_v49, %v5381_v51  ;;  %v7492_v49 = vld [vmem:[%s8735_s30 + $0xb8c] sm:$0xf0] }
 0x64e   : > { %v4725_v30 = vpop.f32.mrf.mxu3 }
 0x64f   : > { %5906 = vst.msk [vmem:[%s9911_s29 + $0x298] sm:$0xff] %vm5822_vm1, %v5710_v16  ;;  %v4726_v52 = vadd.f32 %v4725_v30, %v9781_v45  ;;  %v5712_v37 = vpop.f32.mrf.mxu2 }
 0x650   : > { %v5056_v47 = vpop.f32.mrf.mxu0 }
 0x651   : > { %v5055_v56 = vadd.f32 %v5054_v19, %v4726_v52  ;;  %v7487_v19 = vor.u32 %v8435_v22, %v7484_v48  ;;  %v7540_v22 = vld [vmem:[%s8735_s30 + $0xbf4] sm:$0xf0]  ;;  %v7546_v48 = vld [vmem:[%s8735_s30 + $0xbe0] sm:$0xf] }
 0x652   : > { %v5385_v6 = vpop.f32.mrf.mxu1 }
 0x653   : > { %v5384_v46 = vadd.f32 %v5383_v42, %v5055_v56  ;;  %v7495_v42 = vor.u32 %v8436_v53, %v7492_v49  ;;  %v7548_v53 = vld [vmem:[%s8735_s30 + $0xbfc] sm:$0xf0] }
 0x655   : > { %v5713_v38 = vadd.f32 %v5712_v37, %v5384_v46 }
 0x656   : > { %v4727_v7 = vpop.f32.mrf.mxu3 }
 0x657   : > { %5907 = vst.msk [vmem:[%s9911_s29 + $0x2a0] sm:$0xff] %vm5822_vm1, %v5713_v38  ;;  %v4728_v45 = vadd.f32 %v4727_v7, %v9795_v58  ;;  %v5714_v28 = vpop.f32.mrf.mxu2  ;;  %v7526_v38 = vld [vmem:[%s8735_s30 + $0xbb0] sm:$0xf]  ;;  %v7520_v7 = vld [vmem:[%s8735_s30 + $0xbc4] sm:$0xf0] }
 0x658   : > { %v5059_v57 = vpop.f32.mrf.mxu0 }
 0x659   : > { %v5057_v59 = vadd.f32 %v5056_v47, %v4728_v45 }
 0x65a   : > { %v5388_v26 = vpop.f32.mrf.mxu1 }
 0x65b   : > { %v5386_v41 = vadd.f32 %v5385_v6, %v5057_v59  ;;  %4769 = vmatmul.bf16.gmra.mxu3 %v7459_v12  ;;  %5098 = vmatmul.bf16.gmra.mxu0 %v7463_v55  ;;  %v7515_v12 = vor.u32 %v8442_v54, %v7512_v39  ;;  %v7519_v55 = vor.u32 %v8446_v63, %v7518_v8  ;;  %v8460_v54 = vld [vmem:[%s8735_s30 + $0xc30] sm:$0xf0]  ;;  %v7582_v39 = vld [vmem:[%s8735_s30 + $0xc20] sm:$0xf]  ;;  %v8461_v63 = vld [vmem:[%s8735_s30 + $0xc38] sm:$0xf0] }
 0x65c   : > { %8055 = vmatmul.msk.bf16.gmra.mxu2 %vm3326_vm0, %v7471_v44  ;;  %v7527_v44 = vor.u32 %v8447_v14, %v7526_v38  ;;  %v8457_v38 = vld [vmem:[%s8735_s30 + $0xc1c] sm:$0xf] }
 0x65d   : > { %5427 = vmatmul.bf16.gmra.mxu1 %v7467_v29  ;;  %v5715_v58 = vadd.f32 %v5714_v28, %v5386_v41  ;;  %v7523_v29 = vor.u32 %v8443_v60, %v7520_v7 }
 0x65e   : > { %v4730_v50 = vpop.f32.mrf.mxu3 }
 0x65f   : > { %5908 = vst.msk [vmem:[%s9911_s29 + $0x2a8] sm:$0xff] %vm5822_vm1, %v5715_v58  ;;  %v4731_v17 = vadd.f32 %v4730_v50, %v9802_v36  ;;  %v5717_v5 = vpop.f32.mrf.mxu2 }
 0x660   : > { %v5061_v32 = vpop.f32.mrf.mxu0 }
 0x661   : > { %v5060_v40 = vadd.f32 %v5059_v57, %v4731_v17 }
 0x662   : > { %v5390_v31 = vpop.f32.mrf.mxu1 }
 0x663   : > { %v5389_v3 = vadd.f32 %v5388_v26, %v5060_v40 }
 0x665   : > { %v5718_v11 = vadd.f32 %v5717_v5, %v5389_v3  ;;  %v8449_v3 = vld [vmem:[%s8735_s30 + $0xbdc] sm:$0xf] }
 0x666   : > { %v4732_v20 = vpop.f32.mrf.mxu3 }
 0x667   : > { %5909 = vst.msk [vmem:[%s9911_s29 + $0x2b0] sm:$0xff] %vm5822_vm1, %v5718_v11  ;;  %v4733_v36 = vadd.f32 %v4732_v20, %v9816_v0  ;;  %v5719_v2 = vpop.f32.mrf.mxu2  ;;  %v8454_v11 = vld [vmem:[%s8735_s30 + $0xc00] sm:$0xf0] }
 0x668   : > { %v5064_v61 = vpop.f32.mrf.mxu0 }
 0x669   : > { %v5062_v51 = vadd.f32 %v5061_v32, %v4733_v36  ;;  %v7543_v36 = vor.u32 %v8449_v3, %v7540_v22  ;;  %v8468_v22 = vld [vmem:[%s8735_s30 + $0xc70] sm:$0xf0] }
 0x66a   : > { %v5393_v16 = vpop.f32.mrf.mxu1 }
 0x66b   : > { %v5391_v30 = vadd.f32 %v5390_v31, %v5062_v51  ;;  %4774 = vmatmul.bf16.gmra.mxu3 %v7487_v19  ;;  %5103 = vmatmul.bf16.gmra.mxu0 %v7491_v62  ;;  %v7555_v62 = vor.u32 %v8454_v11, %v7554_v24 }
 0x66c   : > { %8056 = vmatmul.msk.bf16.gmra.mxu2 %vm3326_vm0, %v7499_v23 }
 0x66d   : > { %5432 = vmatmul.bf16.gmra.mxu1 %v7495_v42  ;;  %v5720_v0 = vadd.f32 %v5719_v2, %v5391_v30  ;;  %v7547_v2 = vor.u32 %v8453_v18, %v7546_v48  ;;  %v8464_v48 = vld [vmem:[%s8735_s30 + $0xc54] sm:$0xf]  ;;  %v7604_v18 = vld [vmem:[%s8735_s30 + $0xc6c] sm:$0xf0] }
 0x66e   : > { %v4735_v52 = vpop.f32.mrf.mxu3 }
 0x66f   : > { %5910 = vst.msk [vmem:[%s9911_s29 + $0x2b8] sm:$0xff] %vm5822_vm1, %v5720_v0  ;;  %v4736_v37 = vadd.f32 %v4735_v52, %v9823_v15  ;;  %v5722_v47 = vpop.f32.mrf.mxu2 }
 0x670   : > { %v5066_v56 = vpop.f32.mrf.mxu0 }
 0x671   : > { %v5065_v6 = vadd.f32 %v5064_v61, %v4736_v37  ;;  %v7551_v61 = vor.u32 %v8450_v43, %v7548_v53 }
 0x672   : > { %v5395_v46 = vpop.f32.mrf.mxu1 }
 0x673   : > { %v5394_v21 = vadd.f32 %v5393_v16, %v5065_v6  ;;  %v8456_v6 = vld [vmem:[%s8735_s30 + $0xc14] sm:$0xf] }
 0x675   : > { %v5723_v33 = vadd.f32 %v5722_v47, %v5394_v21  ;;  %v7574_v21 = vld [vmem:[%s8735_s30 + $0xc18] sm:$0xf] }
 0x676   : > { %v4737_v45 = vpop.f32.mrf.mxu3 }
 0x677   : > { %5911 = vst.msk [vmem:[%s9911_s29 + $0x2c0] sm:$0xff] %vm5822_vm1, %v5723_v33  ;;  %v4738_v15 = vadd.f32 %v4737_v45, %v9837_v35  ;;  %v5724_v28 = vpop.f32.mrf.mxu2  ;;  %v7576_v33 = vld [vmem:[%s8735_s30 + $0xc34] sm:$0xf0]  ;;  %v7575_v45 = vor.u32 %v8460_v54, %v7574_v21  ;;  %v7632_v21 = vld [vmem:[%s8735_s30 + $0xca4] sm:$0xf0] }
 0x678   : > { %v5069_v57 = vpop.f32.mrf.mxu0 }
 0x679   : > { %v5067_v59 = vadd.f32 %v5066_v56, %v4738_v15 }
 0x67a   : > { %v5398_v26 = vpop.f32.mrf.mxu1 }
 0x67b   : > { %v5396_v41 = vadd.f32 %v5395_v46, %v5067_v59  ;;  %4779 = vmatmul.bf16.gmra.mxu3 %v7515_v12  ;;  %5108 = vmatmul.bf16.gmra.mxu0 %v7519_v55  ;;  %v7568_v46 = vld [vmem:[%s8735_s30 + $0xc2c] sm:$0xf0]  ;;  %v7579_v12 = vor.u32 %v8457_v38, %v7576_v33 }
 0x67c   : > { %8057 = vmatmul.msk.bf16.gmra.mxu2 %vm3326_vm0, %v7527_v44  ;;  %v7571_v7 = vor.u32 %v8456_v6, %v7568_v46  ;;  %v8475_v6 = vld [vmem:[%s8735_s30 + $0xca8] sm:$0xf0] }
 0x67d   : > { %5437 = vmatmul.bf16.gmra.mxu1 %v7523_v29  ;;  %v5725_v35 = vadd.f32 %v5724_v28, %v5396_v41  ;;  %v7583_v28 = vor.u32 %v8461_v63, %v7582_v39  ;;  %v8471_v46 = vld [vmem:[%s8735_s30 + $0xc8c] sm:$0xf] }
 0x67e   : > { %v4740_v58 = vpop.f32.mrf.mxu3 }
 0x67f   : > { %5912 = vst.msk [vmem:[%s9911_s29 + $0x2c8] sm:$0xff] %vm5822_vm1, %v5725_v35  ;;  %v4741_v50 = vadd.f32 %v4740_v58, %v9844_v27  ;;  %v5727_v17 = vpop.f32.mrf.mxu2 }
 0x680   : > { %v5071_v5 = vpop.f32.mrf.mxu0 }
 0x681   : > { %v5070_v32 = vadd.f32 %v5069_v57, %v4741_v50 }
 0x682   : > { %v5400_v40 = vpop.f32.mrf.mxu1 }
 0x683   : > { %v5399_v31 = vadd.f32 %v5398_v26, %v5070_v32  ;;  %v7602_v32 = vld [vmem:[%s8735_s30 + $0xc50] sm:$0xf] }
 0x685   : > { %v5728_v25 = vadd.f32 %v5727_v17, %v5399_v31  ;;  %v8463_v17 = vld [vmem:[%s8735_s30 + $0xc4c] sm:$0xf]  ;;  %v7610_v31 = vld [vmem:[%s8735_s30 + $0xc58] sm:$0xf] }
 0x686   : > { %v4742_v49 = vpop.f32.mrf.mxu3 }
 0x687   : > { %5913 = vst.msk [vmem:[%s9911_s29 + $0x2d0] sm:$0xff] %vm5822_vm1, %v5728_v25  ;;  %v4743_v27 = vadd.f32 %v4742_v49, %v9858_v4  ;;  %v5729_v20 = vpop.f32.mrf.mxu2  ;;  %v7611_v49 = vor.u32 %v8468_v22, %v7610_v31  ;;  %v10939_v31 = vld [vmem:[#allocation59_spill] sm:$0xff] }
 0x688   : > { %v5074_v19 = vpop.f32.mrf.mxu0 }
 0x689   : > { %v5072_v23 = vadd.f32 %v5071_v5, %v4743_v27  ;;  %v7596_v5 = vld [vmem:[%s8735_s30 + $0xc64] sm:$0xf0]  ;;  %v7607_v27 = vor.u32 %v8464_v48, %v7604_v18 }
 0x68a   : > { %v5403_v42 = vpop.f32.mrf.mxu1  ;;  %v7599_v11 = vor.u32 %v8463_v17, %v7596_v5  ;;  %v8482_v17 = vld [vmem:[%s8735_s30 + $0xce0] sm:$0xf0] }
 0x68b   : > { %v5401_v51 = vadd.f32 %v5400_v40, %v5072_v23  ;;  %4784 = vmatmul.bf16.gmra.mxu3 %v7543_v36  ;;  %5113 = vmatmul.bf16.gmra.mxu0 %v7547_v2  ;;  %v8467_v40 = vld [vmem:[%s8735_s30 + $0xc68] sm:$0xf0]  ;;  %v8478_v5 = vld [vmem:[%s8735_s30 + $0xcc4] sm:$0xf] }
 0x68c   : > { %8058 = vmatmul.msk.bf16.gmra.mxu2 %vm3326_vm0, %v7555_v62  ;;  %v7603_v43 = vor.u32 %v8467_v40, %v7602_v32  ;;  %v10937_v62 = vld [vmem:[#allocation56_spill] sm:$0xff]  ;;  %v7660_v32 = vld [vmem:[%s8735_s30 + $0xcdc] sm:$0xf0] }
 0x68d   : > { %5442 = vmatmul.bf16.gmra.mxu1 %v7551_v61  ;;  %v5730_v4 = vadd.f32 %v5729_v20, %v5401_v51 }
 0x68e   : > { %v4745_v16 = vpop.f32.mrf.mxu3 }
 0x68f   : > { %5914 = vst.msk [vmem:[%s9911_s29 + $0x2d8] sm:$0xff] %vm5822_vm1, %v5730_v4  ;;  %v4746_v30 = vadd.f32 %v4745_v16, %v9865_v1  ;;  %v5732_v0 = vpop.f32.mrf.mxu2 }
 0x690   : > { %v5076_v52 = vpop.f32.mrf.mxu0 }
 0x691   : > { %v5075_v37 = vadd.f32 %v5074_v19, %v4746_v30  ;;  %v8470_v30 = vld [vmem:[%s8735_s30 + $0xc84] sm:$0xf] }
 0x692   : > { %v5405_v47 = vpop.f32.mrf.mxu1 }
 0x693   : > { %v5404_v56 = vadd.f32 %v5403_v42, %v5075_v37  ;;  %v8474_v37 = vld [vmem:[%s8735_s30 + $0xca0] sm:$0xf0] }
 0x695   : > { %v5733_v8 = vadd.f32 %v5732_v0, %v5404_v56  ;;  %v7624_v0 = vld [vmem:[%s8735_s30 + $0xc9c] sm:$0xf0] }
 0x696   : > { %v4747_v14 = vpop.f32.mrf.mxu3  ;;  %v7627_v63 = vor.u32 %v8470_v30, %v7624_v0  ;;  %v8489_v0 = vld [vmem:[%s8735_s30 + $0xd18] sm:$0xf0] }
 0x697   : > { %5915 = vst.msk [vmem:[%s9911_s29 + $0x2e0] sm:$0xff] %vm5822_vm1, %v5733_v8  ;;  %v4748_v1 = vadd.f32 %v4747_v14, %v9879_v34  ;;  %v5734_v60 = vpop.f32.mrf.mxu2 }
 0x698   : > { %v5079_v15 = vpop.f32.mrf.mxu0 }
 0x699   : > { %v5077_v55 = vadd.f32 %v5076_v52, %v4748_v1  ;;  %v7630_v52 = vld [vmem:[%s8735_s30 + $0xc88] sm:$0xf]  ;;  %v7635_v1 = vor.u32 %v8471_v46, %v7632_v21 }
 0x69a   : > { %v5408_v57 = vpop.f32.mrf.mxu1  ;;  %v7631_v38 = vor.u32 %v8474_v37, %v7630_v52  ;;  %v8485_v52 = vld [vmem:[%s8735_s30 + $0xcfc] sm:$0xf]  ;;  %v7688_v37 = vld [vmem:[%s8735_s30 + $0xd14] sm:$0xf0] }
 0x69b   : > { %v5406_v44 = vadd.f32 %v5405_v47, %v5077_v55  ;;  %4789 = vmatmul.bf16.gmra.mxu3 %v7571_v7  ;;  %5118 = vmatmul.bf16.gmra.mxu0 %v7575_v45  ;;  %v7638_v47 = vld [vmem:[%s8735_s30 + $0xc90] sm:$0xf] }
 0x69c   : > { %8059 = vmatmul.msk.bf16.gmra.mxu2 %vm3326_vm0, %v7583_v28  ;;  %v7639_v14 = vor.u32 %v8475_v6, %v7638_v47  ;;  %v10938_v28 = vld [vmem:[#allocation58_spill] sm:$0xff] }
 0x69d   : > { %5447 = vmatmul.bf16.gmra.mxu1 %v7579_v12  ;;  %v5735_v34 = vadd.f32 %v5734_v60, %v5406_v44 }
 0x69e   : > { %v4750_v29 = vpop.f32.mrf.mxu3 }
 0x69f   : > { %5916 = vst.msk [vmem:[%s9911_s29 + $0x2e8] sm:$0xff] %vm5822_vm1, %v5735_v34  ;;  %v4751_v59 = vadd.f32 %v4750_v29, %v9888_v10  ;;  %v5737_v26 = vpop.f32.mrf.mxu2 }
 0x6a0   : > { %v5081_v41 = vpop.f32.mrf.mxu0 }
 0x6a1   : > { %v5080_v35 = vadd.f32 %v5079_v15, %v4751_v59  ;;  %v8477_v59 = vld [vmem:[%s8735_s30 + $0xcbc] sm:$0xf] }
 0x6a2   : > { %v5410_v58 = vpop.f32.mrf.mxu1 }
 0x6a3   : > { %v5409_v50 = vadd.f32 %v5408_v57, %v5080_v35  ;;  %v8481_v35 = vld [vmem:[%s8735_s30 + $0xcd8] sm:$0xf0] }
 0x6a5   : > { %v5738_v3 = vadd.f32 %v5737_v26, %v5409_v50  ;;  %v7652_v26 = vld [vmem:[%s8735_s30 + $0xcd4] sm:$0xf0] }
 0x6a6   : > { %v4752_v24 = vpop.f32.mrf.mxu3  ;;  %v7655_v48 = vor.u32 %v8477_v59, %v7652_v26  ;;  %v7722_v59 = vld [vmem:[%s8735_s30 + $0xd38] sm:$0xf] }
 0x6a7   : > { %5917 = vst.msk [vmem:[%s9911_s29 + $0x2f0] sm:$0xff] %vm5822_vm1, %v5738_v3  ;;  %v4753_v10 = vadd.f32 %v4752_v24, %v9901_v9  ;;  %v5739_v25 = vpop.f32.mrf.mxu2 }
 0x6a8   : > { %v5084_v53 = vpop.f32.mrf.mxu0 }
 0x6a9   : > { %v5082_v20 = vadd.f32 %v5081_v41, %v4753_v10  ;;  %v7658_v41 = vld [vmem:[%s8735_s30 + $0xcc0] sm:$0xf] }
 0x6aa   : > { %v5413_v36 = vpop.f32.mrf.mxu1  ;;  %v7659_v18 = vor.u32 %v8481_v35, %v7658_v41  ;;  %v8496_v41 = vld [vmem:[%s8735_s30 + $0xd50] sm:$0xf0] }
 0x6ab   : > { %v5411_v2 = vadd.f32 %v5410_v58, %v5082_v20  ;;  %4794 = vmatmul.bf16.gmra.mxu3 %v7599_v11  ;;  %5123 = vmatmul.bf16.gmra.mxu0 %v7603_v43  ;;  %v7666_v58 = vld [vmem:[%s8735_s30 + $0xcc8] sm:$0xf]  ;;  %v10940_v20 = vld [vmem:[#allocation60_spill] sm:$0xff] }
 0x6ac   : > { %8060 = vmatmul.msk.bf16.gmra.mxu2 %vm3326_vm0, %v7611_v49  ;;  %v7667_v10 = vor.u32 %v8482_v17, %v7666_v58  ;;  %v8492_v35 = vld [vmem:[%s8735_s30 + $0xd34] sm:$0xf]  ;;  %v7716_v58 = vld [vmem:[%s8735_s30 + $0xd4c] sm:$0xf0]  ;;  %v10943_v17 = vld [vmem:[#allocation63_spill] sm:$0xff] }
 0x6ad   : > { %5452 = vmatmul.bf16.gmra.mxu1 %v7607_v27  ;;  %v5740_v9 = vadd.f32 %v5739_v25, %v5411_v2  ;;  %v7663_v25 = vor.u32 %v8478_v5, %v7660_v32 }
 0x6ae   : > { %v4755_v19 = vpop.f32.mrf.mxu3 }
 0x6af   : > { %5918 = vst.msk [vmem:[%s9911_s29 + $0x2f8] sm:$0xff] %vm5822_vm1, %v5740_v9  ;;  %v4756_v61 = vadd.f32 %v4755_v19, %v10937_v62  ;;  %v5742_v23 = vpop.f32.mrf.mxu2 }
 0x6b0   : > { %v5086_v42 = vpop.f32.mrf.mxu0 }
 0x6b1   : > { %v5085_v51 = vadd.f32 %v5084_v53, %v4756_v61 }
 0x6b2   : > { %v5415_v4 = vpop.f32.mrf.mxu1 }
 0x6b3   : > { %v5414_v16 = vadd.f32 %v5413_v36, %v5085_v51  ;;  %v7686_v51 = vld [vmem:[%s8735_s30 + $0xcf8] sm:$0xf] }
 0x6b5   : > { %v5743_v56 = vadd.f32 %v5742_v23, %v5414_v16  ;;  %v8484_v23 = vld [vmem:[%s8735_s30 + $0xcf4] sm:$0xf]  ;;  %v7694_v16 = vld [vmem:[%s8735_s30 + $0xd00] sm:$0xf] }
 0x6b6   : > { %v4757_v54 = vpop.f32.mrf.mxu3 }
 0x6b7   : > { %5919 = vst.msk [vmem:[%s9911_s29 + $0x300] sm:$0xff] %vm5822_vm1, %v5743_v56  ;;  %v4758_v39 = vadd.f32 %v4757_v54, %v9584_v13  ;;  %v5744_v8 = vpop.f32.mrf.mxu2  ;;  %v10941_v56 = vld [vmem:[#allocation61_spill] sm:$0xff] }
 0x6b8   : > { %v5089_v33 = vpop.f32.mrf.mxu0 }
 0x6b9   : > { %v5087_v60 = vadd.f32 %v5086_v42, %v4758_v39  ;;  %v7680_v42 = vld [vmem:[%s8735_s30 + $0xd0c] sm:$0xf0] }
 0x6ba   : > { %v5418_v7 = vpop.f32.mrf.mxu1  ;;  %v7683_v21 = vor.u32 %v8484_v23, %v7680_v42  ;;  %v7750_v23 = vld [vmem:[%s8735_s30 + $0xd70] sm:$0xf] }
 0x6bb   : > { %v5416_v45 = vadd.f32 %v5415_v4, %v5087_v60  ;;  %4799 = vmatmul.bf16.gmra.mxu3 %v7627_v63  ;;  %5128 = vmatmul.bf16.gmra.mxu0 %v7631_v38  ;;  %v8488_v4 = vld [vmem:[%s8735_s30 + $0xd10] sm:$0xf0]  ;;  %v7691_v63 = vor.u32 %v8485_v52, %v7688_v37 }
 0x6bc   : > { %8061 = vmatmul.msk.bf16.gmra.mxu2 %vm3326_vm0, %v7639_v14  ;;  %v7687_v54 = vor.u32 %v8488_v4, %v7686_v51  ;;  %v8503_v51 = vld [vmem:[%s8735_s30 + $0xd88] sm:$0xf0] }
 0x6bd   : > { %5457 = vmatmul.bf16.gmra.mxu1 %v7635_v1  ;;  %v5745_v13 = vadd.f32 %v5744_v8, %v5416_v45  ;;  %v7695_v8 = vor.u32 %v8489_v0, %v7694_v16  ;;  %v8499_v4 = vld [vmem:[%s8735_s30 + $0xd6c] sm:$0xf]  ;;  %v7744_v16 = vld [vmem:[%s8735_s30 + $0xd84] sm:$0xf0]  ;;  %v10945_v0 = vld [vmem:[#allocation65_spill] sm:$0xff] }
 0x6be   : > { %v4760_v15 = vpop.f32.mrf.mxu3 }
 0x6bf   : > { %5920 = vst.msk [vmem:[%s9911_s29 + $0x308] sm:$0xff] %vm5822_vm1, %v5745_v13  ;;  %v4761_v12 = vadd.f32 %v4760_v15, %v10938_v28  ;;  %v5747_v55 = vpop.f32.mrf.mxu2 }
 0x6c0   : > { %v5091_v57 = vpop.f32.mrf.mxu0 }
 0x6c1   : > { %v5090_v44 = vadd.f32 %v5089_v33, %v4761_v12 }
 0x6c2   : > { %v5420_v34 = vpop.f32.mrf.mxu1 }
 0x6c3   : > { %v5419_v29 = vadd.f32 %v5418_v7, %v5090_v44  ;;  %v10942_v7 = vld [vmem:[#allocation62_spill] sm:$0xff]  ;;  %v7708_v44 = vld [vmem:[%s8735_s30 + $0xd44] sm:$0xf0] }
 0x6c5   : > { %v5748_v50 = vadd.f32 %v5747_v55, %v5419_v29  ;;  %v8495_v29 = vld [vmem:[%s8735_s30 + $0xd48] sm:$0xf0] }
 0x6c6   : > { %v4762_v40 = vpop.f32.mrf.mxu3 }
 0x6c7   : > { %5921 = vst.msk [vmem:[%s9911_s29 + $0x310] sm:$0xff] %vm5822_vm1, %v5748_v50  ;;  %v4763_v3 = vadd.f32 %v4762_v40, %v10939_v31  ;;  %v5749_v22 = vpop.f32.mrf.mxu2 }
 0x6c8   : > { %v5094_v24 = vpop.f32.mrf.mxu0 }
 0x6c9   : > { %v5092_v11 = vadd.f32 %v5091_v57, %v4763_v3  ;;  %v8491_v57 = vld [vmem:[%s8735_s30 + $0xd2c] sm:$0xf] }
 0x6ca   : > { %v5423_v43 = vpop.f32.mrf.mxu1  ;;  %v7711_v40 = vor.u32 %v8491_v57, %v7708_v44  ;;  %v7778_v57 = vld [vmem:[%s8735_s30 + $0xda8] sm:$0xf] }
 0x6cb   : > { %v5421_v53 = vadd.f32 %v5420_v34, %v5092_v11  ;;  %4804 = vmatmul.bf16.gmra.mxu3 %v7655_v48  ;;  %5133 = vmatmul.bf16.gmra.mxu0 %v7659_v18  ;;  %v7714_v34 = vld [vmem:[%s8735_s30 + $0xd30] sm:$0xf]  ;;  %v7719_v48 = vor.u32 %v8492_v35, %v7716_v58 }
 0x6cc   : > { %8062 = vmatmul.msk.bf16.gmra.mxu2 %vm3326_vm0, %v7667_v10  ;;  %v7715_v31 = vor.u32 %v8495_v29, %v7714_v34  ;;  %v8510_v34 = vld [vmem:[%s8735_s30 + $0xdc0] sm:$0xf0] }
 0x6cd   : > { %5462 = vmatmul.bf16.gmra.mxu1 %v7663_v25  ;;  %v5750_v49 = vadd.f32 %v5749_v22, %v5421_v53  ;;  %v7723_v22 = vor.u32 %v8496_v41, %v7722_v59  ;;  %v8506_v29 = vld [vmem:[%s8735_s30 + $0xda4] sm:$0xf]  ;;  %v7772_v59 = vld [vmem:[%s8735_s30 + $0xdbc] sm:$0xf0]  ;;  %v10947_v41 = vld [vmem:[#allocation67_spill] sm:$0xff] }
 0x6ce   : > { %v4765_v27 = vpop.f32.mrf.mxu3 }
 0x6cf   : > { %5922 = vst.msk [vmem:[%s9911_s29 + $0x318] sm:$0xff] %vm5822_vm1, %v5750_v49  ;;  %v4766_v36 = vadd.f32 %v4765_v27, %v10940_v20  ;;  %v5752_v2 = vpop.f32.mrf.mxu2 }
 0x6d0   : > { %v5096_v9 = vpop.f32.mrf.mxu0 }
 0x6d1   : > { %v5095_v19 = vadd.f32 %v5094_v24, %v4766_v36 }
 0x6d2   : > { %v5425_v62 = vpop.f32.mrf.mxu1 }
 0x6d3   : > { %v5424_v61 = vadd.f32 %v5423_v43, %v5095_v19  ;;  %v10944_v43 = vld [vmem:[#allocation64_spill] sm:$0xff]  ;;  %v7736_v19 = vld [vmem:[%s8735_s30 + $0xd7c] sm:$0xf0] }
 0x6d5   : > { %v5753_v30 = vadd.f32 %v5752_v2, %v5424_v61  ;;  %v8502_v61 = vld [vmem:[%s8735_s30 + $0xd80] sm:$0xf0] }
 0x6d6   : > { %v4767_v47 = vpop.f32.mrf.mxu3 }
 0x6d7   : > { %5923 = vst.msk [vmem:[%s9911_s29 + $0x320] sm:$0xff] %vm5822_vm1, %v5753_v30  ;;  %v4768_v6 = vadd.f32 %v4767_v47, %v10941_v56  ;;  %v5754_v46 = vpop.f32.mrf.mxu2 }
 0x6d8   : > { %v5099_v39 = vpop.f32.mrf.mxu0 }
 0x6d9   : > { %v5097_v38 = vadd.f32 %v5096_v9, %v4768_v6  ;;  %v8498_v9 = vld [vmem:[%s8735_s30 + $0xd64] sm:$0xf] }
 0x6da   : > { %v5428_v33 = vpop.f32.mrf.mxu1  ;;  %v7739_v47 = vor.u32 %v8498_v9, %v7736_v19  ;;  %v7806_v9 = vld [vmem:[%s8735_s30 + $0xde0] sm:$0xf] }
 0x6db   : > { %v5426_v14 = vadd.f32 %v5425_v62, %v5097_v38  ;;  %4809 = vmatmul.bf16.gmra.mxu3 %v7683_v21  ;;  %5138 = vmatmul.bf16.gmra.mxu0 %v7687_v54  ;;  %v7742_v62 = vld [vmem:[%s8735_s30 + $0xd68] sm:$0xf]  ;;  %v7747_v21 = vor.u32 %v8499_v4, %v7744_v16 }
 0x6dc   : > { %8063 = vmatmul.msk.bf16.gmra.mxu2 %vm3326_vm0, %v7695_v8  ;;  %v7743_v56 = vor.u32 %v8502_v61, %v7742_v62  ;;  %v8517_v62 = vld [vmem:[%s8735_s30 + $0xdf8] sm:$0xf0] }
 0x6dd   : > { %5467 = vmatmul.bf16.gmra.mxu1 %v7691_v63  ;;  %v5755_v1 = vadd.f32 %v5754_v46, %v5426_v14  ;;  %v7751_v46 = vor.u32 %v8503_v51, %v7750_v23  ;;  %v8513_v61 = vld [vmem:[%s8735_s30 + $0xddc] sm:$0xf]  ;;  %v7800_v23 = vld [vmem:[%s8735_s30 + $0xdf4] sm:$0xf0] }
 0x6de   : > { %v4770_v60 = vpop.f32.mrf.mxu3  ;;  %v10949_v51 = vld [vmem:[#allocation69_spill] sm:$0xff] }
 0x6df   : > { %5924 = vst.msk [vmem:[%s9911_s29 + $0x328] sm:$0xff] %vm5822_vm1, %v5755_v1  ;;  %v4771_v45 = vadd.f32 %v4770_v60, %v10942_v7  ;;  %v5757_v13 = vpop.f32.mrf.mxu2 }
 0x6e0   : > { %v5101_v15 = vpop.f32.mrf.mxu0 }
 0x6e1   : > { %v5100_v28 = vadd.f32 %v5099_v39, %v4771_v45 }
 0x6e2   : > { %v5430_v12 = vpop.f32.mrf.mxu1 }
 0x6e3   : > { %v5429_v55 = vadd.f32 %v5428_v33, %v5100_v28  ;;  %v10946_v33 = vld [vmem:[#allocation66_spill] sm:$0xff]  ;;  %v7764_v28 = vld [vmem:[%s8735_s30 + $0xdb4] sm:$0xf0] }
 0x6e5   : > { %v5758_v26 = vadd.f32 %v5757_v13, %v5429_v55  ;;  %v8509_v55 = vld [vmem:[%s8735_s30 + $0xdb8] sm:$0xf0] }
 0x6e6   : > { %v4772_v50 = vpop.f32.mrf.mxu3 }
 0x6e7   : > { %5925 = vst.msk [vmem:[%s9911_s29 + $0x330] sm:$0xff] %vm5822_vm1, %v5758_v26  ;;  %v4773_v5 = vadd.f32 %v4772_v50, %v10943_v17  ;;  %v5759_v32 = vpop.f32.mrf.mxu2 }
 0x6e8   : > { %v5104_v3 = vpop.f32.mrf.mxu0 }
 0x6e9   : > { %v5102_v18 = vadd.f32 %v5101_v15, %v4773_v5  ;;  %v8505_v15 = vld [vmem:[%s8735_s30 + $0xd9c] sm:$0xf] }
 0x6ea   : > { %v5433_v24 = vpop.f32.mrf.mxu1  ;;  %v7767_v50 = vor.u32 %v8505_v15, %v7764_v28 }
 0x6eb   : > { %v5431_v10 = vadd.f32 %v5430_v12, %v5102_v18  ;;  %4814 = vmatmul.bf16.gmra.mxu3 %v7711_v40  ;;  %5143 = vmatmul.bf16.gmra.mxu0 %v7715_v31  ;;  %v7770_v12 = vld [vmem:[%s8735_s30 + $0xda0] sm:$0xf]  ;;  %v7775_v40 = vor.u32 %v8506_v29, %v7772_v59  ;;  %v10952_v29 = vld [vmem:[#allocation72_spill] sm:$0xff] }
 0x6ec   : > { %8064 = vmatmul.msk.bf16.gmra.mxu2 %vm3326_vm0, %v7723_v22  ;;  %v7771_v17 = vor.u32 %v8509_v55, %v7770_v12 }
 0x6ed   : > { %5472 = vmatmul.bf16.gmra.mxu1 %v7719_v48  ;;  %v5760_v25 = vadd.f32 %v5759_v32, %v5431_v10  ;;  %v7779_v32 = vor.u32 %v8510_v34, %v7778_v57 }
 0x6ee   : > { %v4775_v11 = vpop.f32.mrf.mxu3 }
 0x6ef   : > { %5926 = vst.msk [vmem:[%s9911_s29 + $0x338] sm:$0xff] %vm5822_vm1, %v5760_v25  ;;  %v4776_v53 = vadd.f32 %v4775_v11, %v10944_v43  ;;  %v5762_v49 = vpop.f32.mrf.mxu2 }
 0x6f0   : > { %v5106_v27 = vpop.f32.mrf.mxu0 }
 0x6f1   : > { %v5105_v20 = vadd.f32 %v5104_v3, %v4776_v53 }
 0x6f2   : > { %v5435_v36 = vpop.f32.mrf.mxu1 }
 0x6f3   : > { %v5434_v2 = vadd.f32 %v5433_v24, %v5105_v20  ;;  %v10948_v24 = vld [vmem:[#allocation68_spill] sm:$0xff] }
 0x6f4   : > { %v7792_v20 = vld [vmem:[%s8735_s30 + $0xdec] sm:$0xf0] }
 0x6f5   : > { %v5763_v42 = vadd.f32 %v5762_v49, %v5434_v2  ;;  %v8516_v2 = vld [vmem:[%s8735_s30 + $0xdf0] sm:$0xf0] }
 0x6f6   : > { %v4777_v30 = vpop.f32.mrf.mxu3 }
 0x6f7   : > { %5927 = vst.msk [vmem:[%s9911_s29 + $0x340] sm:$0xff] %vm5822_vm1, %v5763_v42  ;;  %v4778_v52 = vadd.f32 %v4777_v30, %v10945_v0  ;;  %v5764_v37 = vpop.f32.mrf.mxu2 }
 0x6f8   : > { %v5109_v6 = vpop.f32.mrf.mxu0 }
 0x6f9   : > { %v5107_v54 = vadd.f32 %v5106_v27, %v4778_v52  ;;  %v8512_v27 = vld [vmem:[%s8735_s30 + $0xdd4] sm:$0xf] }
 0x6fa   : > { %v5438_v39 = vpop.f32.mrf.mxu1  ;;  %v7795_v30 = vor.u32 %v8512_v27, %v7792_v20 }
 0x6fb   : > { %v5436_v8 = vadd.f32 %v5435_v36, %v5107_v54  ;;  %4819 = vmatmul.bf16.gmra.mxu3 %v7739_v47  ;;  %5148 = vmatmul.bf16.gmra.mxu0 %v7743_v56  ;;  %v7798_v36 = vld [vmem:[%s8735_s30 + $0xdd8] sm:$0xf]  ;;  %v7803_v47 = vor.u32 %v8513_v61, %v7800_v23 }
 0x6fc   : > { %8065 = vmatmul.msk.bf16.gmra.mxu2 %vm3326_vm0, %v7751_v46  ;;  %v7799_v0 = vor.u32 %v8516_v2, %v7798_v36 }
 0x6fd   : > { %5477 = vmatmul.bf16.gmra.mxu1 %v7747_v21  ;;  %v5765_v63 = vadd.f32 %v5764_v37, %v5436_v8  ;;  %v7807_v37 = vor.u32 %v8517_v62, %v7806_v9  ;;  %v10955_v9 = vld [vmem:[#allocation75_spill] sm:$0xff] }
 0x6fe   : > { %v4780_v38 = vpop.f32.mrf.mxu3 }
 0x6ff   : > { %5928 = vst.msk [vmem:[%s9911_s29 + $0x348] sm:$0xff] %vm5822_vm1, %v5765_v63  ;;  %v4781_v14 = vadd.f32 %v4780_v38, %v10946_v33  ;;  %v5767_v1 = vpop.f32.mrf.mxu2 }
 0x700   : > { %v5111_v60 = vpop.f32.mrf.mxu0 }
 0x701   : > { %v5110_v7 = vadd.f32 %v5109_v6, %v4781_v14 }
 0x702   : > { %v5440_v45 = vpop.f32.mrf.mxu1 }
 0x703   : > { %v5439_v13 = vadd.f32 %v5438_v39, %v5110_v7  ;;  %v10950_v39 = vld [vmem:[#allocation70_spill] sm:$0xff] }
 0x705   : > { %v5768_v44 = vadd.f32 %v5767_v1, %v5439_v13 }
 0x706   : > { %v4782_v26 = vpop.f32.mrf.mxu3 }
 0x707   : > { %5929 = vst.msk [vmem:[%s9911_s29 + $0x350] sm:$0xff] %vm5822_vm1, %v5768_v44  ;;  %v4783_v35 = vadd.f32 %v4782_v26, %v10947_v41  ;;  %v5769_v58 = vpop.f32.mrf.mxu2 }
 0x708   : > { %v5114_v5 = vpop.f32.mrf.mxu0 }
 0x709   : > { %v5112_v31 = vadd.f32 %v5111_v60, %v4783_v35 }
 0x70a   : > { %v5443_v3 = vpop.f32.mrf.mxu1 }
 0x70b   : > { %v5441_v22 = vadd.f32 %v5440_v45, %v5112_v31  ;;  %4824 = vmatmul.bf16.gmra.mxu3 %v7767_v50  ;;  %5153 = vmatmul.bf16.gmra.mxu0 %v7771_v17  ;;  %v10951_v45 = vld [vmem:[#allocation71_spill] sm:$0xff] }
 0x70c   : > { %8066 = vmatmul.msk.bf16.gmra.mxu2 %vm3326_vm0, %v7779_v32  ;;  %v10953_v32 = vld [vmem:[#allocation73_spill] sm:$0xff] }
 0x70d   : > { %5482 = vmatmul.bf16.gmra.mxu1 %v7775_v40  ;;  %v5770_v48 = vadd.f32 %v5769_v58, %v5441_v22 }
 0x70e   : > { %v4785_v18 = vpop.f32.mrf.mxu3 }
 0x70f   : > { %5930 = vst.msk [vmem:[%s9911_s29 + $0x358] sm:$0xff] %vm5822_vm1, %v5770_v48  ;;  %v4786_v10 = vadd.f32 %v4785_v18, %v10948_v24  ;;  %v5772_v25 = vpop.f32.mrf.mxu2 }
 0x710   : > { %v5116_v11 = vpop.f32.mrf.mxu0 }
 0x711   : > { %v5115_v43 = vadd.f32 %v5114_v5, %v4786_v10 }
 0x712   : > { %v5445_v53 = vpop.f32.mrf.mxu1 }
 0x713   : > { %v5444_v49 = vadd.f32 %v5443_v3, %v5115_v43 }
 0x715   : > { %v5773_v19 = vadd.f32 %v5772_v25, %v5444_v49  ;;  %v10954_v25 = vld [vmem:[#allocation74_spill] sm:$0xff] }
 0x716   : > { %v4787_v42 = vpop.f32.mrf.mxu3 }
 0x717   : > { %5931 = vst.msk [vmem:[%s9911_s29 + $0x360] sm:$0xff] %vm5822_vm1, %v5773_v19  ;;  %v4788_v4 = vadd.f32 %v4787_v42, %v10949_v51  ;;  %v5774_v16 = vpop.f32.mrf.mxu2 }
 0x718   : > { %v5119_v52 = vpop.f32.mrf.mxu0 }
 0x719   : > { %v5117_v56 = vadd.f32 %v5116_v11, %v4788_v4 }
 0x71a   : > { %v5448_v6 = vpop.f32.mrf.mxu1 }
 0x71b   : > { %v5446_v46 = vadd.f32 %v5445_v53, %v5117_v56  ;;  %4829 = vmatmul.bf16.gmra.mxu3 %v7795_v30  ;;  %5158 = vmatmul.bf16.gmra.mxu0 %v7799_v0  ;;  %v10956_v30 = vld [vmem:[#allocation76_spill] sm:$0xff] }
 0x71c   : > { %8067 = vmatmul.msk.bf16.gmra.mxu2 %vm3326_vm0, %v7807_v37 }
 0x71d   : > { %5487 = vmatmul.bf16.gmra.mxu1 %v7803_v47  ;;  %v5775_v21 = vadd.f32 %v5774_v16, %v5446_v46 }
 0x71e   : > { %v4790_v54 = vpop.f32.mrf.mxu3 }
 0x71f   : > { %5932 = vst.msk [vmem:[%s9911_s29 + $0x368] sm:$0xff] %vm5822_vm1, %v5775_v21  ;;  %v4791_v8 = vadd.f32 %v4790_v54, %v10950_v39  ;;  %v5777_v63 = vpop.f32.mrf.mxu2  ;;  %v10957_v54 = vld [vmem:[#allocation77_spill] sm:$0xff] }
 0x720   : > { %v5121_v38 = vpop.f32.mrf.mxu0 }
 0x721   : > { %v5120_v33 = vadd.f32 %v5119_v52, %v4791_v8 }
 0x722   : > { %v5450_v14 = vpop.f32.mrf.mxu1 }
 0x723   : > { %v5449_v1 = vadd.f32 %v5448_v6, %v5120_v33 }
 0x725   : > { %v5778_v60 = vadd.f32 %v5777_v63, %v5449_v1 }
 0x726   : > { %v4792_v7 = vpop.f32.mrf.mxu3 }
 0x727   : > { %5933 = vst.msk [vmem:[%s9911_s29 + $0x370] sm:$0xff] %vm5822_vm1, %v5778_v60  ;;  %v4793_v13 = vadd.f32 %v4792_v7, %v10951_v45  ;;  %v5779_v15 = vpop.f32.mrf.mxu2  ;;  %v10958_v7 = vld [vmem:[#allocation78_spill] sm:$0xff] }
 0x728   : > { %v5124_v28 = vpop.f32.mrf.mxu0 }
 0x729   : > { %v5122_v12 = vadd.f32 %v5121_v38, %v4793_v13 }
 0x72a   : > { %v5453_v55 = vpop.f32.mrf.mxu1 }
 0x72b   : > { %v5451_v57 = vadd.f32 %v5450_v14, %v5122_v12 }
 0x72d   : > { %v5780_v44 = vadd.f32 %v5779_v15, %v5451_v57 }
 0x72e   : > { %v4795_v34 = vpop.f32.mrf.mxu3 }
 0x72f   : > { %5934 = vst.msk [vmem:[%s9911_s29 + $0x378] sm:$0xff] %vm5822_vm1, %v5780_v44  ;;  %v4796_v59 = vadd.f32 %v4795_v34, %v10952_v29  ;;  %v5782_v26 = vpop.f32.mrf.mxu2  ;;  %v10959_v34 = vld [vmem:[#allocation79_spill] sm:$0xff] }
 0x730   : > { %v5126_v41 = vpop.f32.mrf.mxu0 }
 0x731   : > { %v5125_v35 = vadd.f32 %v5124_v28, %v4796_v59 }
 0x732   : > { %v5455_v58 = vpop.f32.mrf.mxu1 }
 0x733   : > { %v5454_v50 = vadd.f32 %v5453_v55, %v5125_v35 }
 0x735   : > { %v5783_v17 = vadd.f32 %v5782_v26, %v5454_v50 }
 0x736   : > { %v4797_v5 = vpop.f32.mrf.mxu3 }
 0x737   : > { %5935 = vst.msk [vmem:[%s9911_s29 + $0x380] sm:$0xff] %vm5822_vm1, %v5783_v17  ;;  %v4798_v40 = vadd.f32 %v4797_v5, %v10953_v32  ;;  %v5784_v31 = vpop.f32.mrf.mxu2  ;;  %v10960_v5 = vld [vmem:[#allocation80_spill] sm:$0xff] }
 0x738   : > { %v5129_v3 = vpop.f32.mrf.mxu0 }
 0x739   : > { %v5127_v22 = vadd.f32 %v5126_v41, %v4798_v40 }
 0x73a   : > { %v5458_v48 = vpop.f32.mrf.mxu1 }
 0x73b   : > { %v5456_v18 = vadd.f32 %v5455_v58, %v5127_v22 }
 0x73d   : > { %v5785_v24 = vadd.f32 %v5784_v31, %v5456_v18 }
 0x73e   : > { %v4800_v10 = vpop.f32.mrf.mxu3 }
 0x73f   : > { %5936 = vst.msk [vmem:[%s9911_s29 + $0x388] sm:$0xff] %vm5822_vm1, %v5785_v24  ;;  %v4801_v11 = vadd.f32 %v4800_v10, %v10954_v25  ;;  %v5787_v43 = vpop.f32.mrf.mxu2  ;;  %v10961_v10 = vld [vmem:[#allocation81_spill] sm:$0xff] }
 0x740   : > { %v5131_v53 = vpop.f32.mrf.mxu0 }
 0x741   : > { %v5130_v49 = vadd.f32 %v5129_v3, %v4801_v11 }
 0x742   : > { %v5460_v27 = vpop.f32.mrf.mxu1 }
 0x743   : > { %v5459_v20 = vadd.f32 %v5458_v48, %v5130_v49 }
 0x745   : > { %v5788_v36 = vadd.f32 %v5787_v43, %v5459_v20 }
 0x746   : > { %v4802_v2 = vpop.f32.mrf.mxu3 }
 0x747   : > { %5937 = vst.msk [vmem:[%s9911_s29 + $0x390] sm:$0xff] %vm5822_vm1, %v5788_v36  ;;  %v4803_v19 = vadd.f32 %v4802_v2, %v10955_v9  ;;  %v5789_v62 = vpop.f32.mrf.mxu2  ;;  %v10962_v2 = vld [vmem:[#allocation82_spill] sm:$0xff] }
 0x748   : > { %v5134_v61 = vpop.f32.mrf.mxu0 }
 0x749   : > { %v5132_v23 = vadd.f32 %v5131_v53, %v4803_v19 }
 0x74a   : > { %v5463_v42 = vpop.f32.mrf.mxu1 }
 0x74b   : > { %v5461_v51 = vadd.f32 %v5460_v27, %v5132_v23 }
 0x74d   : > { %v5790_v4 = vadd.f32 %v5789_v62, %v5461_v51 }
 0x74e   : > { %v4805_v16 = vpop.f32.mrf.mxu3 }
 0x74f   : > { %5938 = vst.msk [vmem:[%s9911_s29 + $0x398] sm:$0xff] %vm5822_vm1, %v5790_v4  ;;  %v4806_v0 = vadd.f32 %v4805_v16, %v10956_v30  ;;  %v5792_v52 = vpop.f32.mrf.mxu2  ;;  %v10963_v16 = vld [vmem:[#allocation83_spill] sm:$0xff] }
 0x750   : > { %v5136_v37 = vpop.f32.mrf.mxu0 }
 0x751   : > { %v5135_v47 = vadd.f32 %v5134_v61, %v4806_v0 }
 0x752   : > { %v5465_v56 = vpop.f32.mrf.mxu1 }
 0x753   : > { %v5464_v6 = vadd.f32 %v5463_v42, %v5135_v47 }
 0x755   : > { %v5793_v46 = vadd.f32 %v5792_v52, %v5464_v6 }
 0x756   : > { %v4807_v21 = vpop.f32.mrf.mxu3 }
 0x757   : > { %5939 = vst.msk [vmem:[%s9911_s29 + $0x3a0] sm:$0xff] %vm5822_vm1, %v5793_v46  ;;  %v4808_v39 = vadd.f32 %v4807_v21, %v10957_v54  ;;  %v5794_v8 = vpop.f32.mrf.mxu2  ;;  %v10964_v21 = vld [vmem:[#allocation84_spill] sm:$0xff] }
 0x758   : > { %v5139_v63 = vpop.f32.mrf.mxu0 }
 0x759   : > { %v5137_v38 = vadd.f32 %v5136_v37, %v4808_v39 }
 0x75a   : > { %v5468_v33 = vpop.f32.mrf.mxu1 }
 0x75b   : > { %v5466_v14 = vadd.f32 %v5465_v56, %v5137_v38 }
 0x75d   : > { %v5795_v1 = vadd.f32 %v5794_v8, %v5466_v14 }
 0x75e   : > { %v4810_v60 = vpop.f32.mrf.mxu3 }
 0x75f   : > { %5940 = vst.msk [vmem:[%s9911_s29 + $0x3a8] sm:$0xff] %vm5822_vm1, %v5795_v1  ;;  %v4811_v45 = vadd.f32 %v4810_v60, %v10958_v7  ;;  %v5797_v13 = vpop.f32.mrf.mxu2  ;;  %v10965_v60 = vld [vmem:[#allocation85_spill] sm:$0xff] }
 0x760   : > { %v5141_v15 = vpop.f32.mrf.mxu0 }
 0x761   : > { %v5140_v28 = vadd.f32 %v5139_v63, %v4811_v45 }
 0x762   : > { %v5470_v12 = vpop.f32.mrf.mxu1 }
 0x763   : > { %v5469_v55 = vadd.f32 %v5468_v33, %v5140_v28 }
 0x765   : > { %v5798_v57 = vadd.f32 %v5797_v13, %v5469_v55 }
 0x766   : > { %v4812_v44 = vpop.f32.mrf.mxu3 }
 0x767   : > { %5941 = vst.msk [vmem:[%s9911_s29 + $0x3b0] sm:$0xff] %vm5822_vm1, %v5798_v57  ;;  %v4813_v29 = vadd.f32 %v4812_v44, %v10959_v34  ;;  %v5799_v59 = vpop.f32.mrf.mxu2  ;;  %v10966_v57 = vld [vmem:[#allocation86_spill] sm:$0xff] }
 0x768   : > { %v5144_v26 = vpop.f32.mrf.mxu0 }
 0x769   : > { %v5142_v41 = vadd.f32 %v5141_v15, %v4813_v29 }
 0x76a   : > { %v5473_v35 = vpop.f32.mrf.mxu1 }
 0x76b   : > { %v5471_v58 = vadd.f32 %v5470_v12, %v5142_v41 }
 0x76d   : > { %v5800_v50 = vadd.f32 %v5799_v59, %v5471_v58  ;;  %v10967_v58 = vld [vmem:[#allocation87_spill] sm:$0xff] }
 0x76e   : > { %v4815_v17 = vpop.f32.mrf.mxu3 }
 0x76f   : > { %5942 = vst.msk [vmem:[%s9911_s29 + $0x3b8] sm:$0xff] %vm5822_vm1, %v5800_v50  ;;  %v4816_v32 = vadd.f32 %v4815_v17, %v10960_v5  ;;  %v5802_v40 = vpop.f32.mrf.mxu2 }
 0x770   : > { %v5146_v31 = vpop.f32.mrf.mxu0 }
 0x771   : > { %v5145_v3 = vadd.f32 %v5144_v26, %v4816_v32 }
 0x772   : > { %v5475_v22 = vpop.f32.mrf.mxu1 }
 0x773   : > { %v5474_v48 = vadd.f32 %v5473_v35, %v5145_v3 }
 0x775   : > { %v5803_v18 = vadd.f32 %v5802_v40, %v5474_v48 }
 0x776   : > { %v4817_v24 = vpop.f32.mrf.mxu3 }
 0x777   : > { %5943 = vst.msk [vmem:[%s9911_s29 + $0x3c0] sm:$0xff] %vm5822_vm1, %v5803_v18  ;;  %v4818_v25 = vadd.f32 %v4817_v24, %v10961_v10  ;;  %v5804_v11 = vpop.f32.mrf.mxu2 }
 0x778   : > { %v5149_v43 = vpop.f32.mrf.mxu0 }
 0x779   : > { %v5147_v53 = vadd.f32 %v5146_v31, %v4818_v25 }
 0x77a   : > { %v5478_v49 = vpop.f32.mrf.mxu1 }
 0x77b   : > { %v5476_v27 = vadd.f32 %v5475_v22, %v5147_v53 }
 0x77d   : > { %v5805_v20 = vadd.f32 %v5804_v11, %v5476_v27 }
 0x77e   : > { %v4820_v36 = vpop.f32.mrf.mxu3 }
 0x77f   : > { %5944 = vst.msk [vmem:[%s9911_s29 + $0x3c8] sm:$0xff] %vm5822_vm1, %v5805_v20  ;;  %v4821_v9 = vadd.f32 %v4820_v36, %v10962_v2  ;;  %v5807_v19 = vpop.f32.mrf.mxu2 }
 0x780   : > { %v5151_v62 = vpop.f32.mrf.mxu0 }
 0x781   : > { %v5150_v61 = vadd.f32 %v5149_v43, %v4821_v9 }
 0x782   : > { %v5480_v23 = vpop.f32.mrf.mxu1 }
 0x783   : > { %v5479_v42 = vadd.f32 %v5478_v49, %v5150_v61 }
 0x785   : > { %v5808_v51 = vadd.f32 %v5807_v19, %v5479_v42 }
 0x786   : > { %v4822_v4 = vpop.f32.mrf.mxu3 }
 0x787   : > { %5945 = vst.msk [vmem:[%s9911_s29 + $0x3d0] sm:$0xff] %vm5822_vm1, %v5808_v51  ;;  %v4823_v30 = vadd.f32 %v4822_v4, %v10963_v16  ;;  %v5809_v0 = vpop.f32.mrf.mxu2 }
 0x788   : > { %v5154_v37 = vpop.f32.mrf.mxu0 }
 0x789   : > { %v5152_v52 = vadd.f32 %v5151_v62, %v4823_v30 }
 0x78a   : > { %v5483_v56 = vpop.f32.mrf.mxu1 }
 0x78b   : > { %v5481_v47 = vadd.f32 %v5480_v23, %v5152_v52 }
 0x78d   : > { %v5810_v6 = vadd.f32 %v5809_v0, %v5481_v47 }
 0x78e   : > { %v4825_v46 = vpop.f32.mrf.mxu3 }
 0x78f   : > { %5946 = vst.msk [vmem:[%s9911_s29 + $0x3d8] sm:$0xff] %vm5822_vm1, %v5810_v6  ;;  %v4826_v54 = vadd.f32 %v4825_v46, %v10964_v21  ;;  %v5812_v39 = vpop.f32.mrf.mxu2 }
 0x790   : > { %v5156_v38 = vpop.f32.mrf.mxu0 }
 0x791   : > { %v5155_v8 = vadd.f32 %v5154_v37, %v4826_v54 }
 0x792   : > { %v5485_v14 = vpop.f32.mrf.mxu1 }
 0x793   : > { %v5484_v63 = vadd.f32 %v5483_v56, %v5155_v8 }
 0x795   : > { %v5813_v33 = vadd.f32 %v5812_v39, %v5484_v63 }
 0x796   : > { %v4827_v1 = vpop.f32.mrf.mxu3 }
 0x797   : > { %5947 = vst.msk [vmem:[%s9911_s29 + $0x3e0] sm:$0xff] %vm5822_vm1, %v5813_v33  ;;  %v4828_v7 = vadd.f32 %v4827_v1, %v10965_v60  ;;  %v5814_v45 = vpop.f32.mrf.mxu2 }
 0x798   : > { %v5159_v12 = vpop.f32.mrf.mxu0 }
 0x799   : > { %v5157_v13 = vadd.f32 %v5156_v38, %v4828_v7 }
 0x79a   : > { %v5488_v34 = vpop.f32.mrf.mxu1 }
 0x79b   : > { %v5486_v15 = vadd.f32 %v5485_v14, %v5157_v13 }
 0x79d   : > { %v5815_v28 = vadd.f32 %v5814_v45, %v5486_v15 }
 0x79e   : > { %v4830_v55 = vpop.f32.mrf.mxu3 }
 0x79f   : > { %5948 = vst.msk [vmem:[%s9911_s29 + $0x3e8] sm:$0xff] %vm5822_vm1, %v5815_v28  ;;  %v4831_v44 = vadd.f32 %v4830_v55, %v10966_v57  ;;  %v5817_v59 = vpop.f32.mrf.mxu2 }
 0x7a0   : > { %v5161_v17 = vpop.f32.mrf.mxu0 }
 0x7a1   : > { %v5160_v29 = vadd.f32 %v5159_v12, %v4831_v44 }
 0x7a2   : > { %v5490_v32 = vpop.f32.mrf.mxu1 }
 0x7a3   : > { %v5489_v26 = vadd.f32 %v5488_v34, %v5160_v29 }
 0x7a5   : > { %v5818_v41 = vadd.f32 %v5817_v59, %v5489_v26 }
 0x7a6   : > { %v4832_v35 = vpop.f32.mrf.mxu3 }
 0x7a7   : > { %5949 = vst.msk [vmem:[%s9911_s29 + $0x3f0] sm:$0xff] %vm5822_vm1, %v5818_v41  ;;  %v4833_v50 = vadd.f32 %v4832_v35, %v10967_v58  ;;  %v5819_v31 = vpop.f32.mrf.mxu2 }
 0x7a9   : > { %v5162_v5 = vadd.f32 %v5161_v17, %v4833_v50 }
 0x7ab   : > { %v5491_v40 = vadd.f32 %v5490_v32, %v5162_v5 }
 0x7ad   : > { %v5820_v3 = vadd.f32 %v5819_v31, %v5491_v40 }
 0x7af   : > { %5950 = vst.msk [vmem:[%s9911_s29 + $0x3f8] sm:$0xff] %vm5822_vm1, %v5820_v3 }
 0x7b0 PF: > { %s13_s12 = sadd.s32 1, %s8610_s12  }
 0x7b1   : > { %p10_p4 = scmp.ge.s32.totalorder %s13_s12, 4  }
 0x7b3   :  { %12 = sbr.rel (!%p10_p4) target bundleno = 1 (0x1), region = 62 }

</bundles_post_ra>
